<compile_context>
chip_gen: v5e
topology: v5e:2x2
jax: 0.10.0
libtpu: 0.0.40
codegen_flags: <defaults>
</compile_context>

<pallas_src>
import jax
import jax.numpy as jnp
import numpy as np
from jax.experimental import pallas as pl
from jax.experimental.pallas import tpu as pltpu


# ----------------------------- mask construction ----------------------------
def get_mask(in_features, out_features, in_flow_features, mask_type=None):
    """NumPy port of the PyTorch get_mask (returns (out_features, in_features))."""
    if mask_type == 'input':
        in_degrees = np.arange(in_features) % in_flow_features
    else:
        in_degrees = np.arange(in_features) % (in_flow_features - 1)
    if mask_type == 'output':
        out_degrees = np.arange(out_features) % in_flow_features - 1
    else:
        out_degrees = np.arange(out_features) % (in_flow_features - 1)
    return (out_degrees[:, None] >= in_degrees[None, :]).astype(np.float32)


# --------------------------------- kernel -----------------------------------
def made_iaf_direct_kernel(x_ref, w1_ref, b1_ref, w2_ref, b2_ref,
                           w3m_ref, w3a_ref, w3aT_ref, b3m_ref, b3a_ref,
                           u_ref, logdet_ref):
    Bm, D = x_ref.shape
    H = w2_ref.shape[0]

    # --- hoist all loop-invariant loads / broadcasts out of the loop --------
    x = x_ref[...]                                    # (Bm, D)
    w1 = w1_ref[...]                                  # (D, H)  joiner (masked, T)
    w2 = w2_ref[...]                                  # (H, H)  hidden (masked, T)
    w3m = w3m_ref[...]                                # (D, H)  row i = m-col i of w3
    w3a = w3a_ref[...]                                # (D, H)  row i = a-col i of w3
    w3aT = w3aT_ref[...]                              # (H, D)  for final full `a`
    b2 = jnp.broadcast_to(b2_ref[...], (Bm, H))
    b3m = jnp.broadcast_to(b3m_ref[...], (Bm, D))
    b3a = jnp.broadcast_to(b3a_ref[...], (Bm, D))

    # Joiner pre-activation h1 = u @ w1 + b1, maintained incrementally.
    # u starts at zero, so h1 starts at the (broadcast) bias.
    h1 = jnp.broadcast_to(b1_ref[...], (Bm, H))       # (Bm, H)

    a_full = None
    # D is a small compile-time constant -> full unroll at trace time, all
    # state carried in vregs.  For large D use lax.fori_loop(..., unroll=2..4)
    # with pl.ds column slices instead.
    for i in range(D):
        h = jnp.maximum(h1, 0.0)                                       # ReLU
        h = jnp.dot(h, w2, preferred_element_type=jnp.float32) + b2    # hidden
        h = jnp.maximum(h, 0.0)                                        # ReLU

        # Only output columns i (m) and D+i (a) are consumed this iteration:
        # narrow VPU-mul + XLU lane-reduce instead of a full (Bm, 2D) matmul.
        m_col = (jnp.sum(h * w3m[i:i + 1, :], axis=-1, keepdims=True)
                 + b3m[:, i:i + 1])                                    # (Bm, 1)
        if i + 1 < D:
            a_col = (jnp.sum(h * w3a[i:i + 1, :], axis=-1, keepdims=True)
                     + b3a[:, i:i + 1])                                # (Bm, 1)
        else:
            # Last pass: logdet needs the FULL `a`, computed from THIS h
            # (h1 is deliberately not updated after the last column).
            a_full = jnp.dot(h, w3aT, preferred_element_type=jnp.float32) + b3a
            a_col = a_full[:, i:i + 1]

        # Column-i update with a single transcendental:
        #   (x - m*(1 - e^a)) * e^{-a}  ==  (x - m) * e^{-a} + m
        x_col = x[:, i:i + 1]
        u_col = (x_col - m_col) * jnp.exp(-a_col) + m_col              # (Bm, 1)

        # Finalized column goes straight to the output ref (store slot is idle).
        u_ref[:, i:i + 1] = u_col

        # Exact rank-1 update of the joiner pre-activation (u[:, i] was 0).
        if i + 1 < D:
            h1 = h1 + u_col * w1[i:i + 1, :]

    # logdet uses the LAST pass's `a` (matches the PyTorch reference; relies on
    # the MADE masks being pre-applied in the wrapper).
    logdet_ref[...] = -jnp.sum(a_full, axis=-1, keepdims=True)


# --------------------------------- wrapper -----------------------------------
def made_iaf_direct(x, w1_t, b1, w2_t, b2, w3m_rows, w3a_rows, w3a_t, b3m, b3a,
                    *, block_b=128):
    """x: (B, D) f32; weights already masked, in kernel layouts (see driver)."""
    B, D = x.shape
    H = w2_t.shape[0]
    assert D >= 1
    block_b = min(block_b, B)
    assert B % block_b == 0, "batch must be a multiple of the batch tile"
    grid = (B // block_b,)

    const = lambda i: (0, 0)   # weights/biases: constant block -> stay resident
    return pl.pallas_call(
        made_iaf_direct_kernel,
        out_shape=(jax.ShapeDtypeStruct((B, D), jnp.float32),
                   jax.ShapeDtypeStruct((B, 1), jnp.float32)),
        grid=grid,
        in_specs=[
            pl.BlockSpec((block_b, D), lambda i: (i, 0)),   # x (batch-tiled)
            pl.BlockSpec((D, H), const),                    # w1^T (masked)
            pl.BlockSpec((1, H), const),                    # b1
            pl.BlockSpec((H, H), const),                    # w2^T (masked)
            pl.BlockSpec((1, H), const),                    # b2
            pl.BlockSpec((D, H), const),                    # w3 rows for m
            pl.BlockSpec((D, H), const),                    # w3 rows for a
            pl.BlockSpec((H, D), const),                    # w3_a^T
            pl.BlockSpec((1, D), const),                    # b3[:D]
            pl.BlockSpec((1, D), const),                    # b3[D:]
        ],
        out_specs=(pl.BlockSpec((block_b, D), lambda i: (i, 0)),
                   pl.BlockSpec((block_b, 1), lambda i: (i, 0))),
        compiler_params=pltpu.CompilerParams(
            dimension_semantics=("parallel",)),             # megacore on v7x
    )(x, w1_t, b1, w2_t, b2, w3m_rows, w3a_rows, w3a_t, b3m, b3a)


# ------------------------------ pure-JAX reference ---------------------------
def made_iaf_direct_ref(x, w1_t, b1, w2_t, b2, w3_t, b3):
    """Mirror of the PyTorch direct-mode loop (full masked matmuls, two exps)."""
    B, D = x.shape
    u = jnp.zeros_like(x)
    a = None
    for i in range(D):
        h = jax.nn.relu(u @ w1_t + b1)
        h = jax.nn.relu(h @ w2_t + b2)
        out = h @ w3_t + b3
        m, a = out[:, :D], out[:, D:]
        u = u.at[:, i].set(
            (x[:, i] - m[:, i] * (1.0 - jnp.exp(a[:, i]))) * jnp.exp(-a[:, i]))
    return u, -jnp.sum(a, axis=-1, keepdims=True)


# ---------------------------------- driver -----------------------------------
if __name__ == "__main__":
    B = 256          # >=128 rows per 128-row tile fills the MXU; grid=(2,) so
                     # both v7x TensorCores get a tile (parallel semantics).
    D = 8            # num_inputs
    H = 32           # num_hidden
    # TODO(synk): num_cond_inputs / cond_inputs path and mode='inverse' not
    # implemented (PyTorch defaults: cond_inputs=None, mode='direct').

    key = jax.random.PRNGKey(0)
    kx, k1w, k1b, k2w, k2b, k3w, k3b = jax.random.split(key, 7)

    # MADE masks (shape (out_features, in_features), same as nn.Linear.weight)
    input_mask = jnp.asarray(get_mask(D, H, D, mask_type='input'))
    hidden_mask = jnp.asarray(get_mask(H, H, D))
    output_mask = jnp.asarray(get_mask(H, 2 * D, D, mask_type='output'))

    # nn.Linear-style deterministic init: U(-1/sqrt(fan_in), 1/sqrt(fan_in))
    def lin_init(kw, kb, out_f, in_f):
        bound = 1.0 / np.sqrt(in_f)
        w = jax.random.uniform(kw, (out_f, in_f), jnp.float32, -bound, bound)
        b = jax.random.uniform(kb, (out_f,), jnp.float32, -bound, bound)
        return w, b

    w1, b1 = lin_init(k1w, k1b, H, D)
    w2, b2 = lin_init(k2w, k2b, H, H)
    w3, b3 = lin_init(k3w, k3b, 2 * D, H)

    # Pre-apply MADE masks; present weights in the layouts the kernel consumes.
    w1_t = (w1 * input_mask).T           # (D, H)
    w2_t = (w2 * hidden_mask).T          # (H, H)
    w3_masked = w3 * output_mask         # (2D, H) torch (out, in) layout
    w3m_rows = w3_masked[:D, :]          # (D, H)  row i = output column i of m
    w3a_rows = w3_masked[D:, :]          # (D, H)  row i = output column i of a
    w3a_t = w3a_rows.T                   # (H, D)  for the final full `a`
    b1_r = b1.reshape(1, H)
    b2_r = b2.reshape(1, H)
    b3m_r = b3[:D].reshape(1, D)
    b3a_r = b3[D:].reshape(1, D)

    x = jax.random.normal(kx, (B, D), jnp.float32)

    u, logdet = made_iaf_direct(x, w1_t, b1_r, w2_t, b2_r,
                                w3m_rows, w3a_rows, w3a_t, b3m_r, b3a_r,
                                block_b=128)
    jax.block_until_ready((u, logdet))

    # Reference check (full masked matmuls, original two-exp formula).
    w3_t_full = w3_masked.T              # (H, 2D)
    b3_r_full = b3.reshape(1, 2 * D)
    u_ref, logdet_ref = made_iaf_direct_ref(x, w1_t, b1_r, w2_t, b2_r,
                                            w3_t_full, b3_r_full)
    np.testing.assert_allclose(np.asarray(u), np.asarray(u_ref),
                               rtol=1e-4, atol=1e-4)
    np.testing.assert_allclose(np.asarray(logdet), np.asarray(logdet_ref),
                               rtol=1e-4, atol=1e-4)

    print("KERNEL_OK")
</pallas_src>

<mosaic_0001>
module attributes {stable_mosaic.version = 11 : i64} {
  func.func @made_iaf_direct_kernel(%arg0: i32, %arg1: memref<128x8xf32, #tpu.memory_space<vmem>>, %arg2: memref<8x32xf32, #tpu.memory_space<vmem>>, %arg3: memref<1x32xf32, #tpu.memory_space<vmem>>, %arg4: memref<32x32xf32, #tpu.memory_space<vmem>>, %arg5: memref<1x32xf32, #tpu.memory_space<vmem>>, %arg6: memref<8x32xf32, #tpu.memory_space<vmem>>, %arg7: memref<8x32xf32, #tpu.memory_space<vmem>>, %arg8: memref<32x8xf32, #tpu.memory_space<vmem>>, %arg9: memref<1x8xf32, #tpu.memory_space<vmem>>, %arg10: memref<1x8xf32, #tpu.memory_space<vmem>>, %arg11: memref<128x8xf32, #tpu.memory_space<vmem>>, %arg12: memref<128x1xf32, #tpu.memory_space<vmem>>) attributes {dimension_semantics = [#tpu.dimension_semantics<parallel>], iteration_bounds = array<i64: 2>, scalar_prefetch = 0 : i64, scratch_operands = 0 : i64, tpu.core_type = #tpu.core_type<tc>, window_params = [{transform_indices = @transform_0, window_bounds = array<i64: 128, 8>}, {pipeline_mode = #tpu.pipeline_mode<synchronous>, transform_indices = @transform_1, window_bounds = array<i64: 8, 32>}, {pipeline_mode = #tpu.pipeline_mode<synchronous>, transform_indices = @transform_2, window_bounds = array<i64: 1, 32>}, {pipeline_mode = #tpu.pipeline_mode<synchronous>, transform_indices = @transform_3, window_bounds = array<i64: 32, 32>}, {pipeline_mode = #tpu.pipeline_mode<synchronous>, transform_indices = @transform_4, window_bounds = array<i64: 1, 32>}, {pipeline_mode = #tpu.pipeline_mode<synchronous>, transform_indices = @transform_5, window_bounds = array<i64: 8, 32>}, {pipeline_mode = #tpu.pipeline_mode<synchronous>, transform_indices = @transform_6, window_bounds = array<i64: 8, 32>}, {pipeline_mode = #tpu.pipeline_mode<synchronous>, transform_indices = @transform_7, window_bounds = array<i64: 32, 8>}, {pipeline_mode = #tpu.pipeline_mode<synchronous>, transform_indices = @transform_8, window_bounds = array<i64: 1, 8>}, {pipeline_mode = #tpu.pipeline_mode<synchronous>, transform_indices = @transform_9, window_bounds = array<i64: 1, 8>}, {transform_indices = @transform_10, window_bounds = array<i64: 128, 8>}, {transform_indices = @transform_11, window_bounds = array<i64: 128, 1>}]} {
    %c0 = arith.constant 0 : index
    %c0_0 = arith.constant 0 : index
    %0 = vector.load %arg1[%c0, %c0_0] : memref<128x8xf32, #tpu.memory_space<vmem>>, vector<128x8xf32>
    %c0_1 = arith.constant 0 : index
    %c0_2 = arith.constant 0 : index
    %1 = vector.load %arg2[%c0_1, %c0_2] : memref<8x32xf32, #tpu.memory_space<vmem>>, vector<8x32xf32>
    %c0_3 = arith.constant 0 : index
    %c0_4 = arith.constant 0 : index
    %2 = vector.load %arg4[%c0_3, %c0_4] : memref<32x32xf32, #tpu.memory_space<vmem>>, vector<32x32xf32>
    %c0_5 = arith.constant 0 : index
    %c0_6 = arith.constant 0 : index
    %3 = vector.load %arg6[%c0_5, %c0_6] : memref<8x32xf32, #tpu.memory_space<vmem>>, vector<8x32xf32>
    %c0_7 = arith.constant 0 : index
    %c0_8 = arith.constant 0 : index
    %4 = vector.load %arg7[%c0_7, %c0_8] : memref<8x32xf32, #tpu.memory_space<vmem>>, vector<8x32xf32>
    %c0_9 = arith.constant 0 : index
    %c0_10 = arith.constant 0 : index
    %5 = vector.load %arg8[%c0_9, %c0_10] : memref<32x8xf32, #tpu.memory_space<vmem>>, vector<32x8xf32>
    %c0_11 = arith.constant 0 : index
    %c0_12 = arith.constant 0 : index
    %6 = vector.load %arg5[%c0_11, %c0_12] : memref<1x32xf32, #tpu.memory_space<vmem>>, vector<1x32xf32>
    %7 = vector.shape_cast %6 : vector<1x32xf32> to vector<1x32xf32>
    %8 = vector.broadcast %7 : vector<1x32xf32> to vector<128x32xf32>
    %c0_13 = arith.constant 0 : index
    %c0_14 = arith.constant 0 : index
    %9 = vector.load %arg9[%c0_13, %c0_14] : memref<1x8xf32, #tpu.memory_space<vmem>>, vector<1x8xf32>
    %10 = vector.shape_cast %9 : vector<1x8xf32> to vector<1x8xf32>
    %11 = vector.broadcast %10 : vector<1x8xf32> to vector<128x8xf32>
    %c0_15 = arith.constant 0 : index
    %c0_16 = arith.constant 0 : index
    %12 = vector.load %arg10[%c0_15, %c0_16] : memref<1x8xf32, #tpu.memory_space<vmem>>, vector<1x8xf32>
    %13 = vector.shape_cast %12 : vector<1x8xf32> to vector<1x8xf32>
    %14 = vector.broadcast %13 : vector<1x8xf32> to vector<128x8xf32>
    %c0_17 = arith.constant 0 : index
    %c0_18 = arith.constant 0 : index
    %15 = vector.load %arg3[%c0_17, %c0_18] : memref<1x32xf32, #tpu.memory_space<vmem>>, vector<1x32xf32>
    %16 = vector.shape_cast %15 : vector<1x32xf32> to vector<1x32xf32>
    %17 = vector.broadcast %16 : vector<1x32xf32> to vector<128x32xf32>
    %cst = arith.constant 0.000000e+00 : f32
    %18 = vector.broadcast %cst : f32 to vector<128x32xf32>
    %19 = arith.maximumf %17, %18 : vector<128x32xf32>
    %cst_19 = arith.constant dense<0.000000e+00> : vector<128x32xf32>
    %20 = tpu.matmul %19, %2, %cst_19 {dimension_numbers = #tpu.dot_dimension_numbers<[1], [0], [0], [1], [0, 0, 1, 1], [], []>} : vector<128x32xf32>, vector<32x32xf32>, vector<128x32xf32> -> vector<128x32xf32>
    %21 = arith.addf %20, %8 : vector<128x32xf32>
    %cst_20 = arith.constant 0.000000e+00 : f32
    %22 = vector.broadcast %cst_20 : f32 to vector<128x32xf32>
    %23 = arith.maximumf %21, %22 : vector<128x32xf32>
    %24 = vector.extract_strided_slice %3 {offsets = [0, 0], sizes = [1, 32], strides = [1, 1]} : vector<8x32xf32> to vector<1x32xf32>
    %25 = vector.broadcast %24 : vector<1x32xf32> to vector<128x32xf32>
    %26 = arith.mulf %23, %25 : vector<128x32xf32>
    %cst_21 = arith.constant dense<0.000000e+00> : vector<128xf32>
    %27 = vector.multi_reduction <add>, %26, %cst_21 [1] : vector<128x32xf32> to vector<128xf32>
    %28 = vector.shape_cast %27 : vector<128xf32> to vector<128x1xf32>
    %29 = vector.extract_strided_slice %11 {offsets = [0, 0], sizes = [128, 1], strides = [1, 1]} : vector<128x8xf32> to vector<128x1xf32>
    %30 = arith.addf %28, %29 : vector<128x1xf32>
    %31 = vector.extract_strided_slice %4 {offsets = [0, 0], sizes = [1, 32], strides = [1, 1]} : vector<8x32xf32> to vector<1x32xf32>
    %32 = vector.broadcast %31 : vector<1x32xf32> to vector<128x32xf32>
    %33 = arith.mulf %23, %32 : vector<128x32xf32>
    %cst_22 = arith.constant dense<0.000000e+00> : vector<128xf32>
    %34 = vector.multi_reduction <add>, %33, %cst_22 [1] : vector<128x32xf32> to vector<128xf32>
    %35 = vector.shape_cast %34 : vector<128xf32> to vector<128x1xf32>
    %36 = vector.extract_strided_slice %14 {offsets = [0, 0], sizes = [128, 1], strides = [1, 1]} : vector<128x8xf32> to vector<128x1xf32>
    %37 = arith.addf %35, %36 : vector<128x1xf32>
    %38 = vector.extract_strided_slice %0 {offsets = [0, 0], sizes = [128, 1], strides = [1, 1]} : vector<128x8xf32> to vector<128x1xf32>
    %39 = arith.subf %38, %30 : vector<128x1xf32>
    %cst_23 = arith.constant 0.000000e+00 : f32
    %40 = vector.broadcast %cst_23 : f32 to vector<128x1xf32>
    %41 = arith.subf %40, %37 : vector<128x1xf32>
    %42 = math.exp %41 : vector<128x1xf32>
    %43 = arith.mulf %39, %42 : vector<128x1xf32>
    %44 = arith.addf %43, %30 : vector<128x1xf32>
    %c0_24 = arith.constant 0 : index
    %c0_25 = arith.constant 0 : index
    %45 = vector.load %arg11[%c0_24, %c0_25] : memref<128x8xf32, #tpu.memory_space<vmem>>, vector<128x1xf32>
    tpu.vector_store %arg11[%c0_24, %c0_25], %44 {strides = array<i32>} : memref<128x8xf32, #tpu.memory_space<vmem>>, vector<128x1xf32>,
    %46 = vector.extract_strided_slice %1 {offsets = [0, 0], sizes = [1, 32], strides = [1, 1]} : vector<8x32xf32> to vector<1x32xf32>
    %47 = vector.broadcast %44 : vector<128x1xf32> to vector<128x32xf32>
    %48 = vector.broadcast %46 : vector<1x32xf32> to vector<128x32xf32>
    %49 = arith.mulf %47, %48 : vector<128x32xf32>
    %50 = arith.addf %17, %49 : vector<128x32xf32>
    %cst_26 = arith.constant 0.000000e+00 : f32
    %51 = vector.broadcast %cst_26 : f32 to vector<128x32xf32>
    %52 = arith.maximumf %50, %51 : vector<128x32xf32>
    %cst_27 = arith.constant dense<0.000000e+00> : vector<128x32xf32>
    %53 = tpu.matmul %52, %2, %cst_27 {dimension_numbers = #tpu.dot_dimension_numbers<[1], [0], [0], [1], [0, 0, 1, 1], [], []>} : vector<128x32xf32>, vector<32x32xf32>, vector<128x32xf32> -> vector<128x32xf32>
    %54 = arith.addf %53, %8 : vector<128x32xf32>
    %cst_28 = arith.constant 0.000000e+00 : f32
    %55 = vector.broadcast %cst_28 : f32 to vector<128x32xf32>
    %56 = arith.maximumf %54, %55 : vector<128x32xf32>
    %57 = vector.extract_strided_slice %3 {offsets = [1, 0], sizes = [1, 32], strides = [1, 1]} : vector<8x32xf32> to vector<1x32xf32>
    %58 = vector.broadcast %57 : vector<1x32xf32> to vector<128x32xf32>
    %59 = arith.mulf %56, %58 : vector<128x32xf32>
    %cst_29 = arith.constant dense<0.000000e+00> : vector<128xf32>
    %60 = vector.multi_reduction <add>, %59, %cst_29 [1] : vector<128x32xf32> to vector<128xf32>
    %61 = vector.shape_cast %60 : vector<128xf32> to vector<128x1xf32>
    %62 = vector.extract_strided_slice %11 {offsets = [0, 1], sizes = [128, 1], strides = [1, 1]} : vector<128x8xf32> to vector<128x1xf32>
    %63 = arith.addf %61, %62 : vector<128x1xf32>
    %64 = vector.extract_strided_slice %4 {offsets = [1, 0], sizes = [1, 32], strides = [1, 1]} : vector<8x32xf32> to vector<1x32xf32>
    %65 = vector.broadcast %64 : vector<1x32xf32> to vector<128x32xf32>
    %66 = arith.mulf %56, %65 : vector<128x32xf32>
    %cst_30 = arith.constant dense<0.000000e+00> : vector<128xf32>
    %67 = vector.multi_reduction <add>, %66, %cst_30 [1] : vector<128x32xf32> to vector<128xf32>
    %68 = vector.shape_cast %67 : vector<128xf32> to vector<128x1xf32>
    %69 = vector.extract_strided_slice %14 {offsets = [0, 1], sizes = [128, 1], strides = [1, 1]} : vector<128x8xf32> to vector<128x1xf32>
    %70 = arith.addf %68, %69 : vector<128x1xf32>
    %71 = vector.extract_strided_slice %0 {offsets = [0, 1], sizes = [128, 1], strides = [1, 1]} : vector<128x8xf32> to vector<128x1xf32>
    %72 = arith.subf %71, %63 : vector<128x1xf32>
    %cst_31 = arith.constant 0.000000e+00 : f32
    %73 = vector.broadcast %cst_31 : f32 to vector<128x1xf32>
    %74 = arith.subf %73, %70 : vector<128x1xf32>
    %75 = math.exp %74 : vector<128x1xf32>
    %76 = arith.mulf %72, %75 : vector<128x1xf32>
    %77 = arith.addf %76, %63 : vector<128x1xf32>
    %c0_32 = arith.constant 0 : index
    %c1 = arith.constant 1 : index
    %78 = vector.load %arg11[%c0_32, %c1] : memref<128x8xf32, #tpu.memory_space<vmem>>, vector<128x1xf32>
    tpu.vector_store %arg11[%c0_32, %c1], %77 {strides = array<i32>} : memref<128x8xf32, #tpu.memory_space<vmem>>, vector<128x1xf32>,
    %79 = vector.extract_strided_slice %1 {offsets = [1, 0], sizes = [1, 32], strides = [1, 1]} : vector<8x32xf32> to vector<1x32xf32>
    %80 = vector.broadcast %77 : vector<128x1xf32> to vector<128x32xf32>
    %81 = vector.broadcast %79 : vector<1x32xf32> to vector<128x32xf32>
    %82 = arith.mulf %80, %81 : vector<128x32xf32>
    %83 = arith.addf %50, %82 : vector<128x32xf32>
    %cst_33 = arith.constant 0.000000e+00 : f32
    %84 = vector.broadcast %cst_33 : f32 to vector<128x32xf32>
    %85 = arith.maximumf %83, %84 : vector<128x32xf32>
    %cst_34 = arith.constant dense<0.000000e+00> : vector<128x32xf32>
    %86 = tpu.matmul %85, %2, %cst_34 {dimension_numbers = #tpu.dot_dimension_numbers<[1], [0], [0], [1], [0, 0, 1, 1], [], []>} : vector<128x32xf32>, vector<32x32xf32>, vector<128x32xf32> -> vector<128x32xf32>
    %87 = arith.addf %86, %8 : vector<128x32xf32>
    %cst_35 = arith.constant 0.000000e+00 : f32
    %88 = vector.broadcast %cst_35 : f32 to vector<128x32xf32>
    %89 = arith.maximumf %87, %88 : vector<128x32xf32>
    %90 = vector.extract_strided_slice %3 {offsets = [2, 0], sizes = [1, 32], strides = [1, 1]} : vector<8x32xf32> to vector<1x32xf32>
    %91 = vector.broadcast %90 : vector<1x32xf32> to vector<128x32xf32>
    %92 = arith.mulf %89, %91 : vector<128x32xf32>
    %cst_36 = arith.constant dense<0.000000e+00> : vector<128xf32>
    %93 = vector.multi_reduction <add>, %92, %cst_36 [1] : vector<128x32xf32> to vector<128xf32>
    %94 = vector.shape_cast %93 : vector<128xf32> to vector<128x1xf32>
    %95 = vector.extract_strided_slice %11 {offsets = [0, 2], sizes = [128, 1], strides = [1, 1]} : vector<128x8xf32> to vector<128x1xf32>
    %96 = arith.addf %94, %95 : vector<128x1xf32>
    %97 = vector.extract_strided_slice %4 {offsets = [2, 0], sizes = [1, 32], strides = [1, 1]} : vector<8x32xf32> to vector<1x32xf32>
    %98 = vector.broadcast %97 : vector<1x32xf32> to vector<128x32xf32>
    %99 = arith.mulf %89, %98 : vector<128x32xf32>
    %cst_37 = arith.constant dense<0.000000e+00> : vector<128xf32>
    %100 = vector.multi_reduction <add>, %99, %cst_37 [1] : vector<128x32xf32> to vector<128xf32>
    %101 = vector.shape_cast %100 : vector<128xf32> to vector<128x1xf32>
    %102 = vector.extract_strided_slice %14 {offsets = [0, 2], sizes = [128, 1], strides = [1, 1]} : vector<128x8xf32> to vector<128x1xf32>
    %103 = arith.addf %101, %102 : vector<128x1xf32>
    %104 = vector.extract_strided_slice %0 {offsets = [0, 2], sizes = [128, 1], strides = [1, 1]} : vector<128x8xf32> to vector<128x1xf32>
    %105 = arith.subf %104, %96 : vector<128x1xf32>
    %cst_38 = arith.constant 0.000000e+00 : f32
    %106 = vector.broadcast %cst_38 : f32 to vector<128x1xf32>
    %107 = arith.subf %106, %103 : vector<128x1xf32>
    %108 = math.exp %107 : vector<128x1xf32>
    %109 = arith.mulf %105, %108 : vector<128x1xf32>
    %110 = arith.addf %109, %96 : vector<128x1xf32>
    %c0_39 = arith.constant 0 : index
    %c2 = arith.constant 2 : index
    %111 = vector.load %arg11[%c0_39, %c2] : memref<128x8xf32, #tpu.memory_space<vmem>>, vector<128x1xf32>
    tpu.vector_store %arg11[%c0_39, %c2], %110 {strides = array<i32>} : memref<128x8xf32, #tpu.memory_space<vmem>>, vector<128x1xf32>,
    %112 = vector.extract_strided_slice %1 {offsets = [2, 0], sizes = [1, 32], strides = [1, 1]} : vector<8x32xf32> to vector<1x32xf32>
    %113 = vector.broadcast %110 : vector<128x1xf32> to vector<128x32xf32>
    %114 = vector.broadcast %112 : vector<1x32xf32> to vector<128x32xf32>
    %115 = arith.mulf %113, %114 : vector<128x32xf32>
    %116 = arith.addf %83, %115 : vector<128x32xf32>
    %cst_40 = arith.constant 0.000000e+00 : f32
    %117 = vector.broadcast %cst_40 : f32 to vector<128x32xf32>
    %118 = arith.maximumf %116, %117 : vector<128x32xf32>
    %cst_41 = arith.constant dense<0.000000e+00> : vector<128x32xf32>
    %119 = tpu.matmul %118, %2, %cst_41 {dimension_numbers = #tpu.dot_dimension_numbers<[1], [0], [0], [1], [0, 0, 1, 1], [], []>} : vector<128x32xf32>, vector<32x32xf32>, vector<128x32xf32> -> vector<128x32xf32>
    %120 = arith.addf %119, %8 : vector<128x32xf32>
    %cst_42 = arith.constant 0.000000e+00 : f32
    %121 = vector.broadcast %cst_42 : f32 to vector<128x32xf32>
    %122 = arith.maximumf %120, %121 : vector<128x32xf32>
    %123 = vector.extract_strided_slice %3 {offsets = [3, 0], sizes = [1, 32], strides = [1, 1]} : vector<8x32xf32> to vector<1x32xf32>
    %124 = vector.broadcast %123 : vector<1x32xf32> to vector<128x32xf32>
    %125 = arith.mulf %122, %124 : vector<128x32xf32>
    %cst_43 = arith.constant dense<0.000000e+00> : vector<128xf32>
    %126 = vector.multi_reduction <add>, %125, %cst_43 [1] : vector<128x32xf32> to vector<128xf32>
    %127 = vector.shape_cast %126 : vector<128xf32> to vector<128x1xf32>
    %128 = vector.extract_strided_slice %11 {offsets = [0, 3], sizes = [128, 1], strides = [1, 1]} : vector<128x8xf32> to vector<128x1xf32>
    %129 = arith.addf %127, %128 : vector<128x1xf32>
    %130 = vector.extract_strided_slice %4 {offsets = [3, 0], sizes = [1, 32], strides = [1, 1]} : vector<8x32xf32> to vector<1x32xf32>
    %131 = vector.broadcast %130 : vector<1x32xf32> to vector<128x32xf32>
    %132 = arith.mulf %122, %131 : vector<128x32xf32>
    %cst_44 = arith.constant dense<0.000000e+00> : vector<128xf32>
    %133 = vector.multi_reduction <add>, %132, %cst_44 [1] : vector<128x32xf32> to vector<128xf32>
    %134 = vector.shape_cast %133 : vector<128xf32> to vector<128x1xf32>
    %135 = vector.extract_strided_slice %14 {offsets = [0, 3], sizes = [128, 1], strides = [1, 1]} : vector<128x8xf32> to vector<128x1xf32>
    %136 = arith.addf %134, %135 : vector<128x1xf32>
    %137 = vector.extract_strided_slice %0 {offsets = [0, 3], sizes = [128, 1], strides = [1, 1]} : vector<128x8xf32> to vector<128x1xf32>
    %138 = arith.subf %137, %129 : vector<128x1xf32>
    %cst_45 = arith.constant 0.000000e+00 : f32
    %139 = vector.broadcast %cst_45 : f32 to vector<128x1xf32>
    %140 = arith.subf %139, %136 : vector<128x1xf32>
    %141 = math.exp %140 : vector<128x1xf32>
    %142 = arith.mulf %138, %141 : vector<128x1xf32>
    %143 = arith.addf %142, %129 : vector<128x1xf32>
    %c0_46 = arith.constant 0 : index
    %c3 = arith.constant 3 : index
    %144 = vector.load %arg11[%c0_46, %c3] : memref<128x8xf32, #tpu.memory_space<vmem>>, vector<128x1xf32>
    tpu.vector_store %arg11[%c0_46, %c3], %143 {strides = array<i32>} : memref<128x8xf32, #tpu.memory_space<vmem>>, vector<128x1xf32>,
    %145 = vector.extract_strided_slice %1 {offsets = [3, 0], sizes = [1, 32], strides = [1, 1]} : vector<8x32xf32> to vector<1x32xf32>
    %146 = vector.broadcast %143 : vector<128x1xf32> to vector<128x32xf32>
    %147 = vector.broadcast %145 : vector<1x32xf32> to vector<128x32xf32>
    %148 = arith.mulf %146, %147 : vector<128x32xf32>
    %149 = arith.addf %116, %148 : vector<128x32xf32>
    %cst_47 = arith.constant 0.000000e+00 : f32
    %150 = vector.broadcast %cst_47 : f32 to vector<128x32xf32>
    %151 = arith.maximumf %149, %150 : vector<128x32xf32>
    %cst_48 = arith.constant dense<0.000000e+00> : vector<128x32xf32>
    %152 = tpu.matmul %151, %2, %cst_48 {dimension_numbers = #tpu.dot_dimension_numbers<[1], [0], [0], [1], [0, 0, 1, 1], [], []>} : vector<128x32xf32>, vector<32x32xf32>, vector<128x32xf32> -> vector<128x32xf32>
    %153 = arith.addf %152, %8 : vector<128x32xf32>
    %cst_49 = arith.constant 0.000000e+00 : f32
    %154 = vector.broadcast %cst_49 : f32 to vector<128x32xf32>
    %155 = arith.maximumf %153, %154 : vector<128x32xf32>
    %156 = vector.extract_strided_slice %3 {offsets = [4, 0], sizes = [1, 32], strides = [1, 1]} : vector<8x32xf32> to vector<1x32xf32>
    %157 = vector.broadcast %156 : vector<1x32xf32> to vector<128x32xf32>
    %158 = arith.mulf %155, %157 : vector<128x32xf32>
    %cst_50 = arith.constant dense<0.000000e+00> : vector<128xf32>
    %159 = vector.multi_reduction <add>, %158, %cst_50 [1] : vector<128x32xf32> to vector<128xf32>
    %160 = vector.shape_cast %159 : vector<128xf32> to vector<128x1xf32>
    %161 = vector.extract_strided_slice %11 {offsets = [0, 4], sizes = [128, 1], strides = [1, 1]} : vector<128x8xf32> to vector<128x1xf32>
    %162 = arith.addf %160, %161 : vector<128x1xf32>
    %163 = vector.extract_strided_slice %4 {offsets = [4, 0], sizes = [1, 32], strides = [1, 1]} : vector<8x32xf32> to vector<1x32xf32>
    %164 = vector.broadcast %163 : vector<1x32xf32> to vector<128x32xf32>
    %165 = arith.mulf %155, %164 : vector<128x32xf32>
    %cst_51 = arith.constant dense<0.000000e+00> : vector<128xf32>
    %166 = vector.multi_reduction <add>, %165, %cst_51 [1] : vector<128x32xf32> to vector<128xf32>
    %167 = vector.shape_cast %166 : vector<128xf32> to vector<128x1xf32>
    %168 = vector.extract_strided_slice %14 {offsets = [0, 4], sizes = [128, 1], strides = [1, 1]} : vector<128x8xf32> to vector<128x1xf32>
    %169 = arith.addf %167, %168 : vector<128x1xf32>
    %170 = vector.extract_strided_slice %0 {offsets = [0, 4], sizes = [128, 1], strides = [1, 1]} : vector<128x8xf32> to vector<128x1xf32>
    %171 = arith.subf %170, %162 : vector<128x1xf32>
    %cst_52 = arith.constant 0.000000e+00 : f32
    %172 = vector.broadcast %cst_52 : f32 to vector<128x1xf32>
    %173 = arith.subf %172, %169 : vector<128x1xf32>
    %174 = math.exp %173 : vector<128x1xf32>
    %175 = arith.mulf %171, %174 : vector<128x1xf32>
    %176 = arith.addf %175, %162 : vector<128x1xf32>
    %c0_53 = arith.constant 0 : index
    %c4 = arith.constant 4 : index
    %177 = vector.load %arg11[%c0_53, %c4] : memref<128x8xf32, #tpu.memory_space<vmem>>, vector<128x1xf32>
    tpu.vector_store %arg11[%c0_53, %c4], %176 {strides = array<i32>} : memref<128x8xf32, #tpu.memory_space<vmem>>, vector<128x1xf32>,
    %178 = vector.extract_strided_slice %1 {offsets = [4, 0], sizes = [1, 32], strides = [1, 1]} : vector<8x32xf32> to vector<1x32xf32>
    %179 = vector.broadcast %176 : vector<128x1xf32> to vector<128x32xf32>
    %180 = vector.broadcast %178 : vector<1x32xf32> to vector<128x32xf32>
    %181 = arith.mulf %179, %180 : vector<128x32xf32>
    %182 = arith.addf %149, %181 : vector<128x32xf32>
    %cst_54 = arith.constant 0.000000e+00 : f32
    %183 = vector.broadcast %cst_54 : f32 to vector<128x32xf32>
    %184 = arith.maximumf %182, %183 : vector<128x32xf32>
    %cst_55 = arith.constant dense<0.000000e+00> : vector<128x32xf32>
    %185 = tpu.matmul %184, %2, %cst_55 {dimension_numbers = #tpu.dot_dimension_numbers<[1], [0], [0], [1], [0, 0, 1, 1], [], []>} : vector<128x32xf32>, vector<32x32xf32>, vector<128x32xf32> -> vector<128x32xf32>
    %186 = arith.addf %185, %8 : vector<128x32xf32>
    %cst_56 = arith.constant 0.000000e+00 : f32
    %187 = vector.broadcast %cst_56 : f32 to vector<128x32xf32>
    %188 = arith.maximumf %186, %187 : vector<128x32xf32>
    %189 = vector.extract_strided_slice %3 {offsets = [5, 0], sizes = [1, 32], strides = [1, 1]} : vector<8x32xf32> to vector<1x32xf32>
    %190 = vector.broadcast %189 : vector<1x32xf32> to vector<128x32xf32>
    %191 = arith.mulf %188, %190 : vector<128x32xf32>
    %cst_57 = arith.constant dense<0.000000e+00> : vector<128xf32>
    %192 = vector.multi_reduction <add>, %191, %cst_57 [1] : vector<128x32xf32> to vector<128xf32>
    %193 = vector.shape_cast %192 : vector<128xf32> to vector<128x1xf32>
    %194 = vector.extract_strided_slice %11 {offsets = [0, 5], sizes = [128, 1], strides = [1, 1]} : vector<128x8xf32> to vector<128x1xf32>
    %195 = arith.addf %193, %194 : vector<128x1xf32>
    %196 = vector.extract_strided_slice %4 {offsets = [5, 0], sizes = [1, 32], strides = [1, 1]} : vector<8x32xf32> to vector<1x32xf32>
    %197 = vector.broadcast %196 : vector<1x32xf32> to vector<128x32xf32>
    %198 = arith.mulf %188, %197 : vector<128x32xf32>
    %cst_58 = arith.constant dense<0.000000e+00> : vector<128xf32>
    %199 = vector.multi_reduction <add>, %198, %cst_58 [1] : vector<128x32xf32> to vector<128xf32>
    %200 = vector.shape_cast %199 : vector<128xf32> to vector<128x1xf32>
    %201 = vector.extract_strided_slice %14 {offsets = [0, 5], sizes = [128, 1], strides = [1, 1]} : vector<128x8xf32> to vector<128x1xf32>
    %202 = arith.addf %200, %201 : vector<128x1xf32>
    %203 = vector.extract_strided_slice %0 {offsets = [0, 5], sizes = [128, 1], strides = [1, 1]} : vector<128x8xf32> to vector<128x1xf32>
    %204 = arith.subf %203, %195 : vector<128x1xf32>
    %cst_59 = arith.constant 0.000000e+00 : f32
    %205 = vector.broadcast %cst_59 : f32 to vector<128x1xf32>
    %206 = arith.subf %205, %202 : vector<128x1xf32>
    %207 = math.exp %206 : vector<128x1xf32>
    %208 = arith.mulf %204, %207 : vector<128x1xf32>
    %209 = arith.addf %208, %195 : vector<128x1xf32>
    %c0_60 = arith.constant 0 : index
    %c5 = arith.constant 5 : index
    %210 = vector.load %arg11[%c0_60, %c5] : memref<128x8xf32, #tpu.memory_space<vmem>>, vector<128x1xf32>
    tpu.vector_store %arg11[%c0_60, %c5], %209 {strides = array<i32>} : memref<128x8xf32, #tpu.memory_space<vmem>>, vector<128x1xf32>,
    %211 = vector.extract_strided_slice %1 {offsets = [5, 0], sizes = [1, 32], strides = [1, 1]} : vector<8x32xf32> to vector<1x32xf32>
    %212 = vector.broadcast %209 : vector<128x1xf32> to vector<128x32xf32>
    %213 = vector.broadcast %211 : vector<1x32xf32> to vector<128x32xf32>
    %214 = arith.mulf %212, %213 : vector<128x32xf32>
    %215 = arith.addf %182, %214 : vector<128x32xf32>
    %cst_61 = arith.constant 0.000000e+00 : f32
    %216 = vector.broadcast %cst_61 : f32 to vector<128x32xf32>
    %217 = arith.maximumf %215, %216 : vector<128x32xf32>
    %cst_62 = arith.constant dense<0.000000e+00> : vector<128x32xf32>
    %218 = tpu.matmul %217, %2, %cst_62 {dimension_numbers = #tpu.dot_dimension_numbers<[1], [0], [0], [1], [0, 0, 1, 1], [], []>} : vector<128x32xf32>, vector<32x32xf32>, vector<128x32xf32> -> vector<128x32xf32>
    %219 = arith.addf %218, %8 : vector<128x32xf32>
    %cst_63 = arith.constant 0.000000e+00 : f32
    %220 = vector.broadcast %cst_63 : f32 to vector<128x32xf32>
    %221 = arith.maximumf %219, %220 : vector<128x32xf32>
    %222 = vector.extract_strided_slice %3 {offsets = [6, 0], sizes = [1, 32], strides = [1, 1]} : vector<8x32xf32> to vector<1x32xf32>
    %223 = vector.broadcast %222 : vector<1x32xf32> to vector<128x32xf32>
    %224 = arith.mulf %221, %223 : vector<128x32xf32>
    %cst_64 = arith.constant dense<0.000000e+00> : vector<128xf32>
    %225 = vector.multi_reduction <add>, %224, %cst_64 [1] : vector<128x32xf32> to vector<128xf32>
    %226 = vector.shape_cast %225 : vector<128xf32> to vector<128x1xf32>
    %227 = vector.extract_strided_slice %11 {offsets = [0, 6], sizes = [128, 1], strides = [1, 1]} : vector<128x8xf32> to vector<128x1xf32>
    %228 = arith.addf %226, %227 : vector<128x1xf32>
    %229 = vector.extract_strided_slice %4 {offsets = [6, 0], sizes = [1, 32], strides = [1, 1]} : vector<8x32xf32> to vector<1x32xf32>
    %230 = vector.broadcast %229 : vector<1x32xf32> to vector<128x32xf32>
    %231 = arith.mulf %221, %230 : vector<128x32xf32>
    %cst_65 = arith.constant dense<0.000000e+00> : vector<128xf32>
    %232 = vector.multi_reduction <add>, %231, %cst_65 [1] : vector<128x32xf32> to vector<128xf32>
    %233 = vector.shape_cast %232 : vector<128xf32> to vector<128x1xf32>
    %234 = vector.extract_strided_slice %14 {offsets = [0, 6], sizes = [128, 1], strides = [1, 1]} : vector<128x8xf32> to vector<128x1xf32>
    %235 = arith.addf %233, %234 : vector<128x1xf32>
    %236 = vector.extract_strided_slice %0 {offsets = [0, 6], sizes = [128, 1], strides = [1, 1]} : vector<128x8xf32> to vector<128x1xf32>
    %237 = arith.subf %236, %228 : vector<128x1xf32>
    %cst_66 = arith.constant 0.000000e+00 : f32
    %238 = vector.broadcast %cst_66 : f32 to vector<128x1xf32>
    %239 = arith.subf %238, %235 : vector<128x1xf32>
    %240 = math.exp %239 : vector<128x1xf32>
    %241 = arith.mulf %237, %240 : vector<128x1xf32>
    %242 = arith.addf %241, %228 : vector<128x1xf32>
    %c0_67 = arith.constant 0 : index
    %c6 = arith.constant 6 : index
    %243 = vector.load %arg11[%c0_67, %c6] : memref<128x8xf32, #tpu.memory_space<vmem>>, vector<128x1xf32>
    tpu.vector_store %arg11[%c0_67, %c6], %242 {strides = array<i32>} : memref<128x8xf32, #tpu.memory_space<vmem>>, vector<128x1xf32>,
    %244 = vector.extract_strided_slice %1 {offsets = [6, 0], sizes = [1, 32], strides = [1, 1]} : vector<8x32xf32> to vector<1x32xf32>
    %245 = vector.broadcast %242 : vector<128x1xf32> to vector<128x32xf32>
    %246 = vector.broadcast %244 : vector<1x32xf32> to vector<128x32xf32>
    %247 = arith.mulf %245, %246 : vector<128x32xf32>
    %248 = arith.addf %215, %247 : vector<128x32xf32>
    %cst_68 = arith.constant 0.000000e+00 : f32
    %249 = vector.broadcast %cst_68 : f32 to vector<128x32xf32>
    %250 = arith.maximumf %248, %249 : vector<128x32xf32>
    %cst_69 = arith.constant dense<0.000000e+00> : vector<128x32xf32>
    %251 = tpu.matmul %250, %2, %cst_69 {dimension_numbers = #tpu.dot_dimension_numbers<[1], [0], [0], [1], [0, 0, 1, 1], [], []>} : vector<128x32xf32>, vector<32x32xf32>, vector<128x32xf32> -> vector<128x32xf32>
    %252 = arith.addf %251, %8 : vector<128x32xf32>
    %cst_70 = arith.constant 0.000000e+00 : f32
    %253 = vector.broadcast %cst_70 : f32 to vector<128x32xf32>
    %254 = arith.maximumf %252, %253 : vector<128x32xf32>
    %255 = vector.extract_strided_slice %3 {offsets = [7, 0], sizes = [1, 32], strides = [1, 1]} : vector<8x32xf32> to vector<1x32xf32>
    %256 = vector.broadcast %255 : vector<1x32xf32> to vector<128x32xf32>
    %257 = arith.mulf %254, %256 : vector<128x32xf32>
    %cst_71 = arith.constant dense<0.000000e+00> : vector<128xf32>
    %258 = vector.multi_reduction <add>, %257, %cst_71 [1] : vector<128x32xf32> to vector<128xf32>
    %259 = vector.shape_cast %258 : vector<128xf32> to vector<128x1xf32>
    %260 = vector.extract_strided_slice %11 {offsets = [0, 7], sizes = [128, 1], strides = [1, 1]} : vector<128x8xf32> to vector<128x1xf32>
    %261 = arith.addf %259, %260 : vector<128x1xf32>
    %cst_72 = arith.constant dense<0.000000e+00> : vector<128x8xf32>
    %262 = tpu.matmul %254, %5, %cst_72 {dimension_numbers = #tpu.dot_dimension_numbers<[1], [0], [0], [1], [0, 0, 1, 1], [], []>} : vector<128x32xf32>, vector<32x8xf32>, vector<128x8xf32> -> vector<128x8xf32>
    %263 = arith.addf %262, %14 : vector<128x8xf32>
    %264 = vector.extract_strided_slice %263 {offsets = [0, 7], sizes = [128, 1], strides = [1, 1]} : vector<128x8xf32> to vector<128x1xf32>
    %265 = vector.extract_strided_slice %0 {offsets = [0, 7], sizes = [128, 1], strides = [1, 1]} : vector<128x8xf32> to vector<128x1xf32>
    %266 = arith.subf %265, %261 : vector<128x1xf32>
    %cst_73 = arith.constant 0.000000e+00 : f32
    %267 = vector.broadcast %cst_73 : f32 to vector<128x1xf32>
    %268 = arith.subf %267, %264 : vector<128x1xf32>
    %269 = math.exp %268 : vector<128x1xf32>
    %270 = arith.mulf %266, %269 : vector<128x1xf32>
    %271 = arith.addf %270, %261 : vector<128x1xf32>
    %c0_74 = arith.constant 0 : index
    %c7 = arith.constant 7 : index
    %272 = vector.load %arg11[%c0_74, %c7] : memref<128x8xf32, #tpu.memory_space<vmem>>, vector<128x1xf32>
    tpu.vector_store %arg11[%c0_74, %c7], %271 {strides = array<i32>} : memref<128x8xf32, #tpu.memory_space<vmem>>, vector<128x1xf32>,
    %cst_75 = arith.constant dense<0.000000e+00> : vector<128xf32>
    %273 = vector.multi_reduction <add>, %263, %cst_75 [1] : vector<128x8xf32> to vector<128xf32>
    %274 = vector.shape_cast %273 : vector<128xf32> to vector<128x1xf32>
    %cst_76 = arith.constant 0.000000e+00 : f32
    %275 = vector.broadcast %cst_76 : f32 to vector<128x1xf32>
    %276 = arith.subf %275, %274 : vector<128x1xf32>
    %c0_77 = arith.constant 0 : index
    %c0_78 = arith.constant 0 : index
    %277 = vector.load %arg12[%c0_77, %c0_78] : memref<128x1xf32, #tpu.memory_space<vmem>>, vector<128x1xf32>
    tpu.vector_store %arg12[%c0_77, %c0_78], %276 {strides = array<i32>} : memref<128x1xf32, #tpu.memory_space<vmem>>, vector<128x1xf32>,
    return
  }
  func.func @transform_0(%arg0: i32) -> (i32, i32) {
    %c0_i32 = arith.constant 0 : i32
    %c0_i32_0 = arith.constant 0 : i32
    return %arg0, %c0_i32 : i32, i32
  }
  func.func @transform_1(%arg0: i32) -> (i32, i32) {
    %c0_i32 = arith.constant 0 : i32
    %c0_i32_0 = arith.constant 0 : i32
    %c0_i32_1 = arith.constant 0 : i32
    return %c0_i32, %c0_i32_0 : i32, i32
  }
  func.func @transform_2(%arg0: i32) -> (i32, i32) {
    %c0_i32 = arith.constant 0 : i32
    %c0_i32_0 = arith.constant 0 : i32
    %c0_i32_1 = arith.constant 0 : i32
    return %c0_i32, %c0_i32_0 : i32, i32
  }
  func.func @transform_3(%arg0: i32) -> (i32, i32) {
    %c0_i32 = arith.constant 0 : i32
    %c0_i32_0 = arith.constant 0 : i32
    %c0_i32_1 = arith.constant 0 : i32
    return %c0_i32, %c0_i32_0 : i32, i32
  }
  func.func @transform_4(%arg0: i32) -> (i32, i32) {
    %c0_i32 = arith.constant 0 : i32
    %c0_i32_0 = arith.constant 0 : i32
    %c0_i32_1 = arith.constant 0 : i32
    return %c0_i32, %c0_i32_0 : i32, i32
  }
  func.func @transform_5(%arg0: i32) -> (i32, i32) {
    %c0_i32 = arith.constant 0 : i32
    %c0_i32_0 = arith.constant 0 : i32
    %c0_i32_1 = arith.constant 0 : i32
    return %c0_i32, %c0_i32_0 : i32, i32
  }
  func.func @transform_6(%arg0: i32) -> (i32, i32) {
    %c0_i32 = arith.constant 0 : i32
    %c0_i32_0 = arith.constant 0 : i32
    %c0_i32_1 = arith.constant 0 : i32
    return %c0_i32, %c0_i32_0 : i32, i32
  }
  func.func @transform_7(%arg0: i32) -> (i32, i32) {
    %c0_i32 = arith.constant 0 : i32
    %c0_i32_0 = arith.constant 0 : i32
    %c0_i32_1 = arith.constant 0 : i32
    return %c0_i32, %c0_i32_0 : i32, i32
  }
  func.func @transform_8(%arg0: i32) -> (i32, i32) {
    %c0_i32 = arith.constant 0 : i32
    %c0_i32_0 = arith.constant 0 : i32
    %c0_i32_1 = arith.constant 0 : i32
    return %c0_i32, %c0_i32_0 : i32, i32
  }
  func.func @transform_9(%arg0: i32) -> (i32, i32) {
    %c0_i32 = arith.constant 0 : i32
    %c0_i32_0 = arith.constant 0 : i32
    %c0_i32_1 = arith.constant 0 : i32
    return %c0_i32, %c0_i32_0 : i32, i32
  }
  func.func @transform_10(%arg0: i32) -> (i32, i32) {
    %c0_i32 = arith.constant 0 : i32
    %c0_i32_0 = arith.constant 0 : i32
    return %arg0, %c0_i32 : i32, i32
  }
  func.func @transform_11(%arg0: i32) -> (i32, i32) {
    %c0_i32 = arith.constant 0 : i32
    %c0_i32_0 = arith.constant 0 : i32
    return %arg0, %c0_i32 : i32, i32
  }
}

</mosaic_0001>

<bundles_post_ra>
// kernel: tpu_custom_call.1
= control target key start
LH: loop header
LB: loop body
LE: loop exit
PB: predicated region body
PF: predicated region fallthrough
CT: control target
= control target key end

     0   :  { %s5359_s17 = smov 0   ;;  %s7932_s0 = inlined_call_operand.vmem [shape: f32[256,8], index: 0, kind: input, shape index: {}]   ;;  %s7933_s1 = inlined_call_operand.vmem [shape: f32[8,32], index: 1, kind: input, shape index: {}]   ;;  %s7934_s2 = inlined_call_operand.vmem [shape: f32[1,32], index: 2, kind: input, shape index: {}]   ;;  %s7935_s3 = inlined_call_operand.vmem [shape: f32[32,32], index: 3, kind: input, shape index: {}]   ;;  %s7936_s4 = inlined_call_operand.vmem [shape: f32[1,32], index: 4, kind: input, shape index: {}]   ;;  %s7937_s5 = inlined_call_operand.vmem [shape: f32[8,32], index: 5, kind: input, shape index: {}]   ;;  %s7938_s6 = inlined_call_operand.vmem [shape: f32[8,32], index: 6, kind: input, shape index: {}]   ;;  %s7939_s7 = inlined_call_operand.vmem [shape: f32[32,8], index: 7, kind: input, shape index: {}]   ;;  %s7940_s8 = inlined_call_operand.vmem [shape: f32[1,8], index: 8, kind: input, shape index: {}]   ;;  %s7941_s9 = inlined_call_operand.vmem [shape: f32[1,8], index: 9, kind: input, shape index: {}]   ;;  %s7942_s10 = inlined_call_operand.vmem [shape: f32[256,8], index: 10, kind: output, shape index: {0}]   ;;  %s7943_s11 = inlined_call_operand.vmem [shape: f32[256,1], index: 11, kind: output, shape index: {1}]  }
   0x1 LB: > { %s4742_s18 = sadd.s32 4294967295, %s5290_s17   ;;  %p4746_p0 = scmp.ge.s32.totalorder %s5290_s17, 1  ;;  %s5290_s17 = sphi %s5359_s17, %s22_s17  }
   0x2   : > { %p341_p1 = scmp.lt.s32.totalorder %s5290_s17, 3 }
   0x4   : > { %p342_p2 = pnand %p4746_p0, %p341_p1 }
   0x5   : > { %s4747_s16 = sshll.u32 (!%p342_p2), %s4742_s18, 4 }
   0x6   : > { %345 = sbr.rel (%p342_p2) target bundleno = 3727 (0xe8f), region = 60  ;;  %p387_p3 = scmp.lt.s32.totalorder (!%p342_p2), %s4747_s16, 31 }
   0xb   : > { %v424_v0 = vld [vmem:[%s7935_s3 + $0x18] sm:$0xff]  ;;  %v423_v1 = vld [vmem:[%s7935_s3 + $0x10] sm:$0xff]  ;;  %v5376_v2 = vld [vmem:[%s7934_s2] ss:$0 sm:$0xff]  ;;  %vm446_vm0 = vcmask 261120   ;;  %s7945_s16 = smov (!%p387_p3, %s4747_s16), 31 }
   0xc   : > { %461 = vmatpush.msra.mxu0 %v424_v0  ;;  %4900 = vmatpush.msra.mxu2 %v424_v0  ;;  %v422_v3 = vld [vmem:[%s7935_s3 + $0x8] sm:$0xff]  ;;  %v421_v4 = vld [vmem:[%s7935_s3] sm:$0xff]  ;;  %v444_v5 = vmax.f32 %v5376_v2, 0.0  ;;  %s5511_s21 = sshll.u32 %s7945_s16, 3  ;;  %vm791_vm1 = vcmask 7168   ;;  %vm1324_vm2 = vcmask 15368  }
   0xd   : > { %4899 = vmatpush.msra.mxu1 %v424_v0  ;;  %4901 = vmatpush.msra.mxu3 %v424_v0  ;;  %v5404_v6 = vld [vmem:[%s7936_s4] ss:$0 sm:$0xff]  ;;  %s5522_s25 = scalar_lea.vmem %s7932_s0, %s5511_s21  ;;  %s5535_s28 = scalar_lea.vmem %s7942_s10, %s5511_s21  ;;  %vm1857_vm3 = vcmask 23568   ;;  %vm2390_vm4 = vcmask 31768   ;;  %vm2923_vm5 = vcmask 39968   ;;  %vm3456_vm6 = vcmask 48168  }
   0xe   : > { %462 = vmatpush.msra.mxu0 %v423_v1  ;;  %4903 = vmatpush.msra.mxu2 %v423_v1  ;;  %v5409_v7 = vld [vmem:[%s7938_s6] sm:$0xff]  ;;  %vm3989_vm7 = vcmask 56368   ;;  %vm4571_vm8 = vcmask 64512   ;;  %vm4554_vm9 = vcmask 64568   ;;  %s7873_s19 = scalar_lea.vmem %s7943_s11, %s5511_s21 }
   0xf   : > { %4902 = vmatpush.msra.mxu1 %v423_v1  ;;  %4904 = vmatpush.msra.mxu3 %v423_v1  ;;  %v5414_v8 = vld [vmem:[%s7937_s5] sm:$0xff]  ;;  %v5418_v11 = vperm.slane %v5409_v7, 0 }
  0x10   : > { %463 = vmatpush.msra.mxu0 %v422_v3  ;;  %4906 = vmatpush.msra.mxu2 %v422_v3  ;;  %v5421_v12 = vperm.slane %v5414_v8, 0 }
  0x11   : > { %4905 = vmatpush.msra.mxu1 %v422_v3  ;;  %4907 = vmatpush.msra.mxu3 %v422_v3 }
  0x12   : > { %464 = vmatpush.msra.mxu0 %v421_v4  ;;  %4909 = vmatpush.msra.mxu2 %v421_v4 }
  0x13   : > { %4753 = vmatmul.msk.f32.vlgmr.msra.gmra.mxu0 %vm446_vm0, %v444_v5  ;;  %4761 = vmatmul.msk.f32.vlgmr.msra.gmra.mxu2 %vm446_vm0, %v444_v5 }
  0x14   : > { %4908 = vmatpush.msra.mxu1 %v421_v4  ;;  %4910 = vmatpush.msra.mxu3 %v421_v4 }
  0x15   : > { %4757 = vmatmul.msk.f32.vlgmr.msra.gmra.mxu1 %vm446_vm0, %v444_v5  ;;  %4765 = vmatmul.msk.f32.vlgmr.msra.gmra.mxu3 %vm446_vm0, %v444_v5 }
  0x16   : > { %997 = vmatpush.msrb.mxu1 %v424_v0  ;;  %1530 = vmatpush.msrb.mxu2 %v424_v0 }
  0x17   : > { %2063 = vmatpush.msrb.mxu3 %v424_v0  ;;  %2596 = vmatpush.msrb.mxu0 %v424_v0 }
  0x18   : > { %998 = vmatpush.msrb.mxu1 %v423_v1  ;;  %1531 = vmatpush.msrb.mxu2 %v423_v1 }
  0x19   : > { %2064 = vmatpush.msrb.mxu3 %v423_v1  ;;  %2597 = vmatpush.msrb.mxu0 %v423_v1 }
  0x1a   : > { %999 = vmatpush.msrb.mxu1 %v422_v3  ;;  %1532 = vmatpush.msrb.mxu2 %v422_v3 }
  0x1b   : > { %4754 = vmatmul.msk.f32.gmra.mxu0 %vm446_vm0, %v444_v5  ;;  %4762 = vmatmul.msk.f32.gmra.mxu2 %vm446_vm0, %v444_v5 }
  0x1c   : > { %1000 = vmatpush.msrb.mxu1 %v421_v4  ;;  %1533 = vmatpush.msrb.mxu2 %v421_v4 }
  0x1d   : > { %4758 = vmatmul.msk.f32.gmra.mxu1 %vm446_vm0, %v444_v5  ;;  %4766 = vmatmul.msk.f32.gmra.mxu3 %vm446_vm0, %v444_v5 }
  0x1e   : > { %2065 = vmatpush.msrb.mxu3 %v422_v3  ;;  %2598 = vmatpush.msrb.mxu0 %v422_v3 }
  0x1f   : > { %3129 = vmatpush.msra.mxu1 %v424_v0  ;;  %3662 = vmatpush.msra.mxu2 %v424_v0 }
  0x20   : > { %2066 = vmatpush.msrb.mxu3 %v421_v4  ;;  %2599 = vmatpush.msrb.mxu0 %v421_v4 }
  0x21   : > { %3130 = vmatpush.msra.mxu1 %v423_v1  ;;  %3663 = vmatpush.msra.mxu2 %v423_v1 }
  0x22   : > { %4195 = vmatpush.msra.mxu3 %v424_v0 }
  0x23   : > { %4755 = vmatmul.msk.f32.gmra.mxu0 %vm446_vm0, %v444_v5  ;;  %4763 = vmatmul.msk.f32.gmra.mxu2 %vm446_vm0, %v444_v5 }
  0x24   : > { %3131 = vmatpush.msra.mxu1 %v422_v3  ;;  %3664 = vmatpush.msra.mxu2 %v422_v3 }
  0x25   : > { %4759 = vmatmul.msk.f32.gmra.mxu1 %vm446_vm0, %v444_v5  ;;  %4767 = vmatmul.msk.f32.gmra.mxu3 %vm446_vm0, %v444_v5 }
  0x26   : > { %3132 = vmatpush.msra.mxu1 %v421_v4  ;;  %3665 = vmatpush.msra.mxu2 %v421_v4 }
  0x27   : > { %4196 = vmatpush.msra.mxu3 %v423_v1 }
  0x29   : > { %4197 = vmatpush.msra.mxu3 %v422_v3 }
  0x2b   : > { %4756 = vmatmul.msk.f32.gmra.mxu0 %vm446_vm0, %v444_v5  ;;  %4764 = vmatmul.msk.f32.gmra.mxu2 %vm446_vm0, %v444_v5 }
  0x2c   : > { %4198 = vmatpush.msra.mxu3 %v421_v4 }
  0x2d   : > { %4760 = vmatmul.msk.f32.gmra.mxu1 %vm446_vm0, %v444_v5  ;;  %4768 = vmatmul.msk.f32.gmra.mxu3 %vm446_vm0, %v444_v5 }
  0x90   : > { %v466_v9 = vpop.f32.mrf.mxu0 }
  0x91   : > { %v467_v10 = vadd.f32 %v5404_v6, %v466_v9 }
  0x92   : > { %v478_v13 = vpop.f32.mrf.mxu1 }
  0x93   : > { %v514_v14 = vmax.f32 %v467_v10, 0.0  ;;  %v479_v15 = vadd.f32 %v5404_v6, %v478_v13 }
  0x95   : > { %v518_v16 = vmax.f32 %v479_v15, 0.0  ;;  %v615_v17 = vmul.f32 %v5418_v11, %v514_v14  ;;  %v531_v18 = vmul.f32 %v5421_v12, %v514_v14 }
  0x96   : > { %v490_v19 = vpop.f32.mrf.mxu2 }
  0x97   : > { %v491_v20 = vadd.f32 %v5404_v6, %v490_v19  ;;  %v631_v21 = vsel %vm446_vm0, %v615_v17, 0.0  ;;  %v547_v22 = vsel %vm446_vm0, %v531_v18, 0.0  ;;  %v619_v26 = vmul.f32 %v5418_v11, %v518_v16 }
  0x98   : > { %632 = vadd.xlane.f32.xlu0 %v631_v21  ;;  %548 = vadd.xlane.f32.xlu1 %v547_v22  ;;  %v469_v23 = vpop.f32.mrf.mxu0  ;;  %v535_v42 = vmul.f32 %v5421_v12, %v518_v16  ;;  %v502_v44 = vpop.f32.mrf.mxu3 }
  0x99   : > { %v522_v24 = vmax.f32 %v491_v20, 0.0  ;;  %v470_v25 = vadd.f32 %v5404_v6, %v469_v23  ;;  %v643_v32 = vsel %vm446_vm0, %v619_v26, 0.0  ;;  %v5447_v49 = vadd.f32 %v5404_v6, %v502_v44 }
  0x9a   : > { %v481_v27 = vpop.f32.mrf.mxu1  ;;  %v559_v46 = vsel %vm446_vm0, %v535_v42, 0.0 }
  0x9b   : > { %v515_v28 = vmax.f32 %v470_v25, 0.0  ;;  %v539_v29 = vmul.f32 %v5421_v12, %v522_v24  ;;  %v482_v30 = vadd.f32 %v5404_v6, %v481_v27  ;;  %v623_v50 = vmul.f32 %v5418_v11, %v522_v24 }
  0x9c   : > { %v526_v55 = vmax.f32 %v5447_v49, 0.0 }
  0x9d   : > { %v571_v31 = vsel %vm446_vm0, %v539_v29, 0.0  ;;  %v519_v33 = vmax.f32 %v482_v30, 0.0  ;;  %v616_v34 = vmul.f32 %v5418_v11, %v515_v28  ;;  %v532_v38 = vmul.f32 %v5421_v12, %v515_v28 }
  0x9e   : > { %572 = vadd.xlane.f32.xlu2 %v571_v31  ;;  %v493_v35 = vpop.f32.mrf.mxu2  ;;  %v655_v56 = vsel %vm446_vm0, %v623_v50, 0.0  ;;  %v627_v61 = vmul.f32 %v5418_v11, %v526_v55 }
  0x9f   : > { %v634_v36 = vsel %vm446_vm0, %v616_v34, 0.0  ;;  %v494_v37 = vadd.f32 %v5404_v6, %v493_v35  ;;  %v620_v39 = vmul.f32 %v5418_v11, %v519_v33  ;;  %v550_v41 = vsel %vm446_vm0, %v532_v38, 0.0 }
  0xa0   : > { %644 = vadd.xlane.f32.xlu1 %v643_v32  ;;  %635 = vadd.xlane.f32.xlu0 %v634_v36  ;;  %v536_v51 = vmul.f32 %v5421_v12, %v519_v33  ;;  %v472_v52 = vpop.f32.mrf.mxu0  ;;  %v505_v58 = vpop.f32.mrf.mxu3  ;;  %v667_v4 = vsel %vm446_vm0, %v627_v61, 0.0 }
  0xa1   : > { %v523_v40 = vmax.f32 %v494_v37, 0.0  ;;  %v646_v45 = vsel %vm446_vm0, %v620_v39, 0.0  ;;  %v506_v60 = vadd.f32 %v5404_v6, %v505_v58  ;;  %v473_v62 = vadd.f32 %v5404_v6, %v472_v52 }
  0xa2   : > { %v484_v43 = vpop.f32.mrf.mxu1  ;;  %v562_v57 = vsel %vm446_vm0, %v536_v51, 0.0 }
  0xa3   : > { %v485_v47 = vadd.f32 %v5404_v6, %v484_v43  ;;  %v624_v48 = vmul.f32 %v5418_v11, %v523_v40  ;;  %v540_v63 = vmul.f32 %v5421_v12, %v523_v40  ;;  %v527_v3 = vmax.f32 %v506_v60, 0.0 }
  0xa4   : > { %v516_v5 = vmax.f32 %v473_v62, 0.0  ;;  %v5516_v62 = vld [vmem:[%s7940_s8] ss:$0 sm:$0xff] }
  0xa5   : > { %v520_v53 = vmax.f32 %v485_v47, 0.0  ;;  %v658_v54 = vsel %vm446_vm0, %v624_v48, 0.0  ;;  %v574_v9 = vsel %vm446_vm0, %v540_v63, 0.0  ;;  %v628_v14 = vmul.f32 %v5418_v11, %v527_v3 }
  0xa6   : > { %551 = vadd.xlane.f32.xlu2 %v550_v41  ;;  %v533_v15 = vmul.f32 %v5421_v12, %v516_v5  ;;  %v496_v20 = vpop.f32.mrf.mxu2  ;;  %v617_v23 = vmul.f32 %v5418_v11, %v516_v5  ;;  %v5526_v5 = vld [vmem:[%s5522_s25] sm:$0xff] }
  0xa7   : > { %v621_v59 = vmul.f32 %v5418_v11, %v520_v53  ;;  %v537_v10 = vmul.f32 %v5421_v12, %v520_v53  ;;  %v670_v18 = vsel %vm446_vm0, %v628_v14, 0.0  ;;  %v497_v22 = vadd.f32 %v5404_v6, %v496_v20 }
  0xa8   : > { %560 = vadd.xlane.f32.xlu1 %v559_v46  ;;  %647 = vadd.xlane.f32.xlu0 %v646_v45  ;;  %v475_v1 = vpop.f32.mrf.mxu0  ;;  %v553_v19 = vsel %vm446_vm0, %v533_v15, 0.0  ;;  %v637_v27 = vsel %vm446_vm0, %v617_v23, 0.0  ;;  %v544_v45 = vmul.f32 %v5421_v12, %v527_v3  ;;  %v508_v50 = vpop.f32.mrf.mxu3  ;;  %v5539_v23 = vld [vmem:[%s5522_s25 + $0x8] sm:$0xff] }
  0xa9   : > { %v649_v0 = vsel %vm446_vm0, %v621_v59, 0.0  ;;  %v476_v13 = vadd.f32 %v5404_v6, %v475_v1  ;;  %v565_v16 = vsel %vm446_vm0, %v537_v10, 0.0  ;;  %v524_v26 = vmax.f32 %v497_v22, 0.0 }
  0xaa   : > { %v487_v25 = vpop.f32.mrf.mxu1  ;;  %v586_v47 = vsel %vm446_vm0, %v544_v45, 0.0  ;;  %v5496_v51 = vadd.f32 %v5404_v6, %v508_v50 }
  0xab   : > { %v517_v17 = vmax.f32 %v476_v13, 0.0  ;;  %v488_v29 = vadd.f32 %v5404_v6, %v487_v25  ;;  %v625_v30 = vmul.f32 %v5418_v11, %v524_v26  ;;  %v541_v35 = vmul.f32 %v5421_v12, %v524_v26  ;;  %v5542_v25 = vld [vmem:[%s5522_s25 + $0x20] sm:$0xff] }
  0xac   : > { %v528_v52 = vmax.f32 %v5496_v51, 0.0 }
  0xad   : > { %v618_v21 = vmul.f32 %v5418_v11, %v517_v17  ;;  %v534_v28 = vmul.f32 %v5421_v12, %v517_v17  ;;  %v521_v32 = vmax.f32 %v488_v29, 0.0  ;;  %v661_v33 = vsel %vm446_vm0, %v625_v30, 0.0 }
  0xae   : > { %659 = vadd.xlane.f32.xlu2 %v658_v54  ;;  %v499_v37 = vpop.f32.mrf.mxu2  ;;  %v577_v38 = vsel %vm446_vm0, %v541_v35, 0.0  ;;  %v629_v53 = vmul.f32 %v5418_v11, %v528_v52 }
  0xaf   : > { %v640_v24 = vsel %vm446_vm0, %v618_v21, 0.0  ;;  %v556_v31 = vsel %vm446_vm0, %v534_v28, 0.0  ;;  %v538_v34 = vmul.f32 %v5421_v12, %v521_v32  ;;  %v500_v39 = vadd.f32 %v5404_v6, %v499_v37 }
  0xb0   : > { %656 = vadd.xlane.f32.xlu1 %v655_v56  ;;  %563 = vadd.xlane.f32.xlu0 %v562_v57  ;;  %v622_v40 = vmul.f32 %v5418_v11, %v521_v32  ;;  %v673_v54 = vsel %vm446_vm0, %v629_v53, 0.0  ;;  %v5292_v56 = vmov 0   ;;  %v5508_v57 = vld [vmem:[%s7941_s9] ss:$0 sm:$0xff] }
  0xb1   : > { %v568_v36 = vsel %vm446_vm0, %v538_v34, 0.0  ;;  %v525_v41 = vmax.f32 %v500_v39, 0.0  ;;  %4926 = vset.pattern.permute.xlu0 %v5292_v56  ;;  %4927 = vset.pattern.permute.xlu1 %v5292_v56 }
  0xb2   : > { %v652_v42 = vsel %vm446_vm0, %v622_v40, 0.0  ;;  %4928 = vset.pattern.permute.xlu2 %v5292_v56 }
  0xb3   : > { %v542_v43 = vmul.f32 %v5421_v12, %v525_v41  ;;  %v626_v46 = vmul.f32 %v5418_v11, %v525_v41 }
  0xb5   : > { %v580_v44 = vsel %vm446_vm0, %v542_v43, 0.0  ;;  %v664_v48 = vsel %vm446_vm0, %v626_v46, 0.0 }
  0xb6   : > { %650 = vadd.xlane.f32.xlu2 %v649_v0 }
  0xb8   : > { %668 = vadd.xlane.f32.xlu1 %v667_v4  ;;  %575 = vadd.xlane.f32.xlu0 %v574_v9 }
  0xbe   : > { %566 = vadd.xlane.f32.xlu2 %v565_v16 }
  0xc0   : > { %671 = vadd.xlane.f32.xlu1 %v670_v18  ;;  %554 = vadd.xlane.f32.xlu0 %v553_v19 }
  0xc6   : > { %641 = vadd.xlane.f32.xlu2 %v640_v24 }
  0xc8   : > { %638 = vadd.xlane.f32.xlu1 %v637_v27 }
  0xce   : > { %557 = vadd.xlane.f32.xlu2 %v556_v31 }
  0xd0   : > { %662 = vadd.xlane.f32.xlu1 %v661_v33 }
  0xd6   : > { %569 = vadd.xlane.f32.xlu2 %v568_v36 }
  0xd8   : > { %578 = vadd.xlane.f32.xlu1 %v577_v38 }
  0xde   : > { %665 = vadd.xlane.f32.xlu2 %v664_v48 }
  0xe0   : > { %653 = vadd.xlane.f32.xlu1 %v652_v42  ;;  %v5554_v42 = vld [vmem:[%s5522_s25 + $0x28] sm:$0xff] }
  0xe6   : > { %674 = vadd.xlane.f32.xlu2 %v673_v54 }
  0xe8   : > { %581 = vadd.xlane.f32.xlu1 %v580_v44 }
  0xf0   : > { %587 = vadd.xlane.f32.xlu1 %v586_v47 }
 0x10b   : > { %v633_v58 = vpop.xlane.xlu0 %632  ;;  %v549_v59 = vpop.xlane.xlu1 %548 }
 0x10c   : > { %v679_v60 = vadd.f32 %v5508_v57, %v633_v58  ;;  %v598_v1 = vadd.f32 %v5516_v62, %v549_v59 }
 0x10e   : > { %v711_v61 = vsub.f32 0.0, %v679_v60  ;;  %v695_v15 = vsub.f32 %v5526_v5, %v598_v1 }
 0x110   : > { %v727_v63 = vmul.f32 1.442695, %v711_v61 }
 0x111   : > { %v573_v0 = vpop.xlane.xlu2 %572 }
 0x112   : > { %4951 = vpow2.f32 %v727_v63  ;;  %v606_v60 = vadd.f32 %v5516_v62, %v573_v0 }
 0x113   : > { %v645_v3 = vpop.xlane.xlu1 %644  ;;  %v636_v4 = vpop.xlane.xlu0 %635 }
 0x114   : > { %v683_v9 = vadd.f32 %v5508_v57, %v645_v3  ;;  %v680_v10 = vadd.f32 %v5508_v57, %v636_v4  ;;  %v413_v3 = vld [vmem:[%s5522_s25 + $0x48] sm:$0xff]  ;;  %v5570_v4 = vld [vmem:[%s5522_s25 + $0x40] sm:$0xff] }
 0x115   : > { %v703_v0 = vsub.f32 %v5570_v4, %v606_v60 }
 0x116   : > { %v715_v13 = vsub.f32 0.0, %v683_v9  ;;  %v712_v14 = vsub.f32 0.0, %v680_v10 }
 0x118   : > { %v4952_v16 = vpop.eup %4951  ;;  %v735_v17 = vmul.f32 1.442695, %v715_v13  ;;  %v729_v18 = vmul.f32 1.442695, %v712_v14 }
 0x119   : > { %v759_v19 = vmul.f32 %v4952_v16, %v695_v15  ;;  %v552_v20 = vpop.xlane.xlu2 %551 }
 0x11a   : > { %4953 = vpow2.f32 %v735_v17  ;;  %v599_v21 = vadd.f32 %v5516_v62, %v552_v20 }
 0x11b   : > { %v775_v22 = vadd.f32 %v759_v19, %v598_v1  ;;  %4955 = vpow2.f32 %v729_v18  ;;  %v561_v24 = vpop.xlane.xlu1 %560  ;;  %v648_v26 = vpop.xlane.xlu0 %647  ;;  %v5577_v19 = vld [vmem:[%s5522_s25 + $0x30] sm:$0xff] }
 0x11c   : > { %v602_v27 = vadd.f32 %v5516_v62, %v561_v24  ;;  %v684_v28 = vadd.f32 %v5508_v57, %v648_v26  ;;  %v696_v29 = vsub.f32 %v5539_v23, %v599_v21 }
 0x11d   : > { %792 = vst.msk [vmem:[%s5535_s28] sm:$0xff] %vm791_vm1, %v775_v22  ;;  %810 = vperm.xlu0 %4926, %v775_v22  }
 0x11e   : > { %v699_v30 = vsub.f32 %v5542_v25, %v602_v27  ;;  %v716_v31 = vsub.f32 0.0, %v684_v28 }
 0x120   : > { %v4954_v32 = vpop.eup %4953  ;;  %v737_v33 = vmul.f32 1.442695, %v716_v31 }
 0x121   : > { %v4956_v34 = vpop.eup %4955  ;;  %v763_v35 = vmul.f32 %v4954_v32, %v699_v30  ;;  %v660_v36 = vpop.xlane.xlu2 %659 }
 0x122   : > { %v760_v37 = vmul.f32 %v4956_v34, %v696_v29  ;;  %4957 = vpow2.f32 %v737_v33  ;;  %v688_v38 = vadd.f32 %v5508_v57, %v660_v36 }
 0x123   : > { %v5551_v39 = vadd.f32 %v763_v35, %v602_v27  ;;  %v657_v40 = vpop.xlane.xlu1 %656  ;;  %v564_v41 = vpop.xlane.xlu0 %563 }
 0x124   : > { %v776_v43 = vadd.f32 %v760_v37, %v599_v21  ;;  %v720_v44 = vsub.f32 0.0, %v688_v38  ;;  %v687_v45 = vadd.f32 %v5508_v57, %v657_v40  ;;  %v603_v46 = vadd.f32 %v5516_v62, %v564_v41 }
 0x125   : > { %796 = vst.msk [vmem:[%s5535_s28 + $0x20] sm:$0xff] %vm791_vm1, %v5551_v39 }
 0x126   : > { %793 = vst.msk [vmem:[%s5535_s28 + $0x8] sm:$0xff] %vm791_vm1, %v776_v43  ;;  %v745_v47 = vmul.f32 1.442695, %v720_v44  ;;  %v719_v48 = vsub.f32 0.0, %v687_v45  ;;  %v700_v50 = vsub.f32 %v5554_v42, %v603_v46  ;;  %815 = vperm.xlu1 %4927, %v776_v43   ;;  %v5596_v43 = vld [vmem:[%s5522_s25 + $0x18] sm:$0xff]  ;;  %v543_v44 = vmul.f32 %v5421_v12, %v526_v55 }
 0x128   : > { %v4958_v53 = vpop.eup %4957  ;;  %4959 = vpow2.f32 %v745_v47  ;;  %v743_v54 = vmul.f32 1.442695, %v719_v48  ;;  %v5604_v48 = vld [vmem:[%s5522_s25 + $0x10] sm:$0xff]  ;;  %v583_v49 = vsel %vm446_vm0, %v543_v44, 0.0 }
 0x129   : > { %v764_v56 = vmul.f32 %v4958_v53, %v700_v50  ;;  %v651_v58 = vpop.xlane.xlu2 %650 }
 0x12a   : > { %4961 = vpow2.f32 %v743_v54  ;;  %v685_v59 = vadd.f32 %v5508_v57, %v651_v58 }
 0x12b   : > { %v780_v61 = vadd.f32 %v764_v56, %v603_v46  ;;  %v5566_v63 = vpop.xlane.xlu1 %668  ;;  %v576_v1 = vpop.xlane.xlu0 %575 }
 0x12c   : > { %v717_v9 = vsub.f32 0.0, %v685_v59  ;;  %v607_v10 = vadd.f32 %v5516_v62, %v576_v1 }
 0x12d   : > { %797 = vst.msk [vmem:[%s5535_s28 + $0x28] sm:$0xff] %vm791_vm1, %v780_v61  ;;  %835 = vperm.xlu2 %4928, %v780_v61  }
 0x12e   : > { %v4960_v13 = vpop.eup %4959  ;;  %v739_v14 = vmul.f32 1.442695, %v717_v9  ;;  %v704_v15 = vsub.f32 %v413_v3, %v607_v10  ;;  %v5613_v9 = vld [vmem:[%s5522_s25 + $0x50] sm:$0xff] }
 0x130   : > { %v4962_v16 = vpop.eup %4961  ;;  %4963 = vpow2.f32 %v739_v14  ;;  %v768_v17 = vmul.f32 %v4960_v13, %v704_v15 }
 0x131   : > { %v567_v18 = vpop.xlane.xlu2 %566  ;;  %v767_v20 = vmul.f32 %v4962_v16, %v703_v0 }
 0x132   : > { %v5579_v21 = vadd.f32 %v768_v17, %v607_v10  ;;  %v604_v22 = vadd.f32 %v5516_v62, %v567_v18  ;;  %v511_v18 = vpop.f32.mrf.mxu3 }
 0x133   : > { %v672_v24 = vpop.xlane.xlu1 %671  ;;  %v5582_v26 = vadd.f32 %v767_v20, %v606_v60  ;;  %v555_v38 = vpop.xlane.xlu0 %554 }
 0x134   : > { %801 = vst.msk [vmem:[%s5535_s28 + $0x48] sm:$0xff] %vm791_vm1, %v5579_v21  ;;  %v701_v27 = vsub.f32 %v5577_v19, %v604_v22  ;;  %v600_v46 = vadd.f32 %v5516_v62, %v555_v38 }
 0x135   : > { %800 = vst.msk [vmem:[%s5535_s28 + $0x40] sm:$0xff] %vm791_vm1, %v5582_v26 }
 0x136   : > { %v4964_v28 = vpop.eup %4963  ;;  %v697_v55 = vsub.f32 %v5604_v48, %v600_v46 }
 0x137   : > { %v765_v29 = vmul.f32 %v4964_v28, %v701_v27  ;;  %v512_v28 = vadd.f32 %v5404_v6, %v511_v18  ;;  %v5674_v18 = vld [vmem:[%s5522_s25 + $0x58] sm:$0xff] }
 0x139   : > { %v781_v30 = vadd.f32 %v765_v29, %v604_v22  ;;  %v642_v31 = vpop.xlane.xlu2 %641  ;;  %v692_v22 = vadd.f32 %v5508_v57, %v672_v24 }
 0x13a   : > { %v682_v32 = vadd.f32 %v5508_v57, %v642_v31 }
 0x13b   : > { %798 = vst.msk [vmem:[%s5535_s28 + $0x30] sm:$0xff] %vm791_vm1, %v781_v30  ;;  %v639_v33 = vpop.xlane.xlu1 %638  ;;  %840 = vperm.xlu1 %4927, %v781_v30   ;;  %v724_v31 = vsub.f32 0.0, %v692_v22 }
 0x13c   : > { %v681_v34 = vadd.f32 %v5508_v57, %v639_v33  ;;  %v714_v35 = vsub.f32 0.0, %v682_v32  ;;  %v529_v32 = vmax.f32 %v512_v28, 0.0 }
 0x13d   : > { %v753_v24 = vmul.f32 1.442695, %v724_v31  ;;  %v691_v31 = vadd.f32 %v5508_v57, %v5566_v63  ;;  %v5697_v63 = vld [vmem:[%s5522_s25 + $0x60] sm:$0xff] }
 0x13e   : > { %v713_v36 = vsub.f32 0.0, %v681_v34  ;;  %v733_v37 = vmul.f32 1.442695, %v714_v35  ;;  %v5627_v35 = vld [vmem:[%s5522_s25 + $0x38] sm:$0xff] }
 0x140   : > { %v731_v40 = vmul.f32 1.442695, %v713_v36  ;;  %4965 = vpow2.f32 %v733_v37  ;;  %v546_v36 = vmul.f32 %v5421_v12, %v529_v32 }
 0x141   : > { %v558_v41 = vpop.xlane.xlu2 %557 }
 0x142   : > { %4967 = vpow2.f32 %v731_v40  ;;  %v601_v45 = vadd.f32 %v5516_v62, %v558_v41  ;;  %v592_v41 = vsel %vm446_vm0, %v546_v36, 0.0 }
 0x143   : > { %v663_v47 = vpop.xlane.xlu1 %662 }
 0x144   : > { %v689_v50 = vadd.f32 %v5508_v57, %v663_v47  ;;  %v698_v53 = vsub.f32 %v5596_v43, %v601_v45 }
 0x146   : > { %v4966_v54 = vpop.eup %4965  ;;  %v721_v56 = vsub.f32 0.0, %v689_v50 }
 0x147   : > { %584 = vadd.xlane.f32.xlu0 %v583_v49  ;;  %v762_v58 = vmul.f32 %v4966_v54, %v698_v53 }
 0x148   : > { %v4968_v59 = vpop.eup %4967  ;;  %v747_v60 = vmul.f32 1.442695, %v721_v56  ;;  %v630_v56 = vmul.f32 %v5418_v11, %v529_v32 }
 0x149   : > { %v778_v61 = vadd.f32 %v762_v58, %v601_v45  ;;  %v761_v1 = vmul.f32 %v4968_v59, %v697_v55  ;;  %v570_v29 = vpop.xlane.xlu2 %569  ;;  %v5633_v45 = vld [vmem:[%s5522_s25 + $0x68] sm:$0xff]  ;;  %v5647_v55 = vld [vmem:[%s7933_s1] sm:$0xff]  ;;  %v545_v58 = vmul.f32 %v5421_v12, %v528_v52 }
 0x14a   : > { %4969 = vpow2.f32 %v747_v60  ;;  %v605_v33 = vadd.f32 %v5516_v62, %v570_v29  ;;  %v676_v49 = vsel %vm446_vm0, %v630_v56, 0.0  ;;  %v5653_v60 = vperm.slane %v5647_v55, 0 }
 0x14b   : > { %795 = vst.msk [vmem:[%s5535_s28 + $0x18] sm:$0xff] %vm791_vm1, %v778_v61  ;;  %v579_v3 = vpop.xlane.xlu1 %578  ;;  %v777_v10 = vadd.f32 %v761_v1, %v600_v46  ;;  %v589_v11 = vsel %vm446_vm0, %v545_v58, 0.0 }
 0x14c   : > { %v608_v13 = vadd.f32 %v5516_v62, %v579_v3  ;;  %v702_v37 = vsub.f32 %v5627_v35, %v605_v33 }
 0x14d   : > { %820 = vperm.xlu2 %4928, %v777_v10   ;;  %794 = vst.msk [vmem:[%s5535_s28 + $0x10] sm:$0xff] %vm791_vm1, %v777_v10 }
 0x14e   : > { %v705_v14 = vsub.f32 %v5613_v9, %v608_v13 }
 0x150   : > { %v4970_v15 = vpop.eup %4969 }
 0x151   : > { %v769_v0 = vmul.f32 %v4970_v15, %v705_v14  ;;  %v666_v59 = vpop.xlane.xlu2 %665 }
 0x152   : > { %v690_v3 = vadd.f32 %v5508_v57, %v666_v59 }
 0x153   : > { %v785_v16 = vadd.f32 %v769_v0, %v608_v13  ;;  %v654_v17 = vpop.xlane.xlu1 %653 }
 0x154   : > { %v686_v20 = vadd.f32 %v5508_v57, %v654_v17  ;;  %v722_v12 = vsub.f32 0.0, %v690_v3 }
 0x155   : > { %802 = vst.msk [vmem:[%s5535_s28 + $0x50] sm:$0xff] %vm791_vm1, %v785_v16  ;;  %825 = vperm.xlu2 %4928, %v778_v61  }
 0x156   : > { %v718_v27 = vsub.f32 0.0, %v686_v20  ;;  %v749_v15 = vmul.f32 1.442695, %v722_v12 }
 0x158   : > { %v741_v30 = vmul.f32 1.442695, %v718_v27 }
 0x159   : > { %v5662_v10 = vpop.xlane.xlu2 %674 }
 0x15a   : > { %4971 = vpow2.f32 %v741_v30 }
 0x15b   : > { %v582_v34 = vpop.xlane.xlu1 %581  ;;  %830 = vperm.xlu0 %4926, %v5551_v39   ;;  %4973 = vpow2.f32 %v753_v24 }
 0x15c   : > { %4975 = vpow2.f32 %v749_v15 }
 0x160   : > { %v4972_v38 = vpop.eup %4971 }
 0x161   : > { %v766_v40 = vmul.f32 %v4972_v38, %v702_v37  ;;  %v4974_v50 = vpop.eup %4973 }
 0x162   : > { %v4976_v22 = vpop.eup %4975 }
 0x163   : > { %v588_v44 = vpop.xlane.xlu1 %587  ;;  %v782_v46 = vadd.f32 %v766_v40, %v605_v33 }
 0x164   : > { %v611_v47 = vadd.f32 %v5516_v62, %v588_v44 }
 0x165   : > { %593 = vadd.xlane.f32.xlu1 %v592_v41  ;;  %799 = vst.msk [vmem:[%s5535_s28 + $0x38] sm:$0xff] %vm791_vm1, %v782_v46  ;;  %845 = vperm.xlu0 %4926, %v782_v46  }
 0x166   : > { %v708_v39 = vsub.f32 %v5633_v45, %v611_v47 }
 0x168   : > { %v772_v53 = vmul.f32 %v4974_v50, %v708_v39 }
 0x16a   : > { %v788_v54 = vadd.f32 %v772_v53, %v611_v47 }
 0x16c   : > { %805 = vst.msk [vmem:[%s5535_s28 + $0x68] sm:$0xff] %vm791_vm1, %v788_v54 }
 0x17e   : > { %677 = vadd.xlane.f32.xlu2 %v676_v49  ;;  %855 = vperm.xlu1 %4927, %v5579_v21  }
 0x186   : > { %875 = vperm.xlu1 %4927, %v788_v54  }
 0x187   : > { %v836_v17 = vpop.permute.xlu2 %835 }
 0x188   : > { %v894_v56 = vmul.f32 %v5653_v60, %v836_v17 }
 0x18a   : > { %v5711_v58 = vadd.f32 %v5376_v2, %v894_v56 }
 0x18f   : > { %590 = vadd.xlane.f32.xlu0 %v589_v11  ;;  %v811_v61 = vpop.permute.xlu0 %810 }
 0x190   : > { %v889_v21 = vmul.f32 %v5653_v60, %v811_v61  ;;  %v926_v61 = vmax.f32 %v5711_v58, 0.0 }
 0x192   : > { %v5658_v1 = vadd.f32 %v5376_v2, %v889_v21 }
 0x194   : > { %v921_v51 = vmax.f32 %v5658_v1, 0.0 }
 0x196   : > { %850 = vperm.xlu2 %4928, %v5582_v26   ;;  %4769 = vmatmul.msk.f32.vlgmr.msrb.gmra.mxu1 %vm446_vm0, %v921_v51  ;;  %v609_v26 = vadd.f32 %v5516_v62, %v582_v34  ;;  %v723_v34 = vsub.f32 0.0, %v691_v31 }
 0x198   : > { %v816_v52 = vpop.permute.xlu1 %815  ;;  %v706_v20 = vsub.f32 %v5674_v18, %v609_v26  ;;  %v751_v37 = vmul.f32 1.442695, %v723_v34 }
 0x199   : > { %v890_v13 = vmul.f32 %v5653_v60, %v816_v52 }
 0x19a   : > { %v770_v29 = vmul.f32 %v4976_v22, %v706_v20  ;;  %4977 = vpow2.f32 %v751_v37 }
 0x19b   : > { %v5668_v14 = vadd.f32 %v5376_v2, %v890_v13 }
 0x19d   : > { %v922_v0 = vmax.f32 %v5668_v14, 0.0 }
 0x19e   : > { %860 = vperm.xlu2 %4928, %v785_v16   ;;  %v5681_v16 = vadd.f32 %v770_v29, %v609_v26  ;;  %v693_v26 = vadd.f32 %v5508_v57, %v5662_v10  ;;  %v5732_v29 = vld [vmem:[%s5522_s25 + $0x78] sm:$0xff] }
 0x19f   : > { %4770 = vmatmul.msk.f32.gmra.mxu1 %vm446_vm0, %v922_v0 }
 0x1a0   : > { %803 = vst.msk [vmem:[%s5535_s28 + $0x58] sm:$0xff] %vm791_vm1, %v5681_v16  ;;  %v4978_v46 = vpop.eup %4977 }
 0x1a7   : > { %v821_v27 = vpop.permute.xlu2 %820 }
 0x1a8   : > { %v891_v28 = vmul.f32 %v5653_v60, %v821_v27 }
 0x1aa   : > { %v5679_v30 = vadd.f32 %v5376_v2, %v891_v28  ;;  %v725_v28 = vsub.f32 0.0, %v693_v26 }
 0x1ac   : > { %v923_v32 = vmax.f32 %v5679_v30, 0.0 }
 0x1ad   : > { %v841_v59 = vpop.permute.xlu1 %840 }
 0x1ae   : > { %4771 = vmatmul.msk.f32.gmra.mxu1 %vm446_vm0, %v923_v32  ;;  %v895_v11 = vmul.f32 %v5653_v60, %v841_v59 }
 0x1af   : > { %v826_v33 = vpop.permute.xlu2 %825 }
 0x1b0   : > { %v892_v24 = vmul.f32 %v5653_v60, %v826_v33  ;;  %v5717_v21 = vadd.f32 %v5376_v2, %v895_v11 }
 0x1b2   : > { %v5692_v36 = vadd.f32 %v5376_v2, %v892_v24  ;;  %v927_v12 = vmax.f32 %v5717_v21, 0.0  ;;  %v755_v24 = vmul.f32 1.442695, %v725_v28  ;;  %v5771_v28 = vperm.slane %v5409_v7, 1 }
 0x1b4   : > { %v924_v38 = vmax.f32 %v5692_v36, 0.0 }
 0x1b6   : > { %4772 = vmatmul.msk.f32.gmra.mxu1 %vm446_vm0, %v924_v38 }
 0x1ba   : > { %v585_v40 = vpop.xlane.xlu0 %584 }
 0x1bb   : > { %v610_v41 = vadd.f32 %v5516_v62, %v585_v40 }
 0x1bd   : > { %v707_v44 = vsub.f32 %v5697_v63, %v610_v41 }
 0x1bf   : > { %v771_v47 = vmul.f32 %v4978_v46, %v707_v44 }
 0x1c1   : > { %v787_v39 = vadd.f32 %v771_v47, %v610_v41  ;;  %v5746_v47 = vld [vmem:[%s5522_s25 + $0x70] sm:$0xff] }
 0x1c3   : > { %804 = vst.msk [vmem:[%s5535_s28 + $0x60] sm:$0xff] %vm791_vm1, %v787_v39  ;;  %870 = vperm.xlu0 %4926, %v787_v39  }
 0x1cd   : > { %v831_v50 = vpop.permute.xlu0 %830 }
 0x1ce   : > { %v893_v53 = vmul.f32 %v5653_v60, %v831_v50 }
 0x1d0   : > { %v5705_v54 = vadd.f32 %v5376_v2, %v893_v53 }
 0x1d2   : > { %v925_v49 = vmax.f32 %v5705_v54, 0.0 }
 0x1d4   : > { %4773 = vmatmul.msk.f32.gmra.mxu1 %vm446_vm0, %v925_v49 }
 0x1d7   : > { %v846_v3 = vpop.permute.xlu0 %845 }
 0x1d8   : > { %v896_v51 = vmul.f32 %v5653_v60, %v846_v3  ;;  %v594_v15 = vpop.xlane.xlu1 %593 }
 0x1d9   : > { %v613_v27 = vadd.f32 %v5516_v62, %v594_v15 }
 0x1da   : > { %v5723_v52 = vadd.f32 %v5376_v2, %v896_v51 }
 0x1db   : > { %v710_v33 = vsub.f32 %v5732_v29, %v613_v27 }
 0x1dc   : > { %4774 = vmatmul.msk.f32.gmra.mxu1 %vm446_vm0, %v926_v61  ;;  %v928_v13 = vmax.f32 %v5723_v52, 0.0 }
 0x1e4   : > { %4775 = vmatmul.msk.f32.gmra.mxu1 %vm446_vm0, %v927_v12 }
 0x1ec   : > { %4776 = vmatmul.msk.f32.gmra.mxu1 %vm446_vm0, %v928_v13 }
 0x1f0   : > { %v856_v34 = vpop.permute.xlu1 %855 }
 0x1f1   : > { %v678_v0 = vpop.xlane.xlu2 %677  ;;  %v898_v38 = vmul.f32 %v5653_v60, %v856_v34 }
 0x1f2   : > { %v694_v17 = vadd.f32 %v5508_v57, %v678_v0  ;;  %v5765_v0 = vperm.slane %v5414_v8, 1 }
 0x1f3   : > { %v5743_v46 = vadd.f32 %v5376_v2, %v898_v38 }
 0x1f4   : > { %v726_v20 = vsub.f32 0.0, %v694_v17 }
 0x1f5   : > { %v930_v11 = vmax.f32 %v5743_v46, 0.0 }
 0x1f6   : > { %v757_v22 = vmul.f32 1.442695, %v726_v20 }
 0x1f8   : > { %4979 = vpow2.f32 %v757_v22 }
 0x1f9   : > { %v851_v31 = vpop.permute.xlu2 %850  ;;  %4981 = vpow2.f32 %v755_v24 }
 0x1fa   : > { %v897_v32 = vmul.f32 %v5653_v60, %v851_v31 }
 0x1fc   : > { %v5737_v37 = vadd.f32 %v5376_v2, %v897_v32 }
 0x1fe   : > { %v4980_v10 = vpop.eup %4979  ;;  %v929_v40 = vmax.f32 %v5737_v37, 0.0 }
 0x1ff   : > { %v774_v41 = vmul.f32 %v4980_v10, %v710_v33  ;;  %v4982_v49 = vpop.eup %4981 }
 0x200   : > { %4777 = vmatmul.msk.f32.gmra.mxu1 %vm446_vm0, %v929_v40 }
 0x201   : > { %v790_v44 = vadd.f32 %v774_v41, %v613_v27  ;;  %v861_v50 = vpop.permute.xlu2 %860 }
 0x202   : > { %v591_v39 = vpop.xlane.xlu0 %590  ;;  %v899_v59 = vmul.f32 %v5653_v60, %v861_v50 }
 0x203   : > { %v612_v53 = vadd.f32 %v5516_v62, %v591_v39  ;;  %885 = vperm.xlu1 %4927, %v790_v44   ;;  %807 = vst.msk [vmem:[%s5535_s28 + $0x78] sm:$0xff] %vm791_vm1, %v790_v44 }
 0x204   : > { %v5756_v51 = vadd.f32 %v5376_v2, %v899_v59 }
 0x205   : > { %v709_v56 = vsub.f32 %v5746_v47, %v612_v53 }
 0x206   : > { %v931_v12 = vmax.f32 %v5756_v51, 0.0 }
 0x207   : > { %v773_v61 = vmul.f32 %v4982_v49, %v709_v56 }
 0x208   : > { %4778 = vmatmul.msk.f32.gmra.mxu1 %vm446_vm0, %v930_v11 }
 0x209   : > { %v789_v3 = vadd.f32 %v773_v61, %v612_v53 }
 0x20b   : > { %806 = vst.msk [vmem:[%s5535_s28 + $0x70] sm:$0xff] %vm791_vm1, %v789_v3  ;;  %880 = vperm.xlu2 %4928, %v789_v3  }
 0x210   : > { %4779 = vmatmul.msk.f32.gmra.mxu1 %vm446_vm0, %v931_v12 }
 0x213   : > { %v1002_v13 = vpop.f32.mrf.mxu1  ;;  %865 = vperm.xlu2 %4928, %v5681_v16  }
 0x214   : > { %v1003_v15 = vadd.f32 %v5404_v6, %v1002_v13 }
 0x216   : > { %v1050_v17 = vmax.f32 %v1003_v15, 0.0 }
 0x218   : > { %v1067_v26 = vmul.f32 %v5765_v0, %v1050_v17  ;;  %v1148_v7 = vmul.f32 %v5771_v28, %v1050_v17 }
 0x21a   : > { %v1083_v2 = vsel %vm446_vm0, %v1067_v26, 0.0  ;;  %v1164_v40 = vsel %vm446_vm0, %v1148_v7, 0.0 }
 0x21b   : > { %1084 = vadd.xlane.f32.xlu0 %v1083_v2 }
 0x21c   : > { %v1005_v20 = vpop.f32.mrf.mxu1 }
 0x21d   : > { %v1006_v22 = vadd.f32 %v5404_v6, %v1005_v20 }
 0x21f   : > { %v1051_v27 = vmax.f32 %v1006_v22, 0.0 }
 0x221   : > { %v1149_v16 = vmul.f32 %v5771_v28, %v1051_v27  ;;  %v1068_v24 = vmul.f32 %v5765_v0, %v1051_v27 }
 0x223   : > { %v1167_v31 = vsel %vm446_vm0, %v1149_v16, 0.0  ;;  %v1086_v38 = vsel %vm446_vm0, %v1068_v24, 0.0 }
 0x22b   : > { %v1008_v32 = vpop.f32.mrf.mxu1 }
 0x22c   : > { %v1009_v8 = vadd.f32 %v5404_v6, %v1008_v32 }
 0x22d   : > { %1168 = vadd.xlane.f32.xlu1 %v1167_v31 }
 0x22e   : > { %v1052_v33 = vmax.f32 %v1009_v8, 0.0 }
 0x230   : > { %v1069_v34 = vmul.f32 %v5765_v0, %v1052_v33  ;;  %v1150_v39 = vmul.f32 %v5771_v28, %v1052_v33 }
 0x232   : > { %v1089_v10 = vsel %vm446_vm0, %v1069_v34, 0.0  ;;  %v1170_v53 = vsel %vm446_vm0, %v1150_v39, 0.0 }
 0x233   : > { %1090 = vadd.xlane.f32.xlu0 %v1089_v10  ;;  %v1011_v41 = vpop.f32.mrf.mxu1 }
 0x234   : > { %v1012_v44 = vadd.f32 %v5404_v6, %v1011_v41 }
 0x235   : > { %1087 = vadd.xlane.f32.xlu1 %v1086_v38 }
 0x236   : > { %v1053_v50 = vmax.f32 %v1012_v44, 0.0 }
 0x238   : > { %v1151_v56 = vmul.f32 %v5771_v28, %v1053_v50  ;;  %v1070_v59 = vmul.f32 %v5765_v0, %v1053_v50 }
 0x23a   : > { %v1173_v49 = vsel %vm446_vm0, %v1151_v56, 0.0  ;;  %v1092_v3 = vsel %vm446_vm0, %v1070_v59, 0.0  ;;  %v871_v56 = vpop.permute.xlu0 %870 }
 0x23c   : > { %1165 = vadd.xlane.f32.xlu2 %v1164_v40 }
 0x244   : > { %1171 = vadd.xlane.f32.xlu2 %v1170_v53 }
 0x24c   : > { %1174 = vadd.xlane.f32.xlu2 %v1173_v49  ;;  %v5207_v49 = vld [vmem:[%s7934_s2] ss:$0 sm:$0xff] }
 0x251   : > { %v1014_v11 = vpop.f32.mrf.mxu1 }
 0x252   : > { %v1015_v61 = vadd.f32 %v5404_v6, %v1014_v11 }
 0x254   : > { %v1054_v12 = vmax.f32 %v1015_v61, 0.0  ;;  %1093 = vadd.xlane.f32.xlu2 %v1092_v3 }
 0x256   : > { %v1152_v13 = vmul.f32 %v5771_v28, %v1054_v12  ;;  %v1071_v20 = vmul.f32 %v5765_v0, %v1054_v12 }
 0x258   : > { %v1176_v15 = vsel %vm446_vm0, %v1152_v13, 0.0  ;;  %v1095_v16 = vsel %vm446_vm0, %v1071_v20, 0.0 }
 0x259   : > { %v1017_v17 = vpop.f32.mrf.mxu1  ;;  %1177 = vadd.xlane.f32.xlu1 %v1176_v15  ;;  %v876_v15 = vpop.permute.xlu1 %875 }
 0x25a   : > { %v1018_v26 = vadd.f32 %v5404_v6, %v1017_v17 }
 0x25c   : > { %v1055_v2 = vmax.f32 %v1018_v26, 0.0  ;;  %v902_v26 = vmul.f32 %v5653_v60, %v876_v15 }
 0x25e   : > { %v1153_v22 = vmul.f32 %v5771_v28, %v1055_v2  ;;  %v1072_v33 = vmul.f32 %v5765_v0, %v1055_v2 }
 0x260   : > { %v1179_v27 = vsel %vm446_vm0, %v1153_v22, 0.0  ;;  %v1098_v10 = vsel %vm446_vm0, %v1072_v33, 0.0  ;;  %v5823_v22 = vadd.f32 %v5207_v49, %v902_v26 }
 0x261   : > { %v1020_v31 = vpop.f32.mrf.mxu1  ;;  %1180 = vadd.xlane.f32.xlu0 %v1179_v27  ;;  %1096 = vadd.xlane.f32.xlu1 %v1095_v16  ;;  %v5828_v27 = vld [vmem:[%s7936_s4] ss:$0 sm:$0xff] }
 0x262   : > { %v1021_v32 = vadd.f32 %v5404_v6, %v1020_v31 }
 0x264   : > { %v1056_v8 = vmax.f32 %v1021_v32, 0.0 }
 0x265   : > { %v881_v34 = vpop.permute.xlu2 %880 }
 0x266   : > { %v1154_v24 = vmul.f32 %v5771_v28, %v1056_v8  ;;  %v1073_v44 = vmul.f32 %v5765_v0, %v1056_v8  ;;  %v903_v32 = vmul.f32 %v5653_v60, %v881_v34  ;;  %v934_v8 = vmax.f32 %v5823_v22, 0.0 }
 0x268   : > { %v1182_v38 = vsel %vm446_vm0, %v1154_v24, 0.0  ;;  %v1101_v61 = vsel %vm446_vm0, %v1073_v44, 0.0 }
 0x269   : > { %1099 = vadd.xlane.f32.xlu0 %v1098_v10  ;;  %v1023_v7 = vpop.f32.mrf.mxu1  ;;  %1183 = vadd.xlane.f32.xlu2 %v1182_v38 }
 0x26a   : > { %v1024_v40 = vadd.f32 %v5404_v6, %v1023_v7  ;;  %v901_v6 = vmul.f32 %v5653_v60, %v871_v56 }
 0x26c   : > { %v1057_v41 = vmax.f32 %v1024_v40, 0.0  ;;  %v5817_v13 = vadd.f32 %v5207_v49, %v901_v6  ;;  %v5838_v40 = vadd.f32 %v5207_v49, %v903_v32 }
 0x26d   : > { %v866_v39 = vpop.permute.xlu2 %865 }
 0x26e   : > { %v900_v50 = vmul.f32 %v5653_v60, %v866_v39  ;;  %v1155_v53 = vmul.f32 %v5771_v28, %v1057_v41  ;;  %v1074_v12 = vmul.f32 %v5765_v0, %v1057_v41  ;;  %v933_v2 = vmax.f32 %v5817_v13, 0.0 }
 0x270   : > { %v5809_v59 = vadd.f32 %v5207_v49, %v900_v50  ;;  %v1185_v11 = vsel %vm446_vm0, %v1155_v53, 0.0  ;;  %v1104_v17 = vsel %vm446_vm0, %v1074_v12, 0.0  ;;  %v935_v50 = vmax.f32 %v5838_v40, 0.0 }
 0x271   : > { %1186 = vadd.xlane.f32.xlu1 %v1185_v11  ;;  %1102 = vadd.xlane.f32.xlu2 %v1101_v61 }
 0x272   : > { %v932_v3 = vmax.f32 %v5809_v59, 0.0 }
 0x274   : > { %4780 = vmatmul.msk.f32.gmra.mxu1 %vm446_vm0, %v932_v3 }
 0x275   : > { %v886_v34 = vpop.permute.xlu1 %885 }
 0x276   : > { %v904_v39 = vmul.f32 %v5653_v60, %v886_v34 }
 0x278   : > { %v5851_v61 = vadd.f32 %v5207_v49, %v904_v39  ;;  %v5293_v49 = vmov 1  }
 0x279   : > { %1105 = vadd.xlane.f32.xlu2 %v1104_v17  ;;  %4929 = vset.pattern.permute.xlu0 %v5293_v49 }
 0x27a   : > { %v936_v12 = vmax.f32 %v5851_v61, 0.0  ;;  %4931 = vset.pattern.permute.xlu2 %v5293_v49  ;;  %4930 = vset.pattern.permute.xlu1 %v5293_v49 }
 0x27c   : > { %4781 = vmatmul.msk.f32.gmra.mxu1 %vm446_vm0, %v933_v2 }
 0x27d   : > { %v1026_v20 = vpop.f32.mrf.mxu1 }
 0x27e   : > { %v1027_v16 = vadd.f32 %v5828_v27, %v1026_v20 }
 0x280   : > { %v1058_v31 = vmax.f32 %v1027_v16, 0.0 }
 0x282   : > { %v1156_v33 = vmul.f32 %v5771_v28, %v1058_v31  ;;  %v1075_v24 = vmul.f32 %v5765_v0, %v1058_v31 }
 0x284   : > { %4782 = vmatmul.msk.f32.gmra.mxu1 %vm446_vm0, %v934_v8  ;;  %v1188_v10 = vsel %vm446_vm0, %v1156_v33, 0.0  ;;  %v1107_v38 = vsel %vm446_vm0, %v1075_v24, 0.0 }
 0x285   : > { %v1029_v7 = vpop.f32.mrf.mxu1  ;;  %1189 = vadd.xlane.f32.xlu1 %v1188_v10  ;;  %1108 = vadd.xlane.f32.xlu2 %v1107_v38 }
 0x286   : > { %v5841_v41 = vadd.f32 %v5828_v27, %v1029_v7 }
 0x288   : > { %v1059_v44 = vmax.f32 %v5841_v41, 0.0 }
 0x28a   : > { %v1157_v53 = vmul.f32 %v5771_v28, %v1059_v44 }
 0x28c   : > { %4783 = vmatmul.msk.f32.gmra.mxu1 %vm446_vm0, %v935_v50  ;;  %v1191_v56 = vsel %vm446_vm0, %v1157_v53, 0.0 }
 0x28d   : > { %v1032_v11 = vpop.f32.mrf.mxu1  ;;  %1192 = vadd.xlane.f32.xlu2 %v1191_v56 }
 0x28e   : > { %v1033_v6 = vadd.f32 %v5828_v27, %v1032_v11  ;;  %v1085_v50 = vpop.xlane.xlu0 %1084 }
 0x28f   : > { %v1131_v56 = vadd.f32 %v5516_v62, %v1085_v50 }
 0x290   : > { %v1060_v3 = vmax.f32 %v1033_v6, 0.0 }
 0x292   : > { %v1158_v60 = vmul.f32 %v5771_v28, %v1060_v3  ;;  %v1077_v17 = vmul.f32 %v5765_v0, %v1060_v3  ;;  %v1228_v3 = vsub.f32 %v5526_v5, %v1131_v56 }
 0x294   : > { %4784 = vmatmul.msk.f32.gmra.mxu1 %vm446_vm0, %v936_v12  ;;  %v1194_v15 = vsel %vm446_vm0, %v1158_v60, 0.0  ;;  %v1113_v26 = vsel %vm446_vm0, %v1077_v17, 0.0 }
 0x295   : > { %1195 = vadd.xlane.f32.xlu1 %v1194_v15 }
 0x29d   : > { %1114 = vadd.xlane.f32.xlu1 %v1113_v26 }
 0x2a0   : > { %v1169_v2 = vpop.xlane.xlu1 %1168 }
 0x2a1   : > { %v1213_v20 = vadd.f32 %v5508_v57, %v1169_v2 }
 0x2a3   : > { %v1245_v16 = vsub.f32 0.0, %v1213_v20 }
 0x2a5   : > { %v1262_v31 = vmul.f32 1.442695, %v1245_v16 }
 0x2a6   : > { %v1091_v60 = vpop.xlane.xlu0 %1090 }
 0x2a7   : > { %4983 = vpow2.f32 %v1262_v31  ;;  %v1133_v26 = vadd.f32 %v5516_v62, %v1091_v60 }
 0x2a8   : > { %v1088_v32 = vpop.xlane.xlu1 %1087 }
 0x2a9   : > { %v1132_v8 = vadd.f32 %v5516_v62, %v1088_v32  ;;  %v1230_v31 = vsub.f32 %v5604_v48, %v1133_v26 }
 0x2ab   : > { %v1229_v33 = vsub.f32 %v5539_v23, %v1132_v8 }
 0x2ad   : > { %v4984_v24 = vpop.eup %4983 }
 0x2ae   : > { %v1293_v10 = vmul.f32 %v4984_v24, %v1229_v33 }
 0x2af   : > { %v1166_v38 = vpop.xlane.xlu2 %1165 }
 0x2b0   : > { %v5863_v7 = vadd.f32 %v1293_v10, %v1132_v8  ;;  %v1212_v34 = vadd.f32 %v5508_v57, %v1166_v38 }
 0x2b2   : > { %1326 = vst.msk [vmem:[%s5535_s28 + $0x8] sm:$0xff] %vm1324_vm2, %v5863_v7  ;;  %v1244_v39 = vsub.f32 0.0, %v1212_v34 }
 0x2b4   : > { %v1260_v53 = vmul.f32 1.442695, %v1244_v39 }
 0x2b6   : > { %4985 = vpow2.f32 %v1260_v53 }
 0x2b7   : > { %v1172_v11 = vpop.xlane.xlu2 %1171 }
 0x2b8   : > { %v1214_v23 = vadd.f32 %v5508_v57, %v1172_v11 }
 0x2ba   : > { %v1246_v6 = vsub.f32 0.0, %v1214_v23 }
 0x2bc   : > { %v4986_v12 = vpop.eup %4985  ;;  %v1264_v15 = vmul.f32 1.442695, %v1246_v6 }
 0x2bd   : > { %v1292_v17 = vmul.f32 %v4986_v12, %v1228_v3 }
 0x2be   : > { %4987 = vpow2.f32 %v1264_v15 }
 0x2bf   : > { %v1175_v2 = vpop.xlane.xlu2 %1174  ;;  %v1308_v49 = vadd.f32 %v1292_v17, %v1131_v56 }
 0x2c0   : > { %v1215_v20 = vadd.f32 %v5508_v57, %v1175_v2 }
 0x2c1   : > { %1343 = vperm.xlu0 %4929, %v1308_v49   ;;  %1325 = vst.msk [vmem:[%s5535_s28] sm:$0xff] %vm1324_vm2, %v1308_v49 }
 0x2c2   : > { %v1247_v16 = vsub.f32 0.0, %v1215_v20 }
 0x2c4   : > { %v4988_v5 = vpop.eup %4987  ;;  %v1266_v32 = vmul.f32 1.442695, %v1247_v16 }
 0x2c5   : > { %v1294_v8 = vmul.f32 %v4988_v5, %v1230_v31 }
 0x2c6   : > { %4989 = vpow2.f32 %v1266_v32 }
 0x2c7   : > { %v1094_v33 = vpop.xlane.xlu2 %1093  ;;  %v5877_v24 = vadd.f32 %v1294_v8, %v1133_v26 }
 0x2c8   : > { %v1134_v10 = vadd.f32 %v5516_v62, %v1094_v33 }
 0x2c9   : > { %1327 = vst.msk [vmem:[%s5535_s28 + $0x10] sm:$0xff] %vm1324_vm2, %v5877_v24 }
 0x2ca   : > { %v1231_v38 = vsub.f32 %v5596_v43, %v1134_v10 }
 0x2cc   : > { %v4990_v34 = vpop.eup %4989  ;;  %v1178_v39 = vpop.xlane.xlu1 %1177 }
 0x2cd   : > { %v1295_v50 = vmul.f32 %v4990_v34, %v1231_v38  ;;  %v1216_v48 = vadd.f32 %v5508_v57, %v1178_v39 }
 0x2cf   : > { %v5885_v53 = vadd.f32 %v1295_v50, %v1134_v10  ;;  %v1248_v56 = vsub.f32 0.0, %v1216_v48  ;;  %v1076_v48 = vmul.f32 %v5765_v0, %v1059_v44 }
 0x2d1   : > { %1328 = vst.msk [vmem:[%s5535_s28 + $0x18] sm:$0xff] %vm1324_vm2, %v5885_v53  ;;  %v1268_v11 = vmul.f32 1.442695, %v1248_v56 }
 0x2d3   : > { %4991 = vpow2.f32 %v1268_v11 }
 0x2d4   : > { %v1097_v23 = vpop.xlane.xlu1 %1096  ;;  %v1181_v6 = vpop.xlane.xlu0 %1180 }
 0x2d5   : > { %v1135_v3 = vadd.f32 %v5516_v62, %v1097_v23  ;;  %v1217_v43 = vadd.f32 %v5508_v57, %v1181_v6 }
 0x2d7   : > { %v1232_v12 = vsub.f32 %v5542_v25, %v1135_v3  ;;  %v1249_v60 = vsub.f32 0.0, %v1217_v43 }
 0x2d9   : > { %v4992_v15 = vpop.eup %4991  ;;  %v1270_v17 = vmul.f32 1.442695, %v1249_v60 }
 0x2da   : > { %v1296_v26 = vmul.f32 %v4992_v15, %v1232_v12 }
 0x2db   : > { %4993 = vpow2.f32 %v1270_v17 }
 0x2dc   : > { %v1312_v2 = vadd.f32 %v1296_v26, %v1135_v3  ;;  %v1184_v49 = vpop.xlane.xlu2 %1183  ;;  %v1100_v20 = vpop.xlane.xlu0 %1099  ;;  %v1110_v3 = vsel %vm446_vm0, %v1076_v48, 0.0 }
 0x2dd   : > { %v1218_v16 = vadd.f32 %v5508_v57, %v1184_v49  ;;  %v1136_v31 = vadd.f32 %v5516_v62, %v1100_v20 }
 0x2de   : > { %1329 = vst.msk [vmem:[%s5535_s28 + $0x20] sm:$0xff] %vm1324_vm2, %v1312_v2 }
 0x2df   : > { %v1250_v5 = vsub.f32 0.0, %v1218_v16  ;;  %v1233_v32 = vsub.f32 %v5554_v42, %v1136_v31 }
 0x2e1   : > { %v4994_v8 = vpop.eup %4993  ;;  %v1272_v25 = vmul.f32 1.442695, %v1250_v5 }
 0x2e2   : > { %v1297_v33 = vmul.f32 %v4994_v8, %v1233_v32 }
 0x2e3   : > { %4995 = vpow2.f32 %v1272_v25 }
 0x2e4   : > { %v1313_v10 = vadd.f32 %v1297_v33, %v1136_v31  ;;  %v1187_v38 = vpop.xlane.xlu1 %1186  ;;  %v1103_v34 = vpop.xlane.xlu2 %1102  ;;  %v5924_v31 = vld [vmem:[%s7941_s9] ss:$0 sm:$0xff] }
 0x2e5   : > { %v1219_v39 = vadd.f32 %v5508_v57, %v1187_v38  ;;  %v1137_v50 = vadd.f32 %v5516_v62, %v1103_v34  ;;  %v5910_v62 = vld [vmem:[%s7940_s8] ss:$0 sm:$0xff] }
 0x2e6   : > { %1330 = vst.msk [vmem:[%s5535_s28 + $0x28] sm:$0xff] %vm1324_vm2, %v1313_v10 }
 0x2e7   : > { %v1251_v56 = vsub.f32 0.0, %v1219_v39  ;;  %v1234_v42 = vsub.f32 %v5577_v19, %v1137_v50 }
 0x2e9   : > { %v4996_v11 = vpop.eup %4995  ;;  %v1274_v23 = vmul.f32 1.442695, %v1251_v56 }
 0x2ea   : > { %v1298_v6 = vmul.f32 %v4996_v11, %v1234_v42 }
 0x2eb   : > { %4997 = vpow2.f32 %v1274_v23  ;;  %1111 = vadd.xlane.f32.xlu0 %v1110_v3 }
 0x2ec   : > { %v1314_v57 = vadd.f32 %v1298_v6, %v1137_v50  ;;  %v1106_v43 = vpop.xlane.xlu2 %1105 }
 0x2ed   : > { %v1138_v41 = vadd.f32 %v5910_v62, %v1106_v43 }
 0x2ee   : > { %1331 = vst.msk [vmem:[%s5535_s28 + $0x30] sm:$0xff] %vm1324_vm2, %v1314_v57 }
 0x2ef   : > { %v1235_v19 = vsub.f32 %v5627_v35, %v1138_v41 }
 0x2f1   : > { %v4998_v44 = vpop.eup %4997  ;;  %v1035_v12 = vpop.f32.mrf.mxu1 }
 0x2f2   : > { %v1299_v60 = vmul.f32 %v4998_v44, %v1235_v19  ;;  %v1036_v15 = vadd.f32 %v5828_v27, %v1035_v12 }
 0x2f4   : > { %v1315_v17 = vadd.f32 %v1299_v60, %v1138_v41  ;;  %v1061_v26 = vmax.f32 %v1036_v15, 0.0 }
 0x2f6   : > { %1332 = vst.msk [vmem:[%s5535_s28 + $0x38] sm:$0xff] %vm1324_vm2, %v1315_v17  ;;  %v1159_v49 = vmul.f32 %v5771_v28, %v1061_v26  ;;  %v1078_v3 = vmul.f32 %v5765_v0, %v1061_v26 }
 0x2f8   : > { %v1190_v20 = vpop.xlane.xlu1 %1189  ;;  %v1197_v16 = vsel %vm446_vm0, %v1159_v49, 0.0  ;;  %v1109_v38 = vpop.xlane.xlu2 %1108  ;;  %v1116_v12 = vsel %vm446_vm0, %v1078_v3, 0.0 }
 0x2f9   : > { %v1220_v35 = vadd.f32 %v5924_v31, %v1190_v20  ;;  %1198 = vadd.xlane.f32.xlu2 %v1197_v16  ;;  %v1038_v5 = vpop.f32.mrf.mxu1  ;;  %v1139_v50 = vadd.f32 %v5910_v62, %v1109_v38 }
 0x2fa   : > { %v1039_v32 = vadd.f32 %v5828_v27, %v1038_v5 }
 0x2fb   : > { %v1252_v8 = vsub.f32 0.0, %v1220_v35  ;;  %v1236_v23 = vsub.f32 %v5570_v4, %v1139_v50 }
 0x2fc   : > { %v1062_v25 = vmax.f32 %v1039_v32, 0.0 }
 0x2fd   : > { %v1276_v33 = vmul.f32 1.442695, %v1252_v8 }
 0x2fe   : > { %v1160_v34 = vmul.f32 %v5771_v28, %v1062_v25  ;;  %v1079_v39 = vmul.f32 %v5765_v0, %v1062_v25 }
 0x2ff   : > { %4999 = vpow2.f32 %v1276_v33  ;;  %1363 = vperm.xlu0 %4929, %v1312_v2  }
 0x300   : > { %v1200_v48 = vsel %vm446_vm0, %v1160_v34, 0.0  ;;  %v1119_v56 = vsel %vm446_vm0, %v1079_v39, 0.0 }
 0x301   : > { %v1041_v42 = vpop.f32.mrf.mxu1  ;;  %1201 = vadd.xlane.f32.xlu1 %v1200_v48  ;;  %1120 = vadd.xlane.f32.xlu2 %v1119_v56 }
 0x302   : > { %v1042_v11 = vadd.f32 %v5828_v27, %v1041_v42 }
 0x304   : > { %v1063_v6 = vmax.f32 %v1042_v11, 0.0 }
 0x305   : > { %v5000_v43 = vpop.eup %4999 }
 0x306   : > { %v1300_v41 = vmul.f32 %v5000_v43, %v1236_v23  ;;  %v1080_v2 = vmul.f32 %v5765_v0, %v1063_v6  ;;  %v1161_v20 = vmul.f32 %v5771_v28, %v1063_v6 }
 0x307   : > { %1368 = vperm.xlu0 %4929, %v1313_v10  }
 0x308   : > { %v1316_v19 = vadd.f32 %v1300_v41, %v1139_v50  ;;  %v1196_v44 = vpop.xlane.xlu1 %1195  ;;  %v1122_v60 = vsel %vm446_vm0, %v1080_v2, 0.0  ;;  %v1203_v5 = vsel %vm446_vm0, %v1161_v20, 0.0 }
 0x309   : > { %v1222_v15 = vadd.f32 %v5924_v31, %v1196_v44  ;;  %v1044_v49 = vpop.f32.mrf.mxu1  ;;  %1117 = vadd.xlane.f32.xlu1 %v1116_v12  ;;  %1123 = vadd.xlane.f32.xlu2 %v1122_v60 }
 0x30a   : > { %1333 = vst.msk [vmem:[%s5535_s28 + $0x40] sm:$0xff] %vm1324_vm2, %v1316_v19  ;;  %v1045_v26 = vadd.f32 %v5828_v27, %v1044_v49 }
 0x30b   : > { %v1254_v4 = vsub.f32 0.0, %v1222_v15 }
 0x30c   : > { %v1064_v10 = vmax.f32 %v1045_v26, 0.0 }
 0x30d   : > { %v1280_v16 = vmul.f32 1.442695, %v1254_v4 }
 0x30e   : > { %v1162_v38 = vmul.f32 %v5771_v28, %v1064_v10  ;;  %v1081_v6 = vmul.f32 %v5765_v0, %v1064_v10 }
 0x30f   : > { %5001 = vpow2.f32 %v1280_v16  ;;  %1373 = vperm.xlu0 %4929, %v1314_v57  }
 0x310   : > { %v1115_v35 = vpop.xlane.xlu1 %1114  ;;  %v1206_v48 = vsel %vm446_vm0, %v1162_v38, 0.0 }
 0x311   : > { %v1141_v32 = vadd.f32 %v5910_v62, %v1115_v35  ;;  %v1047_v8 = vpop.f32.mrf.mxu1  ;;  %1204 = vadd.xlane.f32.xlu1 %v1203_v5 }
 0x312   : > { %v1048_v33 = vadd.f32 %v5828_v27, %v1047_v8 }
 0x313   : > { %v1238_v25 = vsub.f32 %v5613_v9, %v1141_v32  ;;  %v5957_v9 = vperm.slane %v5647_v55, 1  ;;  %v1125_v55 = vsel %vm446_vm0, %v1081_v6, 0.0 }
 0x314   : > { %v1065_v57 = vmax.f32 %v1048_v33, 0.0 }
 0x315   : > { %v5002_v34 = vpop.eup %5001 }
 0x316   : > { %v1302_v39 = vmul.f32 %v5002_v34, %v1238_v25  ;;  %v1163_v56 = vmul.f32 %v5771_v28, %v1065_v57  ;;  %v1082_v2 = vmul.f32 %v5765_v0, %v1065_v57 }
 0x317   : > { %1378 = vperm.xlu0 %4929, %v1315_v17  }
 0x318   : > { %v1318_v50 = vadd.f32 %v1302_v39, %v1141_v32  ;;  %v1209_v42 = vsel %vm446_vm0, %v1163_v56, 0.0  ;;  %v1128_v60 = vsel %vm446_vm0, %v1082_v2, 0.0 }
 0x319   : > { %1207 = vadd.xlane.f32.xlu1 %v1206_v48 }
 0x31a   : > { %1335 = vst.msk [vmem:[%s5535_s28 + $0x50] sm:$0xff] %vm1324_vm2, %v1318_v50 }
 0x31f   : > { %1383 = vperm.xlu0 %4929, %v1316_v19  }
 0x321   : > { %1210 = vadd.xlane.f32.xlu1 %v1209_v42  ;;  %1353 = vperm.xlu2 %4931, %v5877_v24   ;;  %v1193_v24 = vpop.xlane.xlu2 %1192 }
 0x327   : > { %1393 = vperm.xlu0 %4929, %v1318_v50  }
 0x329   : > { %1358 = vperm.xlu2 %4931, %v5885_v53   ;;  %v1221_v53 = vadd.f32 %v5924_v31, %v1193_v24 }
 0x32b   : > { %v1253_v3 = vsub.f32 0.0, %v1221_v53 }
 0x32d   : > { %v1278_v43 = vmul.f32 1.442695, %v1253_v3 }
 0x32f   : > { %5003 = vpow2.f32 %v1278_v43 }
 0x333   : > { %v1344_v17 = vpop.permute.xlu0 %1343 }
 0x334   : > { %v1422_v11 = vmul.f32 %v5957_v9, %v1344_v17 }
 0x335   : > { %v5004_v44 = vpop.eup %5003 }
 0x336   : > { %v5961_v23 = vadd.f32 %v1422_v11, %v5658_v1 }
 0x338   : > { %v1454_v28 = vmax.f32 %v5961_v23, 0.0 }
 0x33a   : > { %1348 = vperm.xlu1 %4930, %v5863_v7   ;;  %4785 = vmatmul.msk.f32.vlgmr.msrb.gmra.mxu2 %vm446_vm0, %v1454_v28  ;;  %v5972_v7 = vld [vmem:[%s5522_s25 + $0x48] sm:$0xff] }
 0x352   : > { %1126 = vadd.xlane.f32.xlu2 %v1125_v55 }
 0x35e   : > { %v1112_v1 = vpop.xlane.xlu0 %1111 }
 0x35f   : > { %v1140_v41 = vadd.f32 %v5910_v62, %v1112_v1 }
 0x361   : > { %v1237_v19 = vsub.f32 %v5972_v7, %v1140_v41 }
 0x363   : > { %v1301_v12 = vmul.f32 %v5004_v44, %v1237_v19 }
 0x364   : > { %1129 = vadd.xlane.f32.xlu1 %v1128_v60 }
 0x365   : > { %v1317_v15 = vadd.f32 %v1301_v12, %v1140_v41 }
 0x367   : > { %1334 = vst.msk [vmem:[%s5535_s28 + $0x48] sm:$0xff] %vm1324_vm2, %v1317_v15 }
 0x36a   : > { %1388 = vperm.xlu2 %4931, %v1317_v15  }
 0x36c   : > { %v1199_v49 = vpop.xlane.xlu2 %1198 }
 0x36d   : > { %v1223_v4 = vadd.f32 %v5924_v31, %v1199_v49 }
 0x36f   : > { %v1255_v26 = vsub.f32 0.0, %v1223_v4 }
 0x371   : > { %v1282_v16 = vmul.f32 1.442695, %v1255_v26  ;;  %v1364_v60 = vpop.permute.xlu0 %1363 }
 0x373   : > { %5005 = vpow2.f32 %v1282_v16 }
 0x374   : > { %v1202_v20 = vpop.xlane.xlu1 %1201  ;;  %v1121_v5 = vpop.xlane.xlu2 %1120 }
 0x375   : > { %v1224_v0 = vadd.f32 %v5924_v31, %v1202_v20  ;;  %v1143_v32 = vadd.f32 %v5910_v62, %v1121_v5 }
 0x377   : > { %v1256_v10 = vsub.f32 0.0, %v1224_v0  ;;  %v1240_v34 = vsub.f32 %v5697_v63, %v1143_v32 }
 0x379   : > { %v1284_v35 = vmul.f32 1.442695, %v1256_v10  ;;  %v5006_v38 = vpop.eup %5005  ;;  %v1369_v16 = vpop.permute.xlu0 %1368  ;;  %v1426_v10 = vmul.f32 %v5957_v9, %v1364_v60 }
 0x37b   : > { %5007 = vpow2.f32 %v1284_v35  ;;  %v6014_v35 = vadd.f32 %v1426_v10, %v5705_v54 }
 0x37c   : > { %v1118_v8 = vpop.xlane.xlu1 %1117 }
 0x37d   : > { %v1142_v25 = vadd.f32 %v5910_v62, %v1118_v8 }
 0x37f   : > { %v1239_v33 = vsub.f32 %v5674_v18, %v1142_v25  ;;  %v1124_v18 = vpop.xlane.xlu2 %1123 }
 0x380   : > { %v1144_v63 = vadd.f32 %v5910_v62, %v1124_v18 }
 0x381   : > { %v5008_v39 = vpop.eup %5007  ;;  %v1303_v50 = vmul.f32 %v5006_v38, %v1239_v33  ;;  %v1458_v38 = vmax.f32 %v6014_v35, 0.0 }
 0x382   : > { %v1304_v57 = vmul.f32 %v5008_v39, %v1240_v34  ;;  %v1241_v24 = vsub.f32 %v5633_v45, %v1144_v63  ;;  %v1374_v34 = vpop.permute.xlu0 %1373 }
 0x383   : > { %v1319_v48 = vadd.f32 %v1303_v50, %v1142_v25  ;;  %v1427_v25 = vmul.f32 %v5957_v9, %v1369_v16 }
 0x384   : > { %v1320_v56 = vadd.f32 %v1304_v57, %v1143_v32  ;;  %v1205_v42 = vpop.xlane.xlu1 %1204 }
 0x385   : > { %1336 = vst.msk [vmem:[%s5535_s28 + $0x58] sm:$0xff] %vm1324_vm2, %v1319_v48  ;;  %v1225_v17 = vadd.f32 %v5924_v31, %v1205_v42  ;;  %1398 = vperm.xlu1 %4930, %v1319_v48   ;;  %v6023_v54 = vadd.f32 %v1427_v25, %v5711_v58 }
 0x386   : > { %1337 = vst.msk [vmem:[%s5535_s28 + $0x60] sm:$0xff] %vm1324_vm2, %v1320_v56  ;;  %1403 = vperm.xlu0 %4929, %v1320_v56  }
 0x387   : > { %v1257_v11 = vsub.f32 0.0, %v1225_v17  ;;  %v1354_v1 = vpop.permute.xlu2 %1353  ;;  %v1459_v56 = vmax.f32 %v6023_v54, 0.0 }
 0x388   : > { %v1424_v44 = vmul.f32 %v5957_v9, %v1354_v1 }
 0x389   : > { %v1286_v28 = vmul.f32 1.442695, %v1257_v11 }
 0x38a   : > { %v6001_v45 = vadd.f32 %v1424_v44, %v5679_v30  ;;  %v1379_v42 = vpop.permute.xlu0 %1378 }
 0x38b   : > { %5009 = vpow2.f32 %v1286_v28  ;;  %v1429_v18 = vmul.f32 %v5957_v9, %v1379_v42 }
 0x38c   : > { %v1208_v3 = vpop.xlane.xlu1 %1207  ;;  %v1456_v26 = vmax.f32 %v6001_v45, 0.0 }
 0x38d   : > { %v1226_v49 = vadd.f32 %v5924_v31, %v1208_v3 }
 0x38f   : > { %v1359_v15 = vpop.permute.xlu2 %1358  ;;  %v1258_v20 = vsub.f32 0.0, %v1226_v49 }
 0x390   : > { %v1425_v4 = vmul.f32 %v5957_v9, %v1359_v15 }
 0x391   : > { %v5010_v6 = vpop.eup %5009  ;;  %v1288_v0 = vmul.f32 1.442695, %v1258_v20 }
 0x392   : > { %v1305_v53 = vmul.f32 %v5010_v6, %v1241_v24 }
 0x393   : > { %5011 = vpow2.f32 %v1288_v0 }
 0x394   : > { %v1321_v55 = vadd.f32 %v1305_v53, %v1144_v63  ;;  %v1211_v43 = vpop.xlane.xlu1 %1210  ;;  %v6039_v53 = vadd.f32 %v1429_v18, %v5723_v52 }
 0x395   : > { %v1227_v33 = vadd.f32 %v5924_v31, %v1211_v43 }
 0x396   : > { %1338 = vst.msk [vmem:[%s5535_s28 + $0x68] sm:$0xff] %vm1324_vm2, %v1321_v55  ;;  %1408 = vperm.xlu0 %4929, %v1321_v55   ;;  %v1384_v55 = vpop.permute.xlu0 %1383  ;;  %v1461_v43 = vmax.f32 %v6039_v53, 0.0 }
 0x397   : > { %v1259_v57 = vsub.f32 0.0, %v1227_v33  ;;  %v1430_v3 = vmul.f32 %v5957_v9, %v1384_v55 }
 0x399   : > { %v1290_v48 = vmul.f32 1.442695, %v1259_v57 }
 0x39b   : > { %5013 = vpow2.f32 %v1290_v48 }
 0x39e   : > { %v1394_v60 = vpop.permute.xlu0 %1393 }
 0x3ac   : > { %v1349_v41 = vpop.permute.xlu1 %1348 }
 0x3ad   : > { %v1423_v2 = vmul.f32 %v5957_v9, %v1349_v41 }
 0x3af   : > { %v5995_v19 = vadd.f32 %v1423_v2, %v5668_v14  ;;  %v6008_v14 = vadd.f32 %v1425_v4, %v5692_v36  ;;  %v5012_v36 = vpop.eup %5011  ;;  %v1432_v4 = vmul.f32 %v5957_v9, %v1394_v60 }
 0x3b0   : > { %v5014_v24 = vpop.eup %5013 }
 0x3b1   : > { %v1455_v12 = vmax.f32 %v5995_v19, 0.0  ;;  %v1457_v30 = vmax.f32 %v6008_v14, 0.0 }
 0x3b3   : > { %4786 = vmatmul.msk.f32.gmra.mxu2 %vm446_vm0, %v1455_v12 }
 0x3bb   : > { %4787 = vmatmul.msk.f32.gmra.mxu2 %vm446_vm0, %v1456_v26 }
 0x3bd   : > { %v1535_v41 = vpop.f32.mrf.mxu2 }
 0x3be   : > { %v1536_v44 = vadd.f32 %v5828_v27, %v1535_v41 }
 0x3c0   : > { %v1583_v15 = vmax.f32 %v1536_v44, 0.0 }
 0x3c3   : > { %4788 = vmatmul.msk.f32.gmra.mxu2 %vm446_vm0, %v1457_v30 }
 0x3c5   : > { %v1127_v5 = vpop.xlane.xlu2 %1126 }
 0x3c6   : > { %v1145_v32 = vadd.f32 %v5910_v62, %v1127_v5 }
 0x3c8   : > { %v1242_v8 = vsub.f32 %v5746_v47, %v1145_v32  ;;  %v1428_v47 = vmul.f32 %v5957_v9, %v1374_v34 }
 0x3ca   : > { %v1306_v39 = vmul.f32 %v5012_v36, %v1242_v8  ;;  %v6031_v17 = vadd.f32 %v1428_v47, %v5717_v21 }
 0x3cb   : > { %4789 = vmatmul.msk.f32.gmra.mxu2 %vm446_vm0, %v1458_v38 }
 0x3cc   : > { %v1322_v50 = vadd.f32 %v1306_v39, %v1145_v32  ;;  %v1460_v28 = vmax.f32 %v6031_v17, 0.0 }
 0x3cd   : > { %v1389_v1 = vpop.permute.xlu2 %1388 }
 0x3ce   : > { %1339 = vst.msk [vmem:[%s5535_s28 + $0x70] sm:$0xff] %vm1324_vm2, %v1322_v50  ;;  %1413 = vperm.xlu2 %4931, %v1322_v50   ;;  %v1431_v2 = vmul.f32 %v5957_v9, %v1389_v1 }
 0x3d0   : > { %v6054_v12 = vadd.f32 %v1431_v2, %v5743_v46  ;;  %v6069_v46 = vadd.f32 %v1432_v4, %v5756_v51  ;;  %v6083_v51 = vld [vmem:[%s7937_s5] sm:$0xff] }
 0x3d1   : > { %v6086_v25 = vperm.slane %v6083_v51, 2 }
 0x3d2   : > { %v1463_v26 = vmax.f32 %v6054_v12, 0.0  ;;  %v1464_v30 = vmax.f32 %v6069_v46, 0.0 }
 0x3d3   : > { %4790 = vmatmul.msk.f32.gmra.mxu2 %vm446_vm0, %v1459_v56 }
 0x3d7   : > { %v1130_v11 = vpop.xlane.xlu1 %1129 }
 0x3d8   : > { %v1146_v58 = vadd.f32 %v5910_v62, %v1130_v11 }
 0x3da   : > { %v1243_v63 = vsub.f32 %v5732_v29, %v1146_v58  ;;  %v6047_v29 = vadd.f32 %v1430_v3, %v5737_v37  ;;  %v6059_v37 = vld [vmem:[%s7938_s6] sm:$0xff] }
 0x3db   : > { %4791 = vmatmul.msk.f32.gmra.mxu2 %vm446_vm0, %v1460_v28  ;;  %v6062_v49 = vperm.slane %v6059_v37, 2 }
 0x3dc   : > { %v1307_v6 = vmul.f32 %v5014_v24, %v1243_v63  ;;  %v1462_v52 = vmax.f32 %v6047_v29, 0.0 }
 0x3dd   : > { %v1681_v20 = vmul.f32 %v6062_v49, %v1583_v15 }
 0x3de   : > { %v1323_v21 = vadd.f32 %v1307_v6, %v1146_v58 }
 0x3df   : > { %v1697_v0 = vsel %vm446_vm0, %v1681_v20, 0.0 }
 0x3e0   : > { %1340 = vst.msk [vmem:[%s5535_s28 + $0x78] sm:$0xff] %vm1324_vm2, %v1323_v21  ;;  %1418 = vperm.xlu0 %4929, %v1323_v21  }
 0x3e3   : > { %4792 = vmatmul.msk.f32.gmra.mxu2 %vm446_vm0, %v1461_v43 }
 0x3eb   : > { %4793 = vmatmul.msk.f32.gmra.mxu2 %vm446_vm0, %v1462_v52 }
 0x3f3   : > { %4794 = vmatmul.msk.f32.gmra.mxu2 %vm446_vm0, %v1463_v26 }
 0x3f7   : > { %v1399_v16 = vpop.permute.xlu1 %1398  ;;  %1698 = vadd.xlane.f32.xlu2 %v1697_v0 }
 0x3f8   : > { %v1433_v10 = vmul.f32 %v5957_v9, %v1399_v16  ;;  %v1404_v32 = vpop.permute.xlu0 %1403 }
 0x3f9   : > { %v1434_v8 = vmul.f32 %v5957_v9, %v1404_v32 }
 0x3fa   : > { %v6076_v5 = vadd.f32 %v1433_v10, %v5809_v59  ;;  %v1600_v59 = vmul.f32 %v6086_v25, %v1583_v15 }
 0x3fb   : > { %4795 = vmatmul.msk.f32.gmra.mxu2 %vm446_vm0, %v1464_v30  ;;  %v6090_v33 = vadd.f32 %v1434_v8, %v5817_v13 }
 0x3fc   : > { %v1465_v36 = vmax.f32 %v6076_v5, 0.0  ;;  %v1616_v39 = vsel %vm446_vm0, %v1600_v59, 0.0 }
 0x3fd   : > { %v1466_v50 = vmax.f32 %v6090_v33, 0.0 }
 0x403   : > { %4796 = vmatmul.msk.f32.gmra.mxu2 %vm446_vm0, %v1465_v36 }
 0x408   : > { %v1409_v38 = vpop.permute.xlu0 %1408 }
 0x409   : > { %v1435_v34 = vmul.f32 %v5957_v9, %v1409_v38 }
 0x40a   : > { %1617 = vadd.xlane.f32.xlu0 %v1616_v39 }
 0x40b   : > { %4797 = vmatmul.msk.f32.gmra.mxu2 %vm446_vm0, %v1466_v50  ;;  %v6098_v57 = vadd.f32 %v1435_v34, %v5823_v22 }
 0x40d   : > { %v1467_v47 = vmax.f32 %v6098_v57, 0.0 }
 0x413   : > { %4798 = vmatmul.msk.f32.gmra.mxu2 %vm446_vm0, %v1467_v47 }
 0x428   : > { %v1414_v13 = vpop.permute.xlu2 %1413 }
 0x429   : > { %v1436_v48 = vmul.f32 %v5957_v9, %v1414_v13 }
 0x42b   : > { %v6104_v56 = vadd.f32 %v1436_v48, %v5838_v40 }
 0x42d   : > { %v1468_v42 = vmax.f32 %v6104_v56, 0.0 }
 0x42f   : > { %4799 = vmatmul.msk.f32.gmra.mxu2 %vm446_vm0, %v1468_v42 }
 0x436   : > { %v1538_v11 = vpop.f32.mrf.mxu2 }
 0x437   : > { %v1539_v58 = vadd.f32 %v5828_v27, %v1538_v11 }
 0x439   : > { %v1584_v18 = vmax.f32 %v1539_v58, 0.0 }
 0x43b   : > { %v1682_v22 = vmul.f32 %v6062_v49, %v1584_v18  ;;  %v1601_v40 = vmul.f32 %v6086_v25, %v1584_v18 }
 0x43d   : > { %v1700_v28 = vsel %vm446_vm0, %v1682_v22, 0.0  ;;  %v1619_v21 = vsel %vm446_vm0, %v1601_v40, 0.0 }
 0x43e   : > { %v1541_v63 = vpop.f32.mrf.mxu2  ;;  %1701 = vadd.xlane.f32.xlu1 %v1700_v28 }
 0x43f   : > { %v1542_v24 = vadd.f32 %v5828_v27, %v1541_v63 }
 0x441   : > { %v1585_v6 = vmax.f32 %v1542_v24, 0.0 }
 0x443   : > { %v1683_v55 = vmul.f32 %v6062_v49, %v1585_v6  ;;  %v1602_v2 = vmul.f32 %v6086_v25, %v1585_v6 }
 0x445   : > { %v1703_v3 = vsel %vm446_vm0, %v1683_v55, 0.0  ;;  %v1622_v60 = vsel %vm446_vm0, %v1602_v2, 0.0 }
 0x446   : > { %v1544_v43 = vpop.f32.mrf.mxu2  ;;  %1620 = vadd.xlane.f32.xlu1 %v1619_v21  ;;  %1704 = vadd.xlane.f32.xlu2 %v1703_v3 }
 0x447   : > { %v1545_v1 = vadd.f32 %v5828_v27, %v1544_v43 }
 0x449   : > { %v1586_v41 = vmax.f32 %v1545_v1, 0.0 }
 0x44b   : > { %v1684_v52 = vmul.f32 %v6062_v49, %v1586_v41  ;;  %v1603_v20 = vmul.f32 %v6086_v25, %v1586_v41 }
 0x44d   : > { %v1706_v44 = vsel %vm446_vm0, %v1684_v52, 0.0  ;;  %v1625_v32 = vsel %vm446_vm0, %v1603_v20, 0.0 }
 0x44e   : > { %1707 = vadd.xlane.f32.xlu0 %v1706_v44  ;;  %1623 = vadd.xlane.f32.xlu2 %v1622_v60  ;;  %v1547_v15 = vpop.f32.mrf.mxu2 }
 0x44f   : > { %v1548_v4 = vadd.f32 %v5828_v27, %v1547_v15 }
 0x451   : > { %v1587_v26 = vmax.f32 %v1548_v4, 0.0 }
 0x452   : > { %v1419_v0 = vpop.permute.xlu0 %1418 }
 0x453   : > { %v1437_v16 = vmul.f32 %v5957_v9, %v1419_v0  ;;  %v1685_v10 = vmul.f32 %v6062_v49, %v1587_v26  ;;  %v1604_v9 = vmul.f32 %v6086_v25, %v1587_v26 }
 0x455   : > { %v6126_v30 = vadd.f32 %v1437_v16, %v5851_v61  ;;  %v1709_v8 = vsel %vm446_vm0, %v1685_v10, 0.0  ;;  %v1628_v61 = vsel %vm446_vm0, %v1604_v9, 0.0  ;;  %v6161_v9 = vld [vmem:[%s5522_s25] sm:$0xff] }
 0x456   : > { %1626 = vadd.xlane.f32.xlu0 %v1625_v32  ;;  %1710 = vadd.xlane.f32.xlu1 %v1709_v8  ;;  %v1550_v36 = vpop.f32.mrf.mxu2 }
 0x457   : > { %v1551_v59 = vadd.f32 %v5828_v27, %v1550_v36  ;;  %v1469_v38 = vmax.f32 %v6126_v30, 0.0 }
 0x459   : > { %v1588_v34 = vmax.f32 %v1551_v59, 0.0  ;;  %4800 = vmatmul.msk.f32.gmra.mxu2 %vm446_vm0, %v1469_v38 }
 0x45b   : > { %v1686_v39 = vmul.f32 %v6062_v49, %v1588_v34  ;;  %v1605_v42 = vmul.f32 %v6086_v25, %v1588_v34 }
 0x45d   : > { %v1712_v50 = vsel %vm446_vm0, %v1686_v39, 0.0  ;;  %v1631_v58 = vsel %vm446_vm0, %v1605_v42, 0.0 }
 0x45e   : > { %1629 = vadd.xlane.f32.xlu1 %v1628_v61  ;;  %1713 = vadd.xlane.f32.xlu2 %v1712_v50  ;;  %v1553_v47 = vpop.f32.mrf.mxu2 }
 0x45f   : > { %v1554_v13 = vadd.f32 %v5828_v27, %v1553_v47 }
 0x461   : > { %v1589_v48 = vmax.f32 %v1554_v13, 0.0 }
 0x463   : > { %v1687_v11 = vmul.f32 %v6062_v49, %v1589_v48  ;;  %v1606_v24 = vmul.f32 %v6086_v25, %v1589_v48 }
 0x465   : > { %v1715_v18 = vsel %vm446_vm0, %v1687_v11, 0.0  ;;  %v1634_v55 = vsel %vm446_vm0, %v1606_v24, 0.0 }
 0x466   : > { %1632 = vadd.xlane.f32.xlu2 %v1631_v58  ;;  %1716 = vadd.xlane.f32.xlu0 %v1715_v18  ;;  %v1556_v22 = vpop.f32.mrf.mxu2 }
 0x467   : > { %v1557_v28 = vadd.f32 %v5828_v27, %v1556_v22 }
 0x469   : > { %v1590_v63 = vmax.f32 %v1557_v28, 0.0 }
 0x46a   : > { %v1699_v40 = vpop.xlane.xlu2 %1698 }
 0x46b   : > { %v1688_v6 = vmul.f32 %v6062_v49, %v1590_v63  ;;  %v1745_v43 = vadd.f32 %v5924_v31, %v1699_v40  ;;  %v1607_v2 = vmul.f32 %v6086_v25, %v1590_v63 }
 0x46d   : > { %v1718_v21 = vsel %vm446_vm0, %v1688_v6, 0.0  ;;  %v1777_v52 = vsub.f32 0.0, %v1745_v43  ;;  %v1637_v60 = vsel %vm446_vm0, %v1607_v2, 0.0 }
 0x46e   : > { %1635 = vadd.xlane.f32.xlu0 %v1634_v55  ;;  %1719 = vadd.xlane.f32.xlu1 %v1718_v21  ;;  %v1559_v3 = vpop.f32.mrf.mxu2 }
 0x46f   : > { %v1560_v1 = vadd.f32 %v5828_v27, %v1559_v3  ;;  %v1793_v26 = vmul.f32 1.442695, %v1777_v52 }
 0x471   : > { %v1591_v41 = vmax.f32 %v1560_v1, 0.0  ;;  %5015 = vpow2.f32 %v1793_v26 }
 0x473   : > { %v1689_v44 = vmul.f32 %v6062_v49, %v1591_v41  ;;  %v1608_v16 = vmul.f32 %v6086_v25, %v1591_v41 }
 0x475   : > { %v1721_v15 = vsel %vm446_vm0, %v1689_v44, 0.0  ;;  %v1640_v36 = vsel %vm446_vm0, %v1608_v16, 0.0 }
 0x476   : > { %1638 = vadd.xlane.f32.xlu0 %v1637_v60  ;;  %v1562_v4 = vpop.f32.mrf.mxu2  ;;  %1722 = vadd.xlane.f32.xlu1 %v1721_v15 }
 0x477   : > { %v1563_v20 = vadd.f32 %v5828_v27, %v1562_v4  ;;  %v5016_v61 = vpop.eup %5015 }
 0x479   : > { %v1592_v0 = vmax.f32 %v1563_v20, 0.0 }
 0x47b   : > { %v1609_v10 = vmul.f32 %v6086_v25, %v1592_v0  ;;  %v1690_v47 = vmul.f32 %v6062_v49, %v1592_v0  ;;  %v5294_v0 = vmov 2  }
 0x47c   : > { %4932 = vset.pattern.permute.xlu2 %v5294_v0  ;;  %4933 = vset.pattern.permute.xlu1 %v5294_v0 }
 0x47d   : > { %v1618_v32 = vpop.xlane.xlu0 %1617  ;;  %v1643_v8 = vsel %vm446_vm0, %v1609_v10, 0.0  ;;  %v1724_v11 = vsel %vm446_vm0, %v1690_v47, 0.0  ;;  %4934 = vset.pattern.permute.xlu0 %v5294_v0  ;;  %v6220_v0 = vld [vmem:[%s5522_s25 + $0x18] sm:$0xff] }
 0x47e   : > { %v1664_v59 = vadd.f32 %v5910_v62, %v1618_v32  ;;  %1644 = vadd.xlane.f32.xlu2 %v1643_v8  ;;  %1641 = vadd.xlane.f32.xlu0 %v1640_v36  ;;  %v1565_v38 = vpop.f32.mrf.mxu2  ;;  %v6191_v36 = vld [vmem:[%s7936_s4] ss:$0 sm:$0xff] }
 0x47f   : > { %v1566_v34 = vadd.f32 %v5828_v27, %v1565_v38 }
 0x480   : > { %v1761_v39 = vsub.f32 %v6161_v9, %v1664_v59 }
 0x481   : > { %v1593_v50 = vmax.f32 %v1566_v34, 0.0 }
 0x482   : > { %v1825_v13 = vmul.f32 %v5016_v61, %v1761_v39 }
 0x483   : > { %v1610_v48 = vmul.f32 %v6086_v25, %v1593_v50  ;;  %v1691_v63 = vmul.f32 %v6062_v49, %v1593_v50 }
 0x484   : > { %v1841_v42 = vadd.f32 %v1825_v13, %v1664_v59 }
 0x485   : > { %v1646_v58 = vsel %vm446_vm0, %v1610_v48, 0.0  ;;  %v1727_v40 = vsel %vm446_vm0, %v1691_v63, 0.0 }
 0x486   : > { %1858 = vst.msk [vmem:[%s5535_s28] sm:$0xff] %vm1857_vm3, %v1841_v42  ;;  %1725 = vadd.xlane.f32.xlu0 %v1724_v11  ;;  %v1568_v18 = vpop.f32.mrf.mxu2  ;;  %1647 = vadd.xlane.f32.xlu1 %v1646_v58  ;;  %v6204_v58 = vld [vmem:[%s5522_s25 + $0x8] sm:$0xff] }
 0x487   : > { %v1569_v22 = vadd.f32 %v5828_v27, %v1568_v18 }
 0x489   : > { %v1594_v28 = vmax.f32 %v1569_v22, 0.0 }
 0x48b   : > { %v1611_v24 = vmul.f32 %v6086_v25, %v1594_v28  ;;  %v1692_v43 = vmul.f32 %v6062_v49, %v1594_v28 }
 0x48d   : > { %v1649_v6 = vsel %vm446_vm0, %v1611_v24, 0.0  ;;  %v1730_v41 = vsel %vm446_vm0, %v1692_v43, 0.0  ;;  %v6212_v43 = vld [vmem:[%s5522_s25 + $0x10] sm:$0xff] }
 0x48e   : > { %1650 = vadd.xlane.f32.xlu2 %v1649_v6  ;;  %1728 = vadd.xlane.f32.xlu0 %v1727_v40  ;;  %v1571_v55 = vpop.f32.mrf.mxu2 }
 0x48f   : > { %v1572_v21 = vadd.f32 %v5828_v27, %v1571_v55 }
 0x491   : > { %v1595_v3 = vmax.f32 %v1572_v21, 0.0 }
 0x493   : > { %v1693_v1 = vmul.f32 %v6062_v49, %v1595_v3  ;;  %v1612_v15 = vmul.f32 %v6086_v25, %v1595_v3 }
 0x495   : > { %v1733_v2 = vsel %vm446_vm0, %v1693_v1, 0.0  ;;  %v1652_v26 = vsel %vm446_vm0, %v1612_v15, 0.0 }
 0x496   : > { %1731 = vadd.xlane.f32.xlu0 %v1730_v41  ;;  %1734 = vadd.xlane.f32.xlu2 %v1733_v2  ;;  %v1574_v52 = vpop.f32.mrf.mxu2 }
 0x497   : > { %v1575_v44 = vadd.f32 %v5828_v27, %v1574_v52 }
 0x499   : > { %v1596_v60 = vmax.f32 %v1575_v44, 0.0 }
 0x49b   : > { %v1694_v4 = vmul.f32 %v6062_v49, %v1596_v60  ;;  %v1613_v16 = vmul.f32 %v6086_v25, %v1596_v60 }
 0x49d   : > { %v1736_v20 = vsel %vm446_vm0, %v1694_v4, 0.0  ;;  %v1655_v10 = vsel %vm446_vm0, %v1613_v16, 0.0 }
 0x49e   : > { %1653 = vadd.xlane.f32.xlu2 %v1652_v26  ;;  %1737 = vadd.xlane.f32.xlu0 %v1736_v20 }
 0x4a6   : > { %1656 = vadd.xlane.f32.xlu2 %v1655_v10 }
 0x4b1   : > { %v1702_v27 = vpop.xlane.xlu1 %1701 }
 0x4b2   : > { %v1746_v32 = vadd.f32 %v5924_v31, %v1702_v27  ;;  %v1577_v8 = vpop.f32.mrf.mxu2 }
 0x4b3   : > { %v6194_v59 = vadd.f32 %v6191_v36, %v1577_v8 }
 0x4b4   : > { %v1778_v38 = vsub.f32 0.0, %v1746_v32 }
 0x4b5   : > { %v1597_v34 = vmax.f32 %v6194_v59, 0.0 }
 0x4b6   : > { %v1795_v39 = vmul.f32 1.442695, %v1778_v38 }
 0x4b7   : > { %v1695_v61 = vmul.f32 %v6062_v49, %v1597_v34 }
 0x4b8   : > { %5017 = vpow2.f32 %v1795_v39 }
 0x4b9   : > { %v1621_v50 = vpop.xlane.xlu1 %1620  ;;  %v1705_v47 = vpop.xlane.xlu2 %1704  ;;  %v1739_v13 = vsel %vm446_vm0, %v1695_v61, 0.0 }
 0x4ba   : > { %v1665_v48 = vadd.f32 %v5910_v62, %v1621_v50  ;;  %v1747_v11 = vadd.f32 %v5924_v31, %v1705_v47  ;;  %1740 = vadd.xlane.f32.xlu1 %v1739_v13  ;;  %v6231_v47 = vld [vmem:[%s5522_s25 + $0x20] sm:$0xff] }
 0x4bc   : > { %v1762_v18 = vsub.f32 %v6204_v58, %v1665_v48  ;;  %v1779_v22 = vsub.f32 0.0, %v1747_v11 }
 0x4be   : > { %v5018_v28 = vpop.eup %5017  ;;  %v1797_v63 = vmul.f32 1.442695, %v1779_v22  ;;  %1876 = vperm.xlu2 %4932, %v1841_v42  }
 0x4bf   : > { %v1826_v24 = vmul.f32 %v5018_v28, %v1762_v18 }
 0x4c0   : > { %5019 = vpow2.f32 %v1797_v63 }
 0x4c1   : > { %v1842_v6 = vadd.f32 %v1826_v24, %v1665_v48  ;;  %v1624_v40 = vpop.xlane.xlu2 %1623  ;;  %v1708_v55 = vpop.xlane.xlu0 %1707 }
 0x4c2   : > { %v1666_v21 = vadd.f32 %v5910_v62, %v1624_v40  ;;  %v1748_v3 = vadd.f32 %v5924_v31, %v1708_v55 }
 0x4c3   : > { %1859 = vst.msk [vmem:[%s5535_s28 + $0x8] sm:$0xff] %vm1857_vm3, %v1842_v6 }
 0x4c4   : > { %v1763_v1 = vsub.f32 %v6212_v43, %v1666_v21  ;;  %v1780_v41 = vsub.f32 0.0, %v1748_v3 }
 0x4c6   : > { %v5020_v2 = vpop.eup %5019  ;;  %v1799_v42 = vmul.f32 1.442695, %v1780_v41 }
 0x4c7   : > { %v1827_v52 = vmul.f32 %v5020_v2, %v1763_v1 }
 0x4c8   : > { %5021 = vpow2.f32 %v1799_v42 }
 0x4c9   : > { %v1843_v44 = vadd.f32 %v1827_v52, %v1666_v21  ;;  %v1711_v60 = vpop.xlane.xlu1 %1710  ;;  %v1627_v15 = vpop.xlane.xlu0 %1626 }
 0x4ca   : > { %v1749_v4 = vadd.f32 %v5924_v31, %v1711_v60  ;;  %v1667_v26 = vadd.f32 %v5910_v62, %v1627_v15 }
 0x4cb   : > { %1860 = vst.msk [vmem:[%s5535_s28 + $0x10] sm:$0xff] %vm1857_vm3, %v1843_v44  ;;  %1886 = vperm.xlu2 %4932, %v1843_v44  }
 0x4cc   : > { %v1781_v20 = vsub.f32 0.0, %v1749_v4  ;;  %v1764_v16 = vsub.f32 %v6220_v0, %v1667_v26 }
 0x4ce   : > { %v5022_v10 = vpop.eup %5021  ;;  %v1801_v27 = vmul.f32 1.442695, %v1781_v20 }
 0x4cf   : > { %v1828_v32 = vmul.f32 %v5022_v10, %v1764_v16 }
 0x4d0   : > { %5023 = vpow2.f32 %v1801_v27 }
 0x4d1   : > { %v6223_v8 = vadd.f32 %v1828_v32, %v1667_v26  ;;  %v1630_v38 = vpop.xlane.xlu1 %1629  ;;  %v1714_v39 = vpop.xlane.xlu2 %1713  ;;  %v6250_v26 = vld [vmem:[%s5522_s25 + $0x30] sm:$0xff] }
 0x4d2   : > { %v1668_v61 = vadd.f32 %v5910_v62, %v1630_v38  ;;  %v1750_v50 = vadd.f32 %v5924_v31, %v1714_v39 }
 0x4d3   : > { %1861 = vst.msk [vmem:[%s5535_s28 + $0x18] sm:$0xff] %vm1857_vm3, %v6223_v8  ;;  %1881 = vperm.xlu1 %4933, %v1842_v6   ;;  %v6239_v6 = vld [vmem:[%s5522_s25 + $0x28] sm:$0xff] }
 0x4d4   : > { %v1765_v13 = vsub.f32 %v6231_v47, %v1668_v61  ;;  %v1782_v48 = vsub.f32 0.0, %v1750_v50 }
 0x4d6   : > { %v5024_v11 = vpop.eup %5023  ;;  %v1803_v18 = vmul.f32 1.442695, %v1782_v48  ;;  %v6258_v48 = vld [vmem:[%s5522_s25 + $0x38] sm:$0xff] }
 0x4d7   : > { %v1829_v22 = vmul.f32 %v5024_v11, %v1765_v13 }
 0x4d8   : > { %5025 = vpow2.f32 %v1803_v18 }
 0x4d9   : > { %v1845_v28 = vadd.f32 %v1829_v22, %v1668_v61  ;;  %v1633_v63 = vpop.xlane.xlu2 %1632  ;;  %v1717_v24 = vpop.xlane.xlu0 %1716 }
 0x4da   : > { %v1669_v40 = vadd.f32 %v5910_v62, %v1633_v63  ;;  %v1751_v55 = vadd.f32 %v5924_v31, %v1717_v24 }
 0x4db   : > { %1862 = vst.msk [vmem:[%s5535_s28 + $0x20] sm:$0xff] %vm1857_vm3, %v1845_v28  ;;  %1896 = vperm.xlu0 %4934, %v1845_v28  }
 0x4dc   : > { %v1766_v21 = vsub.f32 %v6239_v6, %v1669_v40  ;;  %v1783_v3 = vsub.f32 0.0, %v1751_v55  ;;  %v6265_v55 = vld [vmem:[%s5522_s25 + $0x40] sm:$0xff] }
 0x4de   : > { %v5026_v1 = vpop.eup %5025  ;;  %v1805_v41 = vmul.f32 1.442695, %v1783_v3 }
 0x4df   : > { %v1830_v2 = vmul.f32 %v5026_v1, %v1766_v21 }
 0x4e0   : > { %5027 = vpow2.f32 %v1805_v41  ;;  %v1614_v41 = vmul.f32 %v6086_v25, %v1597_v34 }
 0x4e1   : > { %v6242_v42 = vadd.f32 %v1830_v2, %v1669_v40  ;;  %v1720_v52 = vpop.xlane.xlu1 %1719  ;;  %v1636_v44 = vpop.xlane.xlu0 %1635 }
 0x4e2   : > { %v1752_v60 = vadd.f32 %v5924_v31, %v1720_v52  ;;  %v1670_v15 = vadd.f32 %v5910_v62, %v1636_v44 }
 0x4e3   : > { %1863 = vst.msk [vmem:[%s5535_s28 + $0x28] sm:$0xff] %vm1857_vm3, %v6242_v42 }
 0x4e4   : > { %v1784_v4 = vsub.f32 0.0, %v1752_v60  ;;  %v1767_v20 = vsub.f32 %v6250_v26, %v1670_v15 }
 0x4e6   : > { %v5028_v16 = vpop.eup %5027  ;;  %v1807_v10 = vmul.f32 1.442695, %v1784_v4  ;;  %v1658_v4 = vsel %vm446_vm0, %v1614_v41, 0.0 }
 0x4e7   : > { %v1831_v27 = vmul.f32 %v5028_v16, %v1767_v20 }
 0x4e8   : > { %5029 = vpow2.f32 %v1807_v10 }
 0x4e9   : > { %v1847_v32 = vadd.f32 %v1831_v27, %v1670_v15  ;;  %v1723_v38 = vpop.xlane.xlu1 %1722  ;;  %v1639_v39 = vpop.xlane.xlu0 %1638 }
 0x4ea   : > { %v1753_v61 = vadd.f32 %v5924_v31, %v1723_v38  ;;  %v1671_v50 = vadd.f32 %v5910_v62, %v1639_v39  ;;  %v1580_v27 = vpop.f32.mrf.mxu2 }
 0x4eb   : > { %1864 = vst.msk [vmem:[%s5535_s28 + $0x30] sm:$0xff] %vm1857_vm3, %v1847_v32  ;;  %1906 = vperm.xlu2 %4932, %v1847_v32  }
 0x4ec   : > { %v1785_v13 = vsub.f32 0.0, %v1753_v61  ;;  %v1768_v11 = vsub.f32 %v6258_v48, %v1671_v50 }
 0x4ee   : > { %v5030_v18 = vpop.eup %5029  ;;  %v1809_v22 = vmul.f32 1.442695, %v1785_v13  ;;  %v1581_v13 = vadd.f32 %v6191_v36, %v1580_v27  ;;  %v6302_v27 = vld [vmem:[%s7941_s9] ss:$0 sm:$0xff] }
 0x4ef   : > { %v1832_v28 = vmul.f32 %v5030_v18, %v1768_v11 }
 0x4f0   : > { %5031 = vpow2.f32 %v1809_v22 }
 0x4f1   : > { %v1848_v63 = vadd.f32 %v1832_v28, %v1671_v50  ;;  %v1642_v24 = vpop.xlane.xlu0 %1641  ;;  %v1645_v2 = vpop.xlane.xlu2 %1644 }
 0x4f2   : > { %v1672_v40 = vadd.f32 %v5910_v62, %v1642_v24  ;;  %v1673_v16 = vadd.f32 %v5910_v62, %v1645_v2  ;;  %v6285_v62 = vld [vmem:[%s7940_s8] ss:$0 sm:$0xff] }
 0x4f3   : > { %1865 = vst.msk [vmem:[%s5535_s28 + $0x38] sm:$0xff] %vm1857_vm3, %v1848_v63  ;;  %1911 = vperm.xlu0 %4934, %v1848_v63  }
 0x4f4   : > { %v1769_v21 = vsub.f32 %v6265_v55, %v1672_v40  ;;  %v1770_v38 = vsub.f32 %v5972_v7, %v1673_v16 }
 0x4f6   : > { %v5032_v3 = vpop.eup %5031 }
 0x4f7   : > { %v1833_v1 = vmul.f32 %v5032_v3, %v1769_v21 }
 0x4f9   : > { %v6271_v52 = vadd.f32 %v1833_v1, %v1672_v40  ;;  %v1726_v44 = vpop.xlane.xlu0 %1725  ;;  %v1648_v61 = vpop.xlane.xlu1 %1647  ;;  %v1598_v40 = vmax.f32 %v1581_v13, 0.0  ;;  %v6293_v1 = vld [vmem:[%s5522_s25 + $0x50] sm:$0xff] }
 0x4fa   : > { %v1754_v60 = vadd.f32 %v5924_v31, %v1726_v44  ;;  %v1674_v18 = vadd.f32 %v6285_v62, %v1648_v61 }
 0x4fb   : > { %1866 = vst.msk [vmem:[%s5535_s28 + $0x40] sm:$0xff] %vm1857_vm3, %v6271_v52 }
 0x4fc   : > { %v1786_v15 = vsub.f32 0.0, %v1754_v60  ;;  %v1771_v41 = vsub.f32 %v6293_v1, %v1674_v18 }
 0x4fd   : > { %1659 = vadd.xlane.f32.xlu1 %v1658_v4 }
 0x4fe   : > { %v1811_v20 = vmul.f32 1.442695, %v1786_v15  ;;  %v1615_v15 = vmul.f32 %v6086_v25, %v1598_v40 }
 0x500   : > { %5033 = vpow2.f32 %v1811_v20  ;;  %v1661_v25 = vsel %vm446_vm0, %v1615_v15, 0.0 }
 0x501   : > { %v1651_v59 = vpop.xlane.xlu2 %1650  ;;  %v1729_v10 = vpop.xlane.xlu0 %1728 }
 0x502   : > { %v1755_v34 = vadd.f32 %v5924_v31, %v1729_v10  ;;  %v1675_v10 = vadd.f32 %v6285_v62, %v1651_v59 }
 0x504   : > { %v1787_v32 = vsub.f32 0.0, %v1755_v34 }
 0x506   : > { %v5034_v39 = vpop.eup %5033  ;;  %v1813_v50 = vmul.f32 1.442695, %v1787_v32 }
 0x507   : > { %v1834_v11 = vmul.f32 %v5034_v39, %v1770_v38  ;;  %v6309_v38 = vld [vmem:[%s5522_s25 + $0x60] sm:$0xff] }
 0x508   : > { %5035 = vpow2.f32 %v1813_v50  ;;  %v6313_v50 = vld [vmem:[%s5522_s25 + $0x58] sm:$0xff] }
 0x509   : > { %v1735_v22 = vpop.xlane.xlu2 %1734  ;;  %v1732_v28 = vpop.xlane.xlu0 %1731  ;;  %v1850_v63 = vadd.f32 %v1834_v11, %v1673_v16  ;;  %v1772_v13 = vsub.f32 %v6313_v50, %v1675_v10 }
 0x50a   : > { %v1757_v7 = vadd.f32 %v5924_v31, %v1735_v22  ;;  %v1756_v24 = vadd.f32 %v5924_v31, %v1732_v28  ;;  %v1696_v28 = vmul.f32 %v6062_v49, %v1598_v40  ;;  %v6332_v49 = vld [vmem:[%s7933_s1] sm:$0xff] }
 0x50b   : > { %1867 = vst.msk [vmem:[%s5535_s28 + $0x48] sm:$0xff] %vm1857_vm3, %v1850_v63  ;;  %v6335_v40 = vperm.slane %v6332_v49, 2 }
 0x50c   : > { %v1789_v21 = vsub.f32 0.0, %v1757_v7  ;;  %v1788_v3 = vsub.f32 0.0, %v1756_v24 }
 0x50e   : > { %v5036_v2 = vpop.eup %5035  ;;  %v1817_v44 = vmul.f32 1.442695, %v1789_v21  ;;  %v1815_v60 = vmul.f32 1.442695, %v1788_v3 }
 0x50f   : > { %v1835_v4 = vmul.f32 %v5036_v2, %v1771_v41  ;;  %v6322_v2 = vld [vmem:[%s5522_s25 + $0x68] sm:$0xff] }
 0x510   : > { %5037 = vpow2.f32 %v1817_v44 }
 0x511   : > { %5039 = vpow2.f32 %v1815_v60  ;;  %v1654_v31 = vpop.xlane.xlu2 %1653  ;;  %v1738_v20 = vpop.xlane.xlu0 %1737  ;;  %v1851_v16 = vadd.f32 %v1835_v4, %v1674_v18 }
 0x512   : > { %v1676_v34 = vadd.f32 %v6285_v62, %v1654_v31  ;;  %v1758_v32 = vadd.f32 %v6302_v27, %v1738_v20 }
 0x513   : > { %1868 = vst.msk [vmem:[%s5535_s28 + $0x50] sm:$0xff] %vm1857_vm3, %v1851_v16 }
 0x514   : > { %v1773_v39 = vsub.f32 %v6309_v38, %v1676_v34  ;;  %v1790_v61 = vsub.f32 0.0, %v1758_v32  ;;  %1662 = vadd.xlane.f32.xlu2 %v1661_v25 }
 0x516   : > { %v5038_v59 = vpop.eup %5037  ;;  %v1819_v11 = vmul.f32 1.442695, %v1790_v61  ;;  %1891 = vperm.xlu1 %4933, %v6223_v8   ;;  %v1742_v8 = vsel %vm446_vm0, %v1696_v28, 0.0 }
 0x517   : > { %v5040_v18 = vpop.eup %5039  ;;  %v1837_v22 = vmul.f32 %v5038_v59, %v1773_v39 }
 0x518   : > { %5041 = vpow2.f32 %v1819_v11  ;;  %v1836_v7 = vmul.f32 %v5040_v18, %v1772_v13 }
 0x519   : > { %v1853_v24 = vadd.f32 %v1837_v22, %v1676_v34  ;;  %v1657_v21 = vpop.xlane.xlu2 %1656  ;;  %v6361_v22 = vld [vmem:[%s5522_s25 + $0x70] sm:$0xff] }
 0x51a   : > { %v1677_v3 = vadd.f32 %v6285_v62, %v1657_v21  ;;  %v1852_v41 = vadd.f32 %v1836_v7, %v1675_v10 }
 0x51b   : > { %1870 = vst.msk [vmem:[%s5535_s28 + $0x60] sm:$0xff] %vm1857_vm3, %v1853_v24 }
 0x51c   : > { %v1774_v44 = vsub.f32 %v6322_v2, %v1677_v3  ;;  %1869 = vst.msk [vmem:[%s5535_s28 + $0x58] sm:$0xff] %vm1857_vm3, %v1852_v41 }
 0x51d   : > { %1743 = vadd.xlane.f32.xlu0 %v1742_v8 }
 0x51e   : > { %v5042_v60 = vpop.eup %5041  ;;  %1901 = vperm.xlu1 %4933, %v6242_v42  }
 0x51f   : > { %v1838_v15 = vmul.f32 %v5042_v60, %v1774_v44 }
 0x521   : > { %v1854_v4 = vadd.f32 %v1838_v15, %v1677_v3  ;;  %v1877_v31 = vpop.permute.xlu2 %1876 }
 0x522   : > { %v1955_v20 = vmul.f32 %v6335_v40, %v1877_v31 }
 0x523   : > { %1871 = vst.msk [vmem:[%s5535_s28 + $0x68] sm:$0xff] %vm1857_vm3, %v1854_v4 }
 0x524   : > { %v6341_v10 = vadd.f32 %v1955_v20, %v5961_v23 }
 0x526   : > { %v1987_v42 = vmax.f32 %v6341_v10, 0.0  ;;  %1916 = vperm.xlu1 %4933, %v6271_v52  }
 0x528   : > { %4801 = vmatmul.msk.f32.vlgmr.msrb.gmra.mxu3 %vm446_vm0, %v1987_v42 }
 0x529   : > { %v1887_v39 = vpop.permute.xlu2 %1886 }
 0x52a   : > { %v1957_v61 = vmul.f32 %v6335_v40, %v1887_v39 }
 0x52c   : > { %1921 = vperm.xlu2 %4932, %v1850_v63   ;;  %v6354_v63 = vadd.f32 %v1957_v61, %v6001_v45 }
 0x52d   : > { %v1741_v34 = vpop.xlane.xlu1 %1740 }
 0x52e   : > { %1926 = vperm.xlu1 %4933, %v1851_v16   ;;  %v1989_v16 = vmax.f32 %v6354_v63, 0.0  ;;  %v1759_v59 = vadd.f32 %v6302_v27, %v1741_v34 }
 0x530   : > { %v1791_v13 = vsub.f32 0.0, %v1759_v59 }
 0x531   : > { %1931 = vperm.xlu0 %4934, %v1852_v41  }
 0x532   : > { %v1821_v11 = vmul.f32 1.442695, %v1791_v13 }
 0x534   : > { %1941 = vperm.xlu2 %4932, %v1854_v4   ;;  %5043 = vpow2.f32 %v1821_v11 }
 0x536   : > { %1936 = vperm.xlu1 %4933, %v1853_v24  }
 0x53a   : > { %v5044_v7 = vpop.eup %5043 }
 0x545   : > { %v1882_v32 = vpop.permute.xlu1 %1881  ;;  %v1907_v60 = vpop.permute.xlu2 %1906 }
 0x546   : > { %v1956_v25 = vmul.f32 %v6335_v40, %v1882_v32  ;;  %v1961_v11 = vmul.f32 %v6335_v40, %v1907_v60  ;;  %v6404_v60 = vperm.slane %v6059_v37, 3 }
 0x548   : > { %v6348_v23 = vadd.f32 %v1956_v25, %v5995_v19 }
 0x54a   : > { %v1988_v52 = vmax.f32 %v6348_v23, 0.0 }
 0x54c   : > { %4802 = vmatmul.msk.f32.gmra.mxu3 %vm446_vm0, %v1988_v52 }
 0x54d   : > { %v1897_v21 = vpop.permute.xlu0 %1896 }
 0x54e   : > { %v1959_v15 = vmul.f32 %v6335_v40, %v1897_v21 }
 0x550   : > { %v6374_v20 = vadd.f32 %v1959_v15, %v6014_v35  ;;  %v6385_v35 = vld [vmem:[%s5522_s25 + $0x78] sm:$0xff] }
 0x552   : > { %v1991_v61 = vmax.f32 %v6374_v20, 0.0 }
 0x554   : > { %4803 = vmatmul.msk.f32.gmra.mxu3 %vm446_vm0, %v1989_v16 }
 0x565   : > { %v1912_v3 = vpop.permute.xlu0 %1911 }
 0x570   : > { %v1660_v19 = vpop.xlane.xlu1 %1659 }
 0x571   : > { %v1678_v18 = vadd.f32 %v6285_v62, %v1660_v19 }
 0x573   : > { %v1775_v28 = vsub.f32 %v6361_v22, %v1678_v18 }
 0x575   : > { %v1839_v24 = vmul.f32 %v5044_v7, %v1775_v28  ;;  %v6392_v7 = vadd.f32 %v1961_v11, %v6031_v17  ;;  %v6407_v17 = vperm.slane %v6083_v51, 3 }
 0x577   : > { %v1855_v45 = vadd.f32 %v1839_v24, %v1678_v18  ;;  %v1993_v24 = vmax.f32 %v6392_v7, 0.0 }
 0x579   : > { %1872 = vst.msk [vmem:[%s5535_s28 + $0x70] sm:$0xff] %vm1857_vm3, %v1855_v45  ;;  %1946 = vperm.xlu1 %4933, %v1855_v45  }
 0x587   : > { %v1663_v25 = vpop.xlane.xlu2 %1662 }
 0x588   : > { %v1892_v41 = vpop.permute.xlu1 %1891  ;;  %v1679_v52 = vadd.f32 %v6285_v62, %v1663_v25 }
 0x589   : > { %v1958_v44 = vmul.f32 %v6335_v40, %v1892_v41 }
 0x58a   : > { %v1776_v59 = vsub.f32 %v6385_v35, %v1679_v52 }
 0x58b   : > { %v6368_v8 = vadd.f32 %v1958_v44, %v6008_v14 }
 0x58d   : > { %v1990_v4 = vmax.f32 %v6368_v8, 0.0 }
 0x58f   : > { %4804 = vmatmul.msk.f32.gmra.mxu3 %vm446_vm0, %v1990_v4 }
 0x590   : > { %v1744_v31 = vpop.xlane.xlu0 %1743  ;;  %v1902_v34 = vpop.permute.xlu1 %1901 }
 0x591   : > { %v1760_v42 = vadd.f32 %v6302_v27, %v1744_v31  ;;  %v1960_v14 = vmul.f32 %v6335_v40, %v1902_v34  ;;  %v1922_v34 = vpop.permute.xlu2 %1921 }
 0x593   : > { %v1792_v32 = vsub.f32 0.0, %v1760_v42  ;;  %v6382_v16 = vadd.f32 %v1960_v14, %v6023_v54  ;;  %v1962_v54 = vmul.f32 %v6335_v40, %v1912_v3 }
 0x595   : > { %v1823_v39 = vmul.f32 1.442695, %v1792_v32  ;;  %v1992_v19 = vmax.f32 %v6382_v16, 0.0  ;;  %v6400_v45 = vadd.f32 %v1962_v54, %v6039_v53  ;;  %v1964_v32 = vmul.f32 %v6335_v40, %v1922_v34 }
 0x597   : > { %5045 = vpow2.f32 %v1823_v39  ;;  %4805 = vmatmul.msk.f32.gmra.mxu3 %vm446_vm0, %v1991_v61  ;;  %v1994_v3 = vmax.f32 %v6400_v45, 0.0  ;;  %v6423_v14 = vadd.f32 %v1964_v32, %v6054_v12 }
 0x598   : > { %v1917_v21 = vpop.permute.xlu1 %1916 }
 0x599   : > { %v1963_v15 = vmul.f32 %v6335_v40, %v1917_v21  ;;  %v1996_v61 = vmax.f32 %v6423_v14, 0.0 }
 0x59b   : > { %v6415_v42 = vadd.f32 %v1963_v15, %v6047_v29 }
 0x59d   : > { %v5046_v13 = vpop.eup %5045  ;;  %v1995_v25 = vmax.f32 %v6415_v42, 0.0 }
 0x59e   : > { %v1840_v18 = vmul.f32 %v5046_v13, %v1776_v59 }
 0x59f   : > { %4806 = vmatmul.msk.f32.gmra.mxu3 %vm446_vm0, %v1992_v19 }
 0x5a0   : > { %v1856_v28 = vadd.f32 %v1840_v18, %v1679_v52  ;;  %v1927_v39 = vpop.permute.xlu1 %1926 }
 0x5a1   : > { %v1965_v29 = vmul.f32 %v6335_v40, %v1927_v39 }
 0x5a2   : > { %1951 = vperm.xlu2 %4932, %v1856_v28   ;;  %1873 = vst.msk [vmem:[%s5535_s28 + $0x78] sm:$0xff] %vm1857_vm3, %v1856_v28 }
 0x5a3   : > { %v6429_v52 = vadd.f32 %v1965_v29, %v6069_v46  ;;  %v1932_v59 = vpop.permute.xlu0 %1931 }
 0x5a4   : > { %v1966_v13 = vmul.f32 %v6335_v40, %v1932_v59 }
 0x5a5   : > { %v1997_v11 = vmax.f32 %v6429_v52, 0.0 }
 0x5a6   : > { %v6435_v12 = vadd.f32 %v1966_v13, %v6076_v5 }
 0x5a7   : > { %4807 = vmatmul.msk.f32.gmra.mxu3 %vm446_vm0, %v1993_v24 }
 0x5a8   : > { %v1937_v19 = vpop.permute.xlu1 %1936  ;;  %v1998_v28 = vmax.f32 %v6435_v12, 0.0 }
 0x5a9   : > { %v1967_v18 = vmul.f32 %v6335_v40, %v1937_v19 }
 0x5ab   : > { %v2068_v41 = vpop.f32.mrf.mxu3  ;;  %v6442_v24 = vadd.f32 %v1967_v18, %v6090_v33 }
 0x5ac   : > { %v2069_v44 = vadd.f32 %v6191_v36, %v2068_v41  ;;  %v1942_v41 = vpop.permute.xlu2 %1941 }
 0x5ad   : > { %v1999_v5 = vmax.f32 %v6442_v24, 0.0  ;;  %v1968_v15 = vmul.f32 %v6335_v40, %v1942_v41 }
 0x5ae   : > { %v2116_v4 = vmax.f32 %v2069_v44, 0.0 }
 0x5af   : > { %4808 = vmatmul.msk.f32.gmra.mxu3 %vm446_vm0, %v1994_v3 }
 0x5b0   : > { %v2214_v53 = vmul.f32 %v6404_v60, %v2116_v4  ;;  %v2133_v31 = vmul.f32 %v6407_v17, %v2116_v4 }
 0x5b2   : > { %v2230_v37 = vsel %vm446_vm0, %v2214_v53, 0.0  ;;  %v2149_v51 = vsel %vm446_vm0, %v2133_v31, 0.0  ;;  %v6451_v31 = vadd.f32 %v1968_v15, %v6098_v57 }
 0x5b3   : > { %2231 = vadd.xlane.f32.xlu1 %v2230_v37  ;;  %2150 = vadd.xlane.f32.xlu0 %v2149_v51 }
 0x5b7   : > { %4809 = vmatmul.msk.f32.gmra.mxu3 %vm446_vm0, %v1995_v25  ;;  %v2000_v25 = vmax.f32 %v6451_v31, 0.0 }
 0x5bf   : > { %4810 = vmatmul.msk.f32.gmra.mxu3 %vm446_vm0, %v1996_v61 }
 0x5c7   : > { %4811 = vmatmul.msk.f32.gmra.mxu3 %vm446_vm0, %v1997_v11 }
 0x5cf   : > { %v2071_v54 = vpop.f32.mrf.mxu3  ;;  %4812 = vmatmul.msk.f32.gmra.mxu3 %vm446_vm0, %v1998_v28 }
 0x5d0   : > { %v2072_v46 = vadd.f32 %v6191_v36, %v2071_v54 }
 0x5d2   : > { %v2117_v21 = vmax.f32 %v2072_v46, 0.0 }
 0x5d4   : > { %v2215_v44 = vmul.f32 %v6404_v60, %v2117_v21  ;;  %v2134_v34 = vmul.f32 %v6407_v17, %v2117_v21 }
 0x5d6   : > { %v2233_v3 = vsel %vm446_vm0, %v2215_v44, 0.0  ;;  %v2152_v32 = vsel %vm446_vm0, %v2134_v34, 0.0 }
 0x5d7   : > { %v2074_v4 = vpop.f32.mrf.mxu3  ;;  %2234 = vadd.xlane.f32.xlu2 %v2233_v3  ;;  %4813 = vmatmul.msk.f32.gmra.mxu3 %vm446_vm0, %v1999_v5 }
 0x5d8   : > { %v2075_v53 = vadd.f32 %v6191_v36, %v2074_v4 }
 0x5da   : > { %v2118_v33 = vmax.f32 %v2075_v53, 0.0 }
 0x5dc   : > { %v2216_v37 = vmul.f32 %v6404_v60, %v2118_v33  ;;  %v2135_v39 = vmul.f32 %v6407_v17, %v2118_v33 }
 0x5de   : > { %v2236_v51 = vsel %vm446_vm0, %v2216_v37, 0.0  ;;  %v2155_v57 = vsel %vm446_vm0, %v2135_v39, 0.0 }
 0x5df   : > { %2237 = vadd.xlane.f32.xlu1 %v2236_v51  ;;  %2153 = vadd.xlane.f32.xlu2 %v2152_v32 }
 0x5e0   : > { %4814 = vmatmul.msk.f32.gmra.mxu3 %vm446_vm0, %v2000_v25 }
 0x5e7   : > { %2156 = vadd.xlane.f32.xlu1 %v2155_v57 }
 0x5eb   : > { %v1947_v29 = vpop.permute.xlu1 %1946 }
 0x5ec   : > { %v1969_v61 = vmul.f32 %v6335_v40, %v1947_v29 }
 0x5ee   : > { %v6463_v59 = vadd.f32 %v1969_v61, %v6104_v56 }
 0x5f0   : > { %v2001_v13 = vmax.f32 %v6463_v59, 0.0 }
 0x5f2   : > { %4815 = vmatmul.msk.f32.gmra.mxu3 %vm446_vm0, %v2001_v13 }
 0x5fc   : > { %v1952_v11 = vpop.permute.xlu2 %1951 }
 0x5fd   : > { %v1970_v19 = vmul.f32 %v6335_v40, %v1952_v11 }
 0x5ff   : > { %v6469_v18 = vadd.f32 %v1970_v19, %v6126_v30 }
 0x601   : > { %v2002_v28 = vmax.f32 %v6469_v18, 0.0 }
 0x603   : > { %4816 = vmatmul.msk.f32.gmra.mxu3 %vm446_vm0, %v2002_v28 }
 0x612   : > { %v2077_v54 = vpop.f32.mrf.mxu3 }
 0x613   : > { %v2078_v46 = vadd.f32 %v6191_v36, %v2077_v54 }
 0x615   : > { %v2119_v21 = vmax.f32 %v2078_v46, 0.0 }
 0x617   : > { %v2217_v56 = vmul.f32 %v6404_v60, %v2119_v21  ;;  %v2136_v30 = vmul.f32 %v6407_v17, %v2119_v21 }
 0x619   : > { %v2239_v41 = vsel %vm446_vm0, %v2217_v56, 0.0  ;;  %v2158_v3 = vsel %vm446_vm0, %v2136_v30, 0.0 }
 0x61a   : > { %2240 = vadd.xlane.f32.xlu0 %v2239_v41  ;;  %v2080_v44 = vpop.f32.mrf.mxu3 }
 0x61b   : > { %v2081_v5 = vadd.f32 %v6191_v36, %v2080_v44 }
 0x61d   : > { %v2120_v40 = vmax.f32 %v2081_v5, 0.0 }
 0x61f   : > { %v2218_v15 = vmul.f32 %v6404_v60, %v2120_v40  ;;  %v2137_v37 = vmul.f32 %v6407_v17, %v2120_v40 }
 0x621   : > { %v2242_v4 = vsel %vm446_vm0, %v2218_v15, 0.0  ;;  %v2161_v29 = vsel %vm446_vm0, %v2137_v37, 0.0 }
 0x622   : > { %2159 = vadd.xlane.f32.xlu0 %v2158_v3  ;;  %v2083_v53 = vpop.f32.mrf.mxu3  ;;  %2243 = vadd.xlane.f32.xlu2 %v2242_v4 }
 0x623   : > { %v2084_v33 = vadd.f32 %v6191_v36, %v2083_v53 }
 0x625   : > { %v2121_v34 = vmax.f32 %v2084_v33, 0.0 }
 0x626   : > { %v2232_v51 = vpop.xlane.xlu1 %2231  ;;  %v2151_v11 = vpop.xlane.xlu0 %2150 }
 0x627   : > { %v2278_v32 = vadd.f32 %v6302_v27, %v2232_v51  ;;  %v2219_v25 = vmul.f32 %v6404_v60, %v2121_v34  ;;  %v2138_v54 = vmul.f32 %v6407_v17, %v2121_v34  ;;  %v2197_v46 = vadd.f32 %v6285_v62, %v2151_v11 }
 0x629   : > { %v2310_v39 = vsub.f32 0.0, %v2278_v32  ;;  %v2245_v57 = vsel %vm446_vm0, %v2219_v25, 0.0  ;;  %v2164_v41 = vsel %vm446_vm0, %v2138_v54, 0.0  ;;  %v2294_v44 = vsub.f32 %v6161_v9, %v2197_v46 }
 0x62a   : > { %v2086_v61 = vpop.f32.mrf.mxu3  ;;  %2246 = vadd.xlane.f32.xlu1 %v2245_v57  ;;  %2162 = vadd.xlane.f32.xlu2 %v2161_v29 }
 0x62b   : > { %v2326_v13 = vmul.f32 1.442695, %v2310_v39  ;;  %v2087_v19 = vadd.f32 %v6191_v36, %v2086_v61 }
 0x62d   : > { %5047 = vpow2.f32 %v2326_v13  ;;  %v2122_v28 = vmax.f32 %v2087_v19, 0.0 }
 0x62f   : > { %v2220_v21 = vmul.f32 %v6404_v60, %v2122_v28  ;;  %v2139_v4 = vmul.f32 %v6407_v17, %v2122_v28 }
 0x631   : > { %v2248_v56 = vsel %vm446_vm0, %v2220_v21, 0.0  ;;  %v2167_v9 = vsel %vm446_vm0, %v2139_v4, 0.0 }
 0x632   : > { %2249 = vadd.xlane.f32.xlu0 %v2248_v56  ;;  %2165 = vadd.xlane.f32.xlu1 %v2164_v41  ;;  %v2089_v5 = vpop.f32.mrf.mxu3 }
 0x633   : > { %v5048_v40 = vpop.eup %5047  ;;  %v2090_v30 = vadd.f32 %v6191_v36, %v2089_v5 }
 0x634   : > { %v2358_v15 = vmul.f32 %v5048_v40, %v2294_v44 }
 0x635   : > { %v2123_v3 = vmax.f32 %v2090_v30, 0.0 }
 0x636   : > { %v6496_v53 = vadd.f32 %v2358_v15, %v2197_v46 }
 0x637   : > { %v2221_v33 = vmul.f32 %v6404_v60, %v2123_v3  ;;  %v2140_v25 = vmul.f32 %v6407_v17, %v2123_v3 }
 0x638   : > { %2391 = vst.msk [vmem:[%s5535_s28] sm:$0xff] %vm2390_vm4, %v6496_v53 }
 0x639   : > { %v2251_v34 = vsel %vm446_vm0, %v2221_v33, 0.0  ;;  %v2170_v57 = vsel %vm446_vm0, %v2140_v25, 0.0 }
 0x63a   : > { %2168 = vadd.xlane.f32.xlu0 %v2167_v9  ;;  %v2092_v37 = vpop.f32.mrf.mxu3  ;;  %2252 = vadd.xlane.f32.xlu2 %v2251_v34 }
 0x63b   : > { %v2093_v51 = vadd.f32 %v6191_v36, %v2092_v37 }
 0x63d   : > { %v2124_v32 = vmax.f32 %v2093_v51, 0.0 }
 0x63f   : > { %v2222_v39 = vmul.f32 %v6404_v60, %v2124_v32  ;;  %v2141_v19 = vmul.f32 %v6407_v17, %v2124_v32 }
 0x641   : > { %v2254_v29 = vsel %vm446_vm0, %v2222_v39, 0.0  ;;  %v2173_v54 = vsel %vm446_vm0, %v2141_v19, 0.0 }
 0x642   : > { %v2095_v61 = vpop.f32.mrf.mxu3  ;;  %2171 = vadd.xlane.f32.xlu0 %v2170_v57  ;;  %2255 = vadd.xlane.f32.xlu2 %v2254_v29 }
 0x643   : > { %v2096_v13 = vadd.f32 %v6191_v36, %v2095_v61 }
 0x645   : > { %v2125_v11 = vmax.f32 %v2096_v13, 0.0 }
 0x647   : > { %v2142_v28 = vmul.f32 %v6407_v17, %v2125_v11  ;;  %v2223_v5 = vmul.f32 %v6404_v60, %v2125_v11 }
 0x649   : > { %v2176_v46 = vsel %vm446_vm0, %v2142_v28, 0.0  ;;  %v2257_v33 = vsel %vm446_vm0, %v2223_v5, 0.0 }
 0x64a   : > { %v2098_v21 = vpop.f32.mrf.mxu3  ;;  %2174 = vadd.xlane.f32.xlu0 %v2173_v54  ;;  %2177 = vadd.xlane.f32.xlu2 %v2176_v46  ;;  %v2235_v56 = vpop.xlane.xlu2 %2234 }
 0x64b   : > { %v2099_v41 = vadd.f32 %v6191_v36, %v2098_v21  ;;  %v2279_v44 = vadd.f32 %v6302_v27, %v2235_v56 }
 0x64d   : > { %v2126_v40 = vmax.f32 %v2099_v41, 0.0  ;;  %v2311_v30 = vsub.f32 0.0, %v2279_v44 }
 0x64f   : > { %v2143_v15 = vmul.f32 %v6407_v17, %v2126_v40  ;;  %v2328_v3 = vmul.f32 1.442695, %v2311_v30  ;;  %v2224_v39 = vmul.f32 %v6404_v60, %v2126_v40 }
 0x651   : > { %5049 = vpow2.f32 %v2328_v3  ;;  %v2179_v4 = vsel %vm446_vm0, %v2143_v15, 0.0  ;;  %v2260_v54 = vsel %vm446_vm0, %v2224_v39, 0.0 }
 0x652   : > { %v2238_v9 = vpop.xlane.xlu1 %2237  ;;  %2180 = vadd.xlane.f32.xlu1 %v2179_v4  ;;  %2258 = vadd.xlane.f32.xlu0 %v2257_v33  ;;  %v2154_v34 = vpop.xlane.xlu2 %2153 }
 0x653   : > { %v2280_v37 = vadd.f32 %v6302_v27, %v2238_v9  ;;  %v2198_v51 = vadd.f32 %v6285_v62, %v2154_v34  ;;  %v2101_v32 = vpop.f32.mrf.mxu3 }
 0x654   : > { %v2102_v25 = vadd.f32 %v6191_v36, %v2101_v32 }
 0x655   : > { %v2312_v57 = vsub.f32 0.0, %v2280_v37  ;;  %v2295_v29 = vsub.f32 %v6204_v58, %v2198_v51 }
 0x656   : > { %v2127_v61 = vmax.f32 %v2102_v25, 0.0 }
 0x657   : > { %v5050_v13 = vpop.eup %5049  ;;  %v2330_v11 = vmul.f32 1.442695, %v2312_v57 }
 0x658   : > { %v2359_v19 = vmul.f32 %v5050_v13, %v2295_v29  ;;  %v2144_v28 = vmul.f32 %v6407_v17, %v2127_v61  ;;  %v2225_v5 = vmul.f32 %v6404_v60, %v2127_v61  ;;  %v5295_v29 = vmov 3  }
 0x659   : > { %5051 = vpow2.f32 %v2330_v11  ;;  %4936 = vset.pattern.permute.xlu2 %v5295_v29  ;;  %4935 = vset.pattern.permute.xlu1 %v5295_v29 }
 0x65a   : > { %v2375_v46 = vadd.f32 %v2359_v19, %v2198_v51  ;;  %v2157_v21 = vpop.xlane.xlu1 %2156  ;;  %2261 = vadd.xlane.f32.xlu0 %v2260_v54  ;;  %v2182_v56 = vsel %vm446_vm0, %v2144_v28, 0.0  ;;  %v2263_v33 = vsel %vm446_vm0, %v2225_v5, 0.0 }
 0x65b   : > { %v2199_v41 = vadd.f32 %v6285_v62, %v2157_v21  ;;  %v2104_v44 = vpop.f32.mrf.mxu3  ;;  %2183 = vadd.xlane.f32.xlu2 %v2182_v56  ;;  %4937 = vset.pattern.permute.xlu0 %v5295_v29 }
 0x65c   : > { %2392 = vst.msk [vmem:[%s5535_s28 + $0x8] sm:$0xff] %vm2390_vm4, %v2375_v46  ;;  %v2105_v58 = vadd.f32 %v6191_v36, %v2104_v44 }
 0x65d   : > { %v2296_v40 = vsub.f32 %v6212_v43, %v2199_v41 }
 0x65e   : > { %v2128_v30 = vmax.f32 %v2105_v58, 0.0 }
 0x65f   : > { %v5052_v15 = vpop.eup %5051 }
 0x660   : > { %v2360_v3 = vmul.f32 %v5052_v15, %v2296_v40  ;;  %v2226_v4 = vmul.f32 %v6404_v60, %v2128_v30  ;;  %v2145_v43 = vmul.f32 %v6407_v17, %v2128_v30 }
 0x662   : > { %v6536_v9 = vadd.f32 %v2360_v3, %v2199_v41  ;;  %2264 = vadd.xlane.f32.xlu0 %v2263_v33  ;;  %v2266_v34 = vsel %vm446_vm0, %v2226_v4, 0.0  ;;  %v2185_v57 = vsel %vm446_vm0, %v2145_v43, 0.0 }
 0x663   : > { %v2107_v37 = vpop.f32.mrf.mxu3  ;;  %2267 = vadd.xlane.f32.xlu2 %v2266_v34 }
 0x664   : > { %2393 = vst.msk [vmem:[%s5535_s28 + $0x10] sm:$0xff] %vm2390_vm4, %v6536_v9  ;;  %v2108_v51 = vadd.f32 %v6191_v36, %v2107_v37 }
 0x666   : > { %v2129_v32 = vmax.f32 %v2108_v51, 0.0 }
 0x668   : > { %v2227_v25 = vmul.f32 %v6404_v60, %v2129_v32  ;;  %v2146_v61 = vmul.f32 %v6407_v17, %v2129_v32 }
 0x66a   : > { %v2269_v39 = vsel %vm446_vm0, %v2227_v25, 0.0  ;;  %v2188_v13 = vsel %vm446_vm0, %v2146_v61, 0.0 }
 0x66b   : > { %2270 = vadd.xlane.f32.xlu1 %v2269_v39  ;;  %2186 = vadd.xlane.f32.xlu2 %v2185_v57 }
 0x673   : > { %2189 = vadd.xlane.f32.xlu2 %v2188_v13 }
 0x675   : > { %v2110_v11 = vpop.f32.mrf.mxu3 }
 0x676   : > { %v2111_v19 = vadd.f32 %v6191_v36, %v2110_v11 }
 0x678   : > { %v2130_v28 = vmax.f32 %v2111_v19, 0.0 }
 0x67a   : > { %v2228_v54 = vmul.f32 %v6404_v60, %v2130_v28 }
 0x67c   : > { %v2272_v21 = vsel %vm446_vm0, %v2228_v54, 0.0 }
 0x67d   : > { %2273 = vadd.xlane.f32.xlu1 %v2272_v21 }
 0x68b   : > { %2414 = vperm.xlu2 %4936, %v2375_v46  }
 0x68d   : > { %v2241_v56 = vpop.xlane.xlu0 %2240 }
 0x68e   : > { %v2281_v41 = vadd.f32 %v6302_v27, %v2241_v56 }
 0x690   : > { %v2313_v44 = vsub.f32 0.0, %v2281_v41 }
 0x692   : > { %v2332_v58 = vmul.f32 1.442695, %v2313_v44 }
 0x694   : > { %5053 = vpow2.f32 %v2332_v58 }
 0x695   : > { %v2244_v5 = vpop.xlane.xlu2 %2243  ;;  %v2160_v40 = vpop.xlane.xlu0 %2159 }
 0x696   : > { %v2282_v30 = vadd.f32 %v6302_v27, %v2244_v5  ;;  %v2200_v36 = vadd.f32 %v6285_v62, %v2160_v40  ;;  %2409 = vperm.xlu1 %4935, %v6496_v53  }
 0x698   : > { %v2314_v15 = vsub.f32 0.0, %v2282_v30  ;;  %v2297_v3 = vsub.f32 %v6220_v0, %v2200_v36 }
 0x69a   : > { %v5054_v4 = vpop.eup %5053  ;;  %v2334_v46 = vmul.f32 1.442695, %v2314_v15  ;;  %v2113_v15 = vpop.f32.mrf.mxu3 }
 0x69b   : > { %v2361_v33 = vmul.f32 %v5054_v4, %v2297_v3 }
 0x69c   : > { %5055 = vpow2.f32 %v2334_v46 }
 0x69d   : > { %v6557_v34 = vadd.f32 %v2361_v33, %v2200_v36  ;;  %v2247_v37 = vpop.xlane.xlu1 %2246  ;;  %v2163_v51 = vpop.xlane.xlu2 %2162  ;;  %v2147_v36 = vmul.f32 %v6407_v17, %v2130_v28  ;;  %v6579_v33 = vld [vmem:[%s7936_s4] ss:$0 sm:$0xff] }
 0x69e   : > { %v2283_v43 = vadd.f32 %v6302_v27, %v2247_v37  ;;  %v2201_v32 = vadd.f32 %v6285_v62, %v2163_v51  ;;  %v6582_v37 = vadd.f32 %v6579_v33, %v2113_v15 }
 0x69f   : > { %2394 = vst.msk [vmem:[%s5535_s28 + $0x18] sm:$0xff] %vm2390_vm4, %v6557_v34  ;;  %v2191_v28 = vsel %vm446_vm0, %v2147_v36, 0.0 }
 0x6a0   : > { %v2315_v53 = vsub.f32 0.0, %v2283_v43  ;;  %v2298_v25 = vsub.f32 %v6231_v47, %v2201_v32 }
 0x6a2   : > { %v5056_v0 = vpop.eup %5055  ;;  %v2336_v39 = vmul.f32 1.442695, %v2315_v53 }
 0x6a3   : > { %v2362_v57 = vmul.f32 %v5056_v0, %v2298_v25  ;;  %v2131_v0 = vmax.f32 %v6582_v37, 0.0 }
 0x6a4   : > { %5057 = vpow2.f32 %v2336_v39 }
 0x6a5   : > { %v2378_v29 = vadd.f32 %v2362_v57, %v2201_v32  ;;  %v2166_v61 = vpop.xlane.xlu1 %2165  ;;  %v2250_v13 = vpop.xlane.xlu0 %2249 }
 0x6a6   : > { %v2202_v11 = vadd.f32 %v6285_v62, %v2166_v61  ;;  %v2284_v19 = vadd.f32 %v6302_v27, %v2250_v13  ;;  %v2229_v13 = vmul.f32 %v6404_v60, %v2131_v0 }
 0x6a7   : > { %2395 = vst.msk [vmem:[%s5535_s28 + $0x20] sm:$0xff] %vm2390_vm4, %v2378_v29  ;;  %2429 = vperm.xlu0 %4937, %v2378_v29  }
 0x6a8   : > { %v2299_v54 = vsub.f32 %v6239_v6, %v2202_v11  ;;  %v2316_v21 = vsub.f32 0.0, %v2284_v19 }
 0x6aa   : > { %v5058_v56 = vpop.eup %5057  ;;  %v2338_v47 = vmul.f32 1.442695, %v2316_v21 }
 0x6ab   : > { %v2363_v41 = vmul.f32 %v5058_v56, %v2299_v54  ;;  %v2275_v56 = vsel %vm446_vm0, %v2229_v13, 0.0 }
 0x6ac   : > { %5059 = vpow2.f32 %v2338_v47 }
 0x6ad   : > { %v2379_v44 = vadd.f32 %v2363_v41, %v2202_v11  ;;  %v2253_v58 = vpop.xlane.xlu2 %2252  ;;  %v2169_v5 = vpop.xlane.xlu0 %2168 }
 0x6ae   : > { %v2285_v40 = vadd.f32 %v6302_v27, %v2253_v58  ;;  %v2203_v30 = vadd.f32 %v6285_v62, %v2169_v5 }
 0x6af   : > { %2396 = vst.msk [vmem:[%s5535_s28 + $0x28] sm:$0xff] %vm2390_vm4, %v2379_v44  ;;  %2434 = vperm.xlu0 %4937, %v2379_v44  }
 0x6b0   : > { %v2317_v3 = vsub.f32 0.0, %v2285_v40  ;;  %v2300_v6 = vsub.f32 %v6250_v26, %v2203_v30 }
 0x6b2   : > { %v5060_v4 = vpop.eup %5059  ;;  %v2340_v46 = vmul.f32 1.442695, %v2317_v3 }
 0x6b3   : > { %v2364_v51 = vmul.f32 %v5060_v4, %v2300_v6  ;;  %v6605_v4 = vld [vmem:[%s5522_s25 + $0x48] sm:$0xff] }
 0x6b4   : > { %5061 = vpow2.f32 %v2340_v46  ;;  %2192 = vadd.xlane.f32.xlu2 %v2191_v28 }
 0x6b5   : > { %v2380_v43 = vadd.f32 %v2364_v51, %v2203_v30  ;;  %v2256_v32 = vpop.xlane.xlu2 %2255  ;;  %v2172_v53 = vpop.xlane.xlu0 %2171 }
 0x6b6   : > { %v2286_v26 = vadd.f32 %v6302_v27, %v2256_v32  ;;  %v2204_v25 = vadd.f32 %v6285_v62, %v2172_v53 }
 0x6b7   : > { %2397 = vst.msk [vmem:[%s5535_s28 + $0x30] sm:$0xff] %vm2390_vm4, %v2380_v43  ;;  %2439 = vperm.xlu0 %4937, %v2380_v43  }
 0x6b8   : > { %v2318_v39 = vsub.f32 0.0, %v2286_v26  ;;  %v2301_v57 = vsub.f32 %v6258_v48, %v2204_v25 }
 0x6ba   : > { %v5062_v29 = vpop.eup %5061  ;;  %v2342_v61 = vmul.f32 1.442695, %v2318_v39 }
 0x6bb   : > { %v2365_v11 = vmul.f32 %v5062_v29, %v2301_v57 }
 0x6bc   : > { %5063 = vpow2.f32 %v2342_v61 }
 0x6bd   : > { %v2381_v19 = vadd.f32 %v2365_v11, %v2204_v25  ;;  %v2175_v54 = vpop.xlane.xlu0 %2174  ;;  %v2178_v58 = vpop.xlane.xlu2 %2177 }
 0x6be   : > { %v2205_v21 = vadd.f32 %v6285_v62, %v2175_v54  ;;  %v2206_v36 = vadd.f32 %v6285_v62, %v2178_v58 }
 0x6bf   : > { %2398 = vst.msk [vmem:[%s5535_s28 + $0x38] sm:$0xff] %vm2390_vm4, %v2381_v19  ;;  %2444 = vperm.xlu0 %4937, %v2381_v19  }
 0x6c0   : > { %v2302_v48 = vsub.f32 %v6265_v55, %v2205_v21  ;;  %2276 = vadd.xlane.f32.xlu1 %v2275_v56  ;;  %v2303_v46 = vsub.f32 %v6605_v4, %v2206_v36 }
 0x6c2   : > { %v5064_v47 = vpop.eup %5063 }
 0x6c3   : > { %v2366_v41 = vmul.f32 %v5064_v47, %v2302_v48 }
 0x6c5   : > { %v2382_v44 = vadd.f32 %v2366_v41, %v2205_v21  ;;  %v2259_v60 = vpop.xlane.xlu0 %2258  ;;  %v2181_v28 = vpop.xlane.xlu1 %2180 }
 0x6c6   : > { %v2287_v5 = vadd.f32 %v6302_v27, %v2259_v60  ;;  %v2207_v53 = vadd.f32 %v6285_v62, %v2181_v28 }
 0x6c7   : > { %2399 = vst.msk [vmem:[%s5535_s28 + $0x40] sm:$0xff] %vm2390_vm4, %v2382_v44  ;;  %2449 = vperm.xlu0 %4937, %v2382_v44  }
 0x6c8   : > { %v2319_v40 = vsub.f32 0.0, %v2287_v5  ;;  %v2304_v13 = vsub.f32 %v6293_v1, %v2207_v53 }
 0x6ca   : > { %v2344_v30 = vmul.f32 1.442695, %v2319_v40 }
 0x6cc   : > { %5065 = vpow2.f32 %v2344_v30 }
 0x6cd   : > { %v2262_v15 = vpop.xlane.xlu0 %2261 }
 0x6ce   : > { %v2184_v3 = vpop.xlane.xlu2 %2183  ;;  %v2288_v55 = vadd.f32 %v6302_v27, %v2262_v15 }
 0x6cf   : > { %v2208_v48 = vadd.f32 %v6285_v62, %v2184_v3 }
 0x6d0   : > { %v2320_v6 = vsub.f32 0.0, %v2288_v55 }
 0x6d1   : > { %v2305_v1 = vsub.f32 %v6313_v50, %v2208_v48 }
 0x6d2   : > { %v5066_v51 = vpop.eup %5065  ;;  %v2346_v43 = vmul.f32 1.442695, %v2320_v6 }
 0x6d3   : > { %v2367_v32 = vmul.f32 %v5066_v51, %v2303_v46 }
 0x6d4   : > { %5067 = vpow2.f32 %v2346_v43 }
 0x6d5   : > { %v2265_v26 = vpop.xlane.xlu0 %2264  ;;  %v2383_v25 = vadd.f32 %v2367_v32, %v2206_v36  ;;  %v2148_v32 = vmul.f32 %v6407_v17, %v2131_v0 }
 0x6d6   : > { %v2268_v39 = vpop.xlane.xlu2 %2267  ;;  %v2289_v57 = vadd.f32 %v6302_v27, %v2265_v26 }
 0x6d7   : > { %v2290_v29 = vadd.f32 %v6302_v27, %v2268_v39  ;;  %2454 = vperm.xlu2 %4936, %v2383_v25   ;;  %2400 = vst.msk [vmem:[%s5535_s28 + $0x48] sm:$0xff] %vm2390_vm4, %v2383_v25 }
 0x6d8   : > { %v2321_v61 = vsub.f32 0.0, %v2289_v57 }
 0x6d9   : > { %v2322_v11 = vsub.f32 0.0, %v2290_v29  ;;  %2419 = vperm.xlu1 %4935, %v6536_v9  }
 0x6da   : > { %v5068_v19 = vpop.eup %5067  ;;  %v2348_v54 = vmul.f32 1.442695, %v2321_v61 }
 0x6db   : > { %v2350_v21 = vmul.f32 1.442695, %v2322_v11  ;;  %v2368_v56 = vmul.f32 %v5068_v19, %v2304_v13  ;;  %v6654_v13 = vld [vmem:[%s7940_s8] ss:$0 sm:$0xff] }
 0x6dc   : > { %5069 = vpow2.f32 %v2348_v54 }
 0x6dd   : > { %5071 = vpow2.f32 %v2350_v21  ;;  %v2384_v47 = vadd.f32 %v2368_v56, %v2207_v53 }
 0x6de   : > { %v2271_v41 = vpop.xlane.xlu1 %2270  ;;  %v2187_v44 = vpop.xlane.xlu2 %2186 }
 0x6df   : > { %v2291_v60 = vadd.f32 %v6302_v27, %v2271_v41  ;;  %v2209_v58 = vadd.f32 %v6285_v62, %v2187_v44  ;;  %2459 = vperm.xlu0 %4937, %v2384_v47   ;;  %2401 = vst.msk [vmem:[%s5535_s28 + $0x50] sm:$0xff] %vm2390_vm4, %v2384_v47 }
 0x6e1   : > { %v2323_v9 = vsub.f32 0.0, %v2291_v60  ;;  %v2306_v5 = vsub.f32 %v6309_v38, %v2209_v58  ;;  %2424 = vperm.xlu1 %4935, %v6557_v34  }
 0x6e2   : > { %v5070_v40 = vpop.eup %5069 }
 0x6e3   : > { %v5072_v30 = vpop.eup %5071  ;;  %v2352_v36 = vmul.f32 1.442695, %v2323_v9  ;;  %v2369_v15 = vmul.f32 %v5070_v40, %v2305_v1 }
 0x6e4   : > { %v2370_v3 = vmul.f32 %v5072_v30, %v2306_v5 }
 0x6e5   : > { %5073 = vpow2.f32 %v2352_v36  ;;  %v2385_v55 = vadd.f32 %v2369_v15, %v2208_v48 }
 0x6e6   : > { %v2386_v6 = vadd.f32 %v2370_v3, %v2209_v58  ;;  %v2190_v46 = vpop.xlane.xlu2 %2189 }
 0x6e7   : > { %v2210_v51 = vadd.f32 %v6285_v62, %v2190_v46  ;;  %2402 = vst.msk [vmem:[%s5535_s28 + $0x58] sm:$0xff] %vm2390_vm4, %v2385_v55  ;;  %v6635_v62 = vperm.slane %v6332_v49, 3  ;;  %v6692_v46 = vld [vmem:[%s7941_s9] ss:$0 sm:$0xff] }
 0x6e8   : > { %2403 = vst.msk [vmem:[%s5535_s28 + $0x60] sm:$0xff] %vm2390_vm4, %v2386_v6  ;;  %2469 = vperm.xlu0 %4937, %v2386_v6  }
 0x6e9   : > { %v2307_v38 = vsub.f32 %v6322_v2, %v2210_v51  ;;  %v2194_v2 = vsel %vm446_vm0, %v2148_v32, 0.0 }
 0x6eb   : > { %v5074_v50 = vpop.eup %5073 }
 0x6ec   : > { %v2371_v34 = vmul.f32 %v5074_v50, %v2307_v38 }
 0x6ee   : > { %v2387_v28 = vadd.f32 %v2371_v34, %v2210_v51  ;;  %v2415_v25 = vpop.permute.xlu2 %2414 }
 0x6ef   : > { %v2489_v57 = vmul.f32 %v6635_v62, %v2415_v25 }
 0x6f0   : > { %2404 = vst.msk [vmem:[%s5535_s28 + $0x68] sm:$0xff] %vm2390_vm4, %v2387_v28  ;;  %2474 = vperm.xlu0 %4937, %v2387_v28   ;;  %v2274_v43 = vpop.xlane.xlu1 %2273 }
 0x6f1   : > { %v6646_v49 = vadd.f32 %v2489_v57, %v6348_v23  ;;  %v2292_v37 = vadd.f32 %v6302_v27, %v2274_v43 }
 0x6f3   : > { %v2521_v17 = vmax.f32 %v6646_v49, 0.0  ;;  %v2324_v0 = vsub.f32 0.0, %v2292_v37 }
 0x708   : > { %v2410_v53 = vpop.permute.xlu1 %2409 }
 0x709   : > { %v2488_v26 = vmul.f32 %v6635_v62, %v2410_v53 }
 0x70b   : > { %v6640_v39 = vadd.f32 %v2488_v26, %v6341_v10  ;;  %2195 = vadd.xlane.f32.xlu1 %v2194_v2  ;;  %v2354_v10 = vmul.f32 1.442695, %v2324_v0 }
 0x70d   : > { %v2520_v29 = vmax.f32 %v6640_v39, 0.0  ;;  %5075 = vpow2.f32 %v2354_v10 }
 0x70f   : > { %4817 = vmatmul.msk.f32.vlgmr.msrb.gmra.mxu0 %vm446_vm0, %v2520_v29 }
 0x713   : > { %v5076_v19 = vpop.eup %5075 }
 0x717   : > { %4818 = vmatmul.msk.f32.gmra.mxu0 %vm446_vm0, %v2521_v17 }
 0x719   : > { %v2430_v47 = vpop.permute.xlu0 %2429 }
 0x71a   : > { %v2492_v9 = vmul.f32 %v6635_v62, %v2430_v47 }
 0x721   : > { %v2435_v1 = vpop.permute.xlu0 %2434 }
 0x722   : > { %v2493_v40 = vmul.f32 %v6635_v62, %v2435_v1 }
 0x724   : > { %2464 = vperm.xlu1 %4935, %v2385_v55  }
 0x727   : > { %v2193_v61 = vpop.xlane.xlu2 %2192 }
 0x728   : > { %v2211_v11 = vadd.f32 %v6654_v13, %v2193_v61 }
 0x729   : > { %v2440_v36 = vpop.permute.xlu0 %2439 }
 0x72a   : > { %v2308_v23 = vsub.f32 %v6361_v22, %v2211_v11  ;;  %v2494_v15 = vmul.f32 %v6635_v62, %v2440_v36  ;;  %v6748_v36 = vld [vmem:[%s7937_s5] sm:$0xff] }
 0x72c   : > { %v2372_v54 = vmul.f32 %v5076_v19, %v2308_v23 }
 0x72e   : > { %v2388_v21 = vadd.f32 %v2372_v54, %v2211_v11 }
 0x730   : > { %2405 = vst.msk [vmem:[%s5535_s28 + $0x70] sm:$0xff] %vm2390_vm4, %v2388_v21  ;;  %2479 = vperm.xlu2 %4936, %v2388_v21  }
 0x731   : > { %v2445_v55 = vpop.permute.xlu0 %2444  ;;  %v2455_v53 = vpop.permute.xlu2 %2454 }
 0x732   : > { %v2495_v6 = vmul.f32 %v6635_v62, %v2445_v55 }
 0x733   : > { %v2277_v27 = vpop.xlane.xlu1 %2276 }
 0x734   : > { %v6698_v38 = vadd.f32 %v2495_v6, %v6400_v45  ;;  %v2497_v45 = vmul.f32 %v6635_v62, %v2455_v53 }
 0x736   : > { %v2527_v43 = vmax.f32 %v6698_v38, 0.0  ;;  %v6712_v37 = vadd.f32 %v2497_v45, %v6423_v14  ;;  %v6726_v14 = vld [vmem:[%s7938_s6] sm:$0xff] }
 0x737   : > { %v6729_v19 = vperm.slane %v6726_v14, 4 }
 0x738   : > { %v2529_v61 = vmax.f32 %v6712_v37, 0.0 }
 0x739   : > { %v2450_v34 = vpop.permute.xlu0 %2449 }
 0x73a   : > { %v2496_v28 = vmul.f32 %v6635_v62, %v2450_v34 }
 0x73c   : > { %v6704_v32 = vadd.f32 %v2496_v28, %v6415_v42 }
 0x73e   : > { %v2528_v2 = vmax.f32 %v6704_v32, 0.0 }
 0x74b   : > { %v2420_v56 = vpop.permute.xlu1 %2419 }
 0x74c   : > { %v2490_v48 = vmul.f32 %v6635_v62, %v2420_v56 }
 0x74e   : > { %v6662_v41 = vadd.f32 %v2490_v48, %v6354_v63  ;;  %v6674_v63 = vadd.f32 %v2492_v9, %v6374_v20  ;;  %v6686_v20 = vadd.f32 %v2494_v15, %v6392_v7  ;;  %v6751_v15 = vperm.slane %v6748_v36, 4 }
 0x750   : > { %v2522_v44 = vmax.f32 %v6662_v41, 0.0  ;;  %v2524_v30 = vmax.f32 %v6674_v63, 0.0  ;;  %v2526_v51 = vmax.f32 %v6686_v20, 0.0 }
 0x751   : > { %v2460_v0 = vpop.permute.xlu0 %2459 }
 0x752   : > { %4819 = vmatmul.msk.f32.gmra.mxu0 %vm446_vm0, %v2522_v44  ;;  %v2498_v10 = vmul.f32 %v6635_v62, %v2460_v0 }
 0x753   : > { %v2425_v60 = vpop.permute.xlu1 %2424 }
 0x754   : > { %v2491_v22 = vmul.f32 %v6635_v62, %v2425_v60 }
 0x756   : > { %v6668_v58 = vadd.f32 %v2491_v22, %v6368_v8  ;;  %v6680_v8 = vadd.f32 %v2493_v40, %v6382_v16  ;;  %v2293_v16 = vadd.f32 %v6692_v46, %v2277_v27 }
 0x758   : > { %v2523_v5 = vmax.f32 %v6668_v58, 0.0  ;;  %v2525_v3 = vmax.f32 %v6680_v8, 0.0  ;;  %v2325_v50 = vsub.f32 0.0, %v2293_v16 }
 0x75a   : > { %4820 = vmatmul.msk.f32.gmra.mxu0 %vm446_vm0, %v2523_v5  ;;  %v2356_v7 = vmul.f32 1.442695, %v2325_v50  ;;  %v2470_v47 = vpop.permute.xlu0 %2469 }
 0x75b   : > { %v2500_v5 = vmul.f32 %v6635_v62, %v2470_v47 }
 0x75c   : > { %5077 = vpow2.f32 %v2356_v7 }
 0x762   : > { %4821 = vmatmul.msk.f32.gmra.mxu0 %vm446_vm0, %v2524_v30  ;;  %v5078_v29 = vpop.eup %5077  ;;  %v2475_v55 = vpop.permute.xlu0 %2474 }
 0x763   : > { %v2501_v6 = vmul.f32 %v6635_v62, %v2475_v55 }
 0x765   : > { %v6762_v50 = vadd.f32 %v2501_v6, %v6451_v31 }
 0x76a   : > { %4822 = vmatmul.msk.f32.gmra.mxu0 %vm446_vm0, %v2525_v3 }
 0x772   : > { %4823 = vmatmul.msk.f32.gmra.mxu0 %vm446_vm0, %v2526_v51 }
 0x77a   : > { %4824 = vmatmul.msk.f32.gmra.mxu0 %vm446_vm0, %v2527_v43 }
 0x77e   : > { %v2196_v26 = vpop.xlane.xlu1 %2195 }
 0x77f   : > { %v2212_v25 = vadd.f32 %v6654_v13, %v2196_v26 }
 0x781   : > { %v2309_v57 = vsub.f32 %v6385_v35, %v2212_v25  ;;  %v6720_v35 = vadd.f32 %v2498_v10, %v6429_v52 }
 0x782   : > { %4825 = vmatmul.msk.f32.gmra.mxu0 %vm446_vm0, %v2528_v2 }
 0x783   : > { %v2373_v17 = vmul.f32 %v5078_v29, %v2309_v57  ;;  %v2530_v21 = vmax.f32 %v6720_v35, 0.0 }
 0x785   : > { %v2389_v42 = vadd.f32 %v2373_v17, %v2212_v25 }
 0x787   : > { %2406 = vst.msk [vmem:[%s5535_s28 + $0x78] sm:$0xff] %vm2390_vm4, %v2389_v42  ;;  %2484 = vperm.xlu0 %4937, %v2389_v42  }
 0x78a   : > { %4826 = vmatmul.msk.f32.gmra.mxu0 %vm446_vm0, %v2529_v61  ;;  %v2480_v34 = vpop.permute.xlu2 %2479 }
 0x78b   : > { %v2502_v7 = vmul.f32 %v6635_v62, %v2480_v34 }
 0x78c   : > { %v2601_v11 = vpop.f32.mrf.mxu0 }
 0x78d   : > { %v2602_v23 = vadd.f32 %v6579_v33, %v2601_v11  ;;  %v6769_v43 = vadd.f32 %v2502_v7, %v6463_v59 }
 0x78f   : > { %v2649_v54 = vmax.f32 %v2602_v23, 0.0  ;;  %v2534_v26 = vmax.f32 %v6769_v43, 0.0 }
 0x791   : > { %v2747_v27 = vmul.f32 %v6729_v19, %v2649_v54  ;;  %v2666_v28 = vmul.f32 %v6751_v15, %v2649_v54 }
 0x792   : > { %4827 = vmatmul.msk.f32.gmra.mxu0 %vm446_vm0, %v2530_v21 }
 0x793   : > { %v2763_v52 = vsel %vm446_vm0, %v2747_v27, 0.0  ;;  %v2682_v53 = vsel %vm446_vm0, %v2666_v28, 0.0 }
 0x794   : > { %v2604_v56 = vpop.f32.mrf.mxu0  ;;  %2764 = vadd.xlane.f32.xlu1 %v2763_v52 }
 0x795   : > { %v2605_v48 = vadd.f32 %v6579_v33, %v2604_v56 }
 0x796   : > { %v2465_v44 = vpop.permute.xlu1 %2464 }
 0x797   : > { %v2650_v60 = vmax.f32 %v2605_v48, 0.0  ;;  %v2499_v22 = vmul.f32 %v6635_v62, %v2465_v44 }
 0x799   : > { %v6738_v1 = vadd.f32 %v2499_v22, %v6435_v12  ;;  %v2748_v9 = vmul.f32 %v6729_v19, %v2650_v60  ;;  %v6754_v12 = vadd.f32 %v2500_v5, %v6442_v24  ;;  %v2667_v3 = vmul.f32 %v6751_v15, %v2650_v60 }
 0x79a   : > { %v2533_v24 = vmax.f32 %v6762_v50, 0.0 }
 0x79b   : > { %v2766_v40 = vsel %vm446_vm0, %v2748_v9, 0.0  ;;  %v2531_v30 = vmax.f32 %v6738_v1, 0.0  ;;  %v2685_v16 = vsel %vm446_vm0, %v2667_v3, 0.0  ;;  %v2532_v51 = vmax.f32 %v6754_v12, 0.0 }
 0x79c   : > { %2767 = vadd.xlane.f32.xlu2 %v2766_v40 }
 0x79d   : > { %4828 = vmatmul.msk.f32.gmra.mxu0 %vm446_vm0, %v2531_v30 }
 0x7a4   : > { %2686 = vadd.xlane.f32.xlu2 %v2685_v16 }
 0x7a5   : > { %4829 = vmatmul.msk.f32.gmra.mxu0 %vm446_vm0, %v2532_v51 }
 0x7ad   : > { %4830 = vmatmul.msk.f32.gmra.mxu0 %vm446_vm0, %v2533_v24 }
 0x7b1   : > { %2683 = vadd.xlane.f32.xlu0 %v2682_v53 }
 0x7b5   : > { %4831 = vmatmul.msk.f32.gmra.mxu0 %vm446_vm0, %v2534_v26 }
 0x7cf   : > { %v2607_v31 = vpop.f32.mrf.mxu0 }
 0x7d0   : > { %v2608_v25 = vadd.f32 %v6579_v33, %v2607_v31 }
 0x7d2   : > { %v2651_v45 = vmax.f32 %v2608_v25, 0.0 }
 0x7d4   : > { %v2749_v2 = vmul.f32 %v6729_v19, %v2651_v45  ;;  %v2668_v0 = vmul.f32 %v6751_v15, %v2651_v45 }
 0x7d6   : > { %v2769_v57 = vsel %vm446_vm0, %v2749_v2, 0.0  ;;  %v2688_v61 = vsel %vm446_vm0, %v2668_v0, 0.0 }
 0x7d7   : > { %v2610_v29 = vpop.f32.mrf.mxu0  ;;  %2770 = vadd.xlane.f32.xlu1 %v2769_v57 }
 0x7d8   : > { %v2611_v59 = vadd.f32 %v6579_v33, %v2610_v29 }
 0x7da   : > { %v2652_v17 = vmax.f32 %v2611_v59, 0.0 }
 0x7dc   : > { %v2750_v42 = vmul.f32 %v6729_v19, %v2652_v17  ;;  %v2669_v21 = vmul.f32 %v6751_v15, %v2652_v17 }
 0x7de   : > { %v2772_v10 = vsel %vm446_vm0, %v2750_v42, 0.0  ;;  %v2691_v52 = vsel %vm446_vm0, %v2669_v21, 0.0 }
 0x7df   : > { %2773 = vadd.xlane.f32.xlu0 %v2772_v10  ;;  %2689 = vadd.xlane.f32.xlu1 %v2688_v61  ;;  %v2613_v11 = vpop.f32.mrf.mxu0 }
 0x7e0   : > { %v2614_v23 = vadd.f32 %v6579_v33, %v2613_v11 }
 0x7e2   : > { %v2653_v54 = vmax.f32 %v2614_v23, 0.0 }
 0x7e4   : > { %v2751_v27 = vmul.f32 %v6729_v19, %v2653_v54  ;;  %v2670_v60 = vmul.f32 %v6751_v15, %v2653_v54 }
 0x7e6   : > { %v2775_v56 = vsel %vm446_vm0, %v2751_v27, 0.0  ;;  %v2694_v9 = vsel %vm446_vm0, %v2670_v60, 0.0 }
 0x7e7   : > { %2692 = vadd.xlane.f32.xlu0 %v2691_v52  ;;  %2776 = vadd.xlane.f32.xlu2 %v2775_v56  ;;  %v2616_v48 = vpop.f32.mrf.mxu0 }
 0x7e8   : > { %v2617_v47 = vadd.f32 %v6579_v33, %v2616_v48 }
 0x7ea   : > { %v2654_v44 = vmax.f32 %v2617_v47, 0.0 }
 0x7ec   : > { %v2752_v22 = vmul.f32 %v6729_v19, %v2654_v44  ;;  %v2671_v55 = vmul.f32 %v6751_v15, %v2654_v44 }
 0x7ee   : > { %v2778_v5 = vsel %vm446_vm0, %v2752_v22, 0.0  ;;  %v2697_v16 = vsel %vm446_vm0, %v2671_v55, 0.0 }
 0x7ef   : > { %2695 = vadd.xlane.f32.xlu2 %v2694_v9  ;;  %2779 = vadd.xlane.f32.xlu1 %v2778_v5  ;;  %v2619_v40 = vpop.f32.mrf.mxu0 }
 0x7f0   : > { %v2620_v30 = vadd.f32 %v6579_v33, %v2619_v40 }
 0x7f2   : > { %v2655_v3 = vmax.f32 %v2620_v30, 0.0 }
 0x7f4   : > { %v2753_v6 = vmul.f32 %v6729_v19, %v2655_v3  ;;  %v2672_v26 = vmul.f32 %v6751_v15, %v2655_v3 }
 0x7f6   : > { %v2781_v51 = vsel %vm446_vm0, %v2753_v6, 0.0  ;;  %v2700_v45 = vsel %vm446_vm0, %v2672_v26, 0.0 }
 0x7f7   : > { %2698 = vadd.xlane.f32.xlu1 %v2697_v16  ;;  %2782 = vadd.xlane.f32.xlu0 %v2781_v51  ;;  %v2622_v34 = vpop.f32.mrf.mxu0 }
 0x7f8   : > { %v2623_v7 = vadd.f32 %v6579_v33, %v2622_v34 }
 0x7f9   : > { %v2485_v24 = vpop.permute.xlu0 %2484 }
 0x7fa   : > { %v2656_v28 = vmax.f32 %v2623_v7, 0.0  ;;  %v2503_v53 = vmul.f32 %v6635_v62, %v2485_v24  ;;  %v6828_v7 = vld [vmem:[%s5522_s25 + $0x8] sm:$0xff] }
 0x7fc   : > { %v6801_v31 = vadd.f32 %v2503_v53, %v6469_v18  ;;  %v2754_v25 = vmul.f32 %v6729_v19, %v2656_v28  ;;  %v2673_v17 = vmul.f32 %v6751_v15, %v2656_v28 }
 0x7fe   : > { %v2784_v2 = vsel %vm446_vm0, %v2754_v25, 0.0  ;;  %v2535_v57 = vmax.f32 %v6801_v31, 0.0  ;;  %v2703_v0 = vsel %vm446_vm0, %v2673_v17, 0.0 }
 0x7ff   : > { %2701 = vadd.xlane.f32.xlu0 %v2700_v45  ;;  %2785 = vadd.xlane.f32.xlu2 %v2784_v2  ;;  %v2625_v29 = vpop.f32.mrf.mxu0 }
 0x800   : > { %v2626_v59 = vadd.f32 %v6579_v33, %v2625_v29  ;;  %4832 = vmatmul.msk.f32.gmra.mxu0 %vm446_vm0, %v2535_v57 }
 0x802   : > { %v2657_v62 = vmax.f32 %v2626_v59, 0.0 }
 0x804   : > { %v2755_v18 = vmul.f32 %v6729_v19, %v2657_v62  ;;  %v2674_v11 = vmul.f32 %v6751_v15, %v2657_v62 }
 0x806   : > { %v2787_v42 = vsel %vm446_vm0, %v2755_v18, 0.0  ;;  %v2706_v27 = vsel %vm446_vm0, %v2674_v11, 0.0 }
 0x807   : > { %2704 = vadd.xlane.f32.xlu0 %v2703_v0  ;;  %v2628_v10 = vpop.f32.mrf.mxu0  ;;  %2788 = vadd.xlane.f32.xlu2 %v2787_v42  ;;  %v2765_v9 = vpop.xlane.xlu1 %2764 }
 0x808   : > { %v2629_v61 = vadd.f32 %v6579_v33, %v2628_v10  ;;  %v2811_v30 = vadd.f32 %v6692_v46, %v2765_v9 }
 0x80a   : > { %v2658_v23 = vmax.f32 %v2629_v61, 0.0  ;;  %v2843_v51 = vsub.f32 0.0, %v2811_v30 }
 0x80c   : > { %v2675_v54 = vmul.f32 %v6751_v15, %v2658_v23  ;;  %v2756_v44 = vmul.f32 %v6729_v19, %v2658_v23  ;;  %v2859_v2 = vmul.f32 1.442695, %v2843_v51 }
 0x80e   : > { %v2709_v21 = vsel %vm446_vm0, %v2675_v54, 0.0  ;;  %v2790_v3 = vsel %vm446_vm0, %v2756_v44, 0.0  ;;  %v6843_v54 = vld [vmem:[%s5522_s25] sm:$0xff] }
 0x80f   : > { %v2768_v52 = vpop.xlane.xlu2 %2767  ;;  %2710 = vadd.xlane.f32.xlu1 %v2709_v21  ;;  %2707 = vadd.xlane.f32.xlu0 %v2706_v27  ;;  %v2631_v56 = vpop.f32.mrf.mxu0 }
 0x810   : > { %v2812_v48 = vadd.f32 %v6692_v46, %v2768_v52  ;;  %v2632_v47 = vadd.f32 %v6579_v33, %v2631_v56 }
 0x812   : > { %v2844_v60 = vsub.f32 0.0, %v2812_v48  ;;  %v2659_v22 = vmax.f32 %v2632_v47, 0.0 }
 0x814   : > { %v2861_v5 = vmul.f32 1.442695, %v2844_v60  ;;  %v2676_v40 = vmul.f32 %v6751_v15, %v2659_v22  ;;  %v2757_v34 = vmul.f32 %v6729_v19, %v2659_v22 }
 0x816   : > { %5079 = vpow2.f32 %v2861_v5  ;;  %v2712_v55 = vsel %vm446_vm0, %v2676_v40, 0.0  ;;  %v2793_v57 = vsel %vm446_vm0, %v2757_v34, 0.0 }
 0x817   : > { %v2687_v6 = vpop.xlane.xlu2 %2686  ;;  %2791 = vadd.xlane.f32.xlu0 %v2790_v3  ;;  %2713 = vadd.xlane.f32.xlu2 %v2712_v55  ;;  %5081 = vpow2.f32 %v2859_v2  ;;  %v5296_v55 = vmov 4  }
 0x818   : > { %v2731_v16 = vadd.f32 %v6654_v13, %v2687_v6  ;;  %4939 = vset.pattern.permute.xlu2 %v5296_v55  ;;  %4938 = vset.pattern.permute.xlu1 %v5296_v55 }
 0x819   : > { %4940 = vset.pattern.permute.xlu0 %v5296_v55 }
 0x81a   : > { %v2828_v24 = vsub.f32 %v6828_v7, %v2731_v16  ;;  %v2634_v28 = vpop.f32.mrf.mxu0 }
 0x81b   : > { %v2635_v53 = vadd.f32 %v6579_v33, %v2634_v28 }
 0x81c   : > { %v5080_v26 = vpop.eup %5079 }
 0x81d   : > { %v2892_v25 = vmul.f32 %v5080_v26, %v2828_v24  ;;  %v2660_v45 = vmax.f32 %v2635_v53, 0.0  ;;  %v5082_v27 = vpop.eup %5081 }
 0x81f   : > { %v2908_v29 = vadd.f32 %v2892_v25, %v2731_v16  ;;  %v2677_v59 = vmul.f32 %v6751_v15, %v2660_v45  ;;  %2794 = vadd.xlane.f32.xlu0 %v2793_v57  ;;  %v2758_v17 = vmul.f32 %v6729_v19, %v2660_v45 }
 0x821   : > { %2925 = vst.msk [vmem:[%s5535_s28 + $0x8] sm:$0xff] %vm2923_vm5, %v2908_v29  ;;  %v2715_v62 = vsel %vm446_vm0, %v2677_v59, 0.0  ;;  %v2796_v11 = vsel %vm446_vm0, %v2758_v17, 0.0 }
 0x822   : > { %2716 = vadd.xlane.f32.xlu1 %v2715_v62  ;;  %v2637_v18 = vpop.f32.mrf.mxu0  ;;  %v6868_v62 = vld [vmem:[%s5522_s25 + $0x10] sm:$0xff] }
 0x823   : > { %v2638_v0 = vadd.f32 %v6579_v33, %v2637_v18 }
 0x824   : > { %v2684_v42 = vpop.xlane.xlu0 %2683 }
 0x825   : > { %v2661_v10 = vmax.f32 %v2638_v0, 0.0  ;;  %v2730_v61 = vadd.f32 %v6654_v13, %v2684_v42 }
 0x827   : > { %v2759_v23 = vmul.f32 %v6729_v19, %v2661_v10  ;;  %v2827_v21 = vsub.f32 %v6843_v54, %v2730_v61  ;;  %2797 = vadd.xlane.f32.xlu0 %v2796_v11  ;;  %v2678_v60 = vmul.f32 %v6751_v15, %v2661_v10 }
 0x829   : > { %v2891_v52 = vmul.f32 %v5082_v27, %v2827_v21  ;;  %v2799_v56 = vsel %vm446_vm0, %v2759_v23, 0.0  ;;  %v2718_v5 = vsel %vm446_vm0, %v2678_v60, 0.0 }
 0x82a   : > { %2800 = vadd.xlane.f32.xlu1 %v2799_v56  ;;  %v2640_v48 = vpop.f32.mrf.mxu0 }
 0x82b   : > { %v2907_v47 = vadd.f32 %v2891_v52, %v2730_v61  ;;  %v2641_v44 = vadd.f32 %v6579_v33, %v2640_v48  ;;  %v6876_v52 = vld [vmem:[%s5522_s25 + $0x18] sm:$0xff] }
 0x82d   : > { %2924 = vst.msk [vmem:[%s5535_s28] sm:$0xff] %vm2923_vm5, %v2907_v47  ;;  %v2662_v22 = vmax.f32 %v2641_v44, 0.0 }
 0x82f   : > { %v2760_v9 = vmul.f32 %v6729_v19, %v2662_v22  ;;  %v2679_v6 = vmul.f32 %v6751_v15, %v2662_v22 }
 0x831   : > { %v2802_v40 = vsel %vm446_vm0, %v2760_v9, 0.0  ;;  %v2721_v24 = vsel %vm446_vm0, %v2679_v6, 0.0 }
 0x832   : > { %2719 = vadd.xlane.f32.xlu1 %v2718_v5  ;;  %v2643_v30 = vpop.f32.mrf.mxu0  ;;  %2803 = vadd.xlane.f32.xlu0 %v2802_v40 }
 0x833   : > { %v6855_v3 = vadd.f32 %v6579_v33, %v2643_v30  ;;  %v6884_v30 = vld [vmem:[%s5522_s25 + $0x20] sm:$0xff] }
 0x835   : > { %v2663_v16 = vmax.f32 %v6855_v3, 0.0 }
 0x837   : > { %v2761_v51 = vmul.f32 %v6729_v19, %v2663_v16 }
 0x839   : > { %v2805_v34 = vsel %vm446_vm0, %v2761_v51, 0.0 }
 0x83a   : > { %2806 = vadd.xlane.f32.xlu2 %v2805_v34  ;;  %2722 = vadd.xlane.f32.xlu1 %v2721_v24 }
 0x84a   : > { %v2771_v28 = vpop.xlane.xlu1 %2770 }
 0x84b   : > { %v2813_v53 = vadd.f32 %v6692_v46, %v2771_v28 }
 0x84d   : > { %v2845_v26 = vsub.f32 0.0, %v2813_v53 }
 0x84f   : > { %v2863_v25 = vmul.f32 1.442695, %v2845_v26 }
 0x851   : > { %5083 = vpow2.f32 %v2863_v25 }
 0x852   : > { %v2690_v45 = vpop.xlane.xlu1 %2689  ;;  %2947 = vperm.xlu2 %4939, %v2908_v29   ;;  %v2774_v2 = vpop.xlane.xlu0 %2773 }
 0x853   : > { %v2732_v57 = vadd.f32 %v6654_v13, %v2690_v45  ;;  %v2814_v59 = vadd.f32 %v6692_v46, %v2774_v2  ;;  %2942 = vperm.xlu1 %4938, %v2907_v47   ;;  %v6892_v2 = vld [vmem:[%s5522_s25 + $0x28] sm:$0xff] }
 0x855   : > { %v2829_v17 = vsub.f32 %v6868_v62, %v2732_v57  ;;  %v2846_v18 = vsub.f32 0.0, %v2814_v59 }
 0x857   : > { %v5084_v0 = vpop.eup %5083  ;;  %v2865_v42 = vmul.f32 1.442695, %v2846_v18 }
 0x858   : > { %v2893_v10 = vmul.f32 %v5084_v0, %v2829_v17 }
 0x859   : > { %5085 = vpow2.f32 %v2865_v42 }
 0x85a   : > { %v2909_v61 = vadd.f32 %v2893_v10, %v2732_v57  ;;  %v2777_v11 = vpop.xlane.xlu2 %2776  ;;  %v2693_v29 = vpop.xlane.xlu0 %2692 }
 0x85b   : > { %v2815_v23 = vadd.f32 %v6692_v46, %v2777_v11  ;;  %v2733_v21 = vadd.f32 %v6654_v13, %v2693_v29 }
 0x85c   : > { %2926 = vst.msk [vmem:[%s5535_s28 + $0x10] sm:$0xff] %vm2923_vm5, %v2909_v61  ;;  %2952 = vperm.xlu1 %4938, %v2909_v61  }
 0x85d   : > { %v2847_v27 = vsub.f32 0.0, %v2815_v23  ;;  %v2830_v56 = vsub.f32 %v6876_v52, %v2733_v21 }
 0x85f   : > { %v5086_v48 = vpop.eup %5085  ;;  %v2867_v47 = vmul.f32 1.442695, %v2847_v27 }
 0x860   : > { %v2894_v44 = vmul.f32 %v5086_v48, %v2830_v56 }
 0x861   : > { %5087 = vpow2.f32 %v2867_v47 }
 0x862   : > { %v2910_v60 = vadd.f32 %v2894_v44, %v2733_v21  ;;  %v2696_v22 = vpop.xlane.xlu2 %2695  ;;  %v2780_v9 = vpop.xlane.xlu1 %2779  ;;  %v6900_v21 = vld [vmem:[%s5522_s25 + $0x30] sm:$0xff] }
 0x863   : > { %v2734_v5 = vadd.f32 %v6654_v13, %v2696_v22  ;;  %v2816_v40 = vadd.f32 %v6692_v46, %v2780_v9 }
 0x864   : > { %2927 = vst.msk [vmem:[%s5535_s28 + $0x18] sm:$0xff] %vm2923_vm5, %v2910_v60  ;;  %2957 = vperm.xlu2 %4939, %v2910_v60  }
 0x865   : > { %v2831_v55 = vsub.f32 %v6884_v30, %v2734_v5  ;;  %v2848_v6 = vsub.f32 0.0, %v2816_v40 }
 0x867   : > { %v5088_v51 = vpop.eup %5087  ;;  %v2869_v34 = vmul.f32 1.442695, %v2848_v6 }
 0x868   : > { %v2895_v24 = vmul.f32 %v5088_v51, %v2831_v55  ;;  %v6908_v55 = vld [vmem:[%s5522_s25 + $0x38] sm:$0xff] }
 0x869   : > { %5089 = vpow2.f32 %v2869_v34 }
 0x86a   : > { %v2911_v28 = vadd.f32 %v2895_v24, %v2734_v5  ;;  %v2699_v53 = vpop.xlane.xlu1 %2698  ;;  %v2783_v26 = vpop.xlane.xlu0 %2782 }
 0x86b   : > { %v2735_v25 = vadd.f32 %v6654_v13, %v2699_v53  ;;  %v2817_v45 = vadd.f32 %v6692_v46, %v2783_v26 }
 0x86c   : > { %2928 = vst.msk [vmem:[%s5535_s28 + $0x20] sm:$0xff] %vm2923_vm5, %v2911_v28  ;;  %2962 = vperm.xlu0 %4940, %v2911_v28  }
 0x86d   : > { %v2832_v57 = vsub.f32 %v6892_v2, %v2735_v25  ;;  %v2849_v59 = vsub.f32 0.0, %v2817_v45 }
 0x86f   : > { %v5090_v17 = vpop.eup %5089  ;;  %v2871_v18 = vmul.f32 1.442695, %v2849_v59 }
 0x870   : > { %v2896_v0 = vmul.f32 %v5090_v17, %v2832_v57 }
 0x871   : > { %5091 = vpow2.f32 %v2871_v18 }
 0x872   : > { %v2912_v42 = vadd.f32 %v2896_v0, %v2735_v25  ;;  %v2786_v10 = vpop.xlane.xlu2 %2785  ;;  %v2702_v61 = vpop.xlane.xlu0 %2701  ;;  %v6915_v25 = vld [vmem:[%s5522_s25 + $0x40] sm:$0xff] }
 0x873   : > { %v2818_v11 = vadd.f32 %v6692_v46, %v2786_v10  ;;  %v2736_v29 = vadd.f32 %v6654_v13, %v2702_v61 }
 0x874   : > { %2929 = vst.msk [vmem:[%s5535_s28 + $0x28] sm:$0xff] %vm2923_vm5, %v2912_v42  ;;  %2967 = vperm.xlu2 %4939, %v2912_v42  }
 0x875   : > { %v2850_v23 = vsub.f32 0.0, %v2818_v11  ;;  %v2833_v27 = vsub.f32 %v6900_v21, %v2736_v29 }
 0x877   : > { %v5092_v56 = vpop.eup %5091  ;;  %v2873_v48 = vmul.f32 1.442695, %v2850_v23 }
 0x878   : > { %v2897_v47 = vmul.f32 %v5092_v56, %v2833_v27 }
 0x879   : > { %5093 = vpow2.f32 %v2873_v48 }
 0x87a   : > { %v2913_v44 = vadd.f32 %v2897_v47, %v2736_v29  ;;  %v2789_v60 = vpop.xlane.xlu2 %2788  ;;  %v2705_v22 = vpop.xlane.xlu0 %2704 }
 0x87b   : > { %v2819_v9 = vadd.f32 %v6692_v46, %v2789_v60  ;;  %v2737_v5 = vadd.f32 %v6654_v13, %v2705_v22 }
 0x87c   : > { %2930 = vst.msk [vmem:[%s5535_s28 + $0x30] sm:$0xff] %vm2923_vm5, %v2913_v44  ;;  %2972 = vperm.xlu1 %4938, %v2913_v44  }
 0x87d   : > { %v2851_v40 = vsub.f32 0.0, %v2819_v9  ;;  %v2834_v6 = vsub.f32 %v6908_v55, %v2737_v5  ;;  %v2646_v48 = vpop.f32.mrf.mxu0  ;;  %v2680_v9 = vmul.f32 %v6751_v15, %v2663_v16  ;;  %v6937_v16 = vld [vmem:[%s5522_s25 + $0x50] sm:$0xff] }
 0x87f   : > { %v5094_v51 = vpop.eup %5093  ;;  %v2875_v34 = vmul.f32 1.442695, %v2851_v40  ;;  %v2647_v40 = vadd.f32 %v6579_v33, %v2646_v48 }
 0x880   : > { %v2898_v24 = vmul.f32 %v5094_v51, %v2834_v6 }
 0x881   : > { %5095 = vpow2.f32 %v2875_v34 }
 0x882   : > { %v2914_v28 = vadd.f32 %v2898_v24, %v2737_v5  ;;  %v2708_v53 = vpop.xlane.xlu0 %2707  ;;  %v2711_v42 = vpop.xlane.xlu1 %2710 }
 0x883   : > { %v2738_v26 = vadd.f32 %v6654_v13, %v2708_v53  ;;  %v2739_v11 = vadd.f32 %v6654_v13, %v2711_v42 }
 0x884   : > { %2931 = vst.msk [vmem:[%s5535_s28 + $0x38] sm:$0xff] %vm2923_vm5, %v2914_v28  ;;  %2977 = vperm.xlu0 %4940, %v2914_v28   ;;  %v2664_v28 = vmax.f32 %v2647_v40, 0.0 }
 0x885   : > { %v2835_v45 = vsub.f32 %v6915_v25, %v2738_v26  ;;  %v2836_v47 = vsub.f32 %v6605_v4, %v2739_v11  ;;  %v2724_v4 = vsel %vm446_vm0, %v2680_v9, 0.0 }
 0x887   : > { %v5096_v57 = vpop.eup %5095 }
 0x888   : > { %v2899_v59 = vmul.f32 %v5096_v57, %v2835_v45 }
 0x88a   : > { %v6918_v17 = vadd.f32 %v2899_v59, %v2738_v26  ;;  %v2792_v18 = vpop.xlane.xlu0 %2791  ;;  %v2714_v60 = vpop.xlane.xlu2 %2713 }
 0x88b   : > { %v2820_v0 = vadd.f32 %v6692_v46, %v2792_v18  ;;  %v2740_v6 = vadd.f32 %v6654_v13, %v2714_v60  ;;  %v6953_v60 = vld [vmem:[%s5522_s25 + $0x60] sm:$0xff] }
 0x88c   : > { %2932 = vst.msk [vmem:[%s5535_s28 + $0x40] sm:$0xff] %vm2923_vm5, %v6918_v17 }
 0x88d   : > { %v2852_v10 = vsub.f32 0.0, %v2820_v0  ;;  %v2837_v33 = vsub.f32 %v6937_v16, %v2740_v6  ;;  %v2681_v0 = vmul.f32 %v6751_v15, %v2664_v28 }
 0x88f   : > { %v2877_v61 = vmul.f32 1.442695, %v2852_v10 }
 0x891   : > { %5097 = vpow2.f32 %v2877_v61 }
 0x892   : > { %v2795_v29 = vpop.xlane.xlu0 %2794 }
 0x893   : > { %v2821_v23 = vadd.f32 %v6692_v46, %v2795_v29 }
 0x895   : > { %v2853_v27 = vsub.f32 0.0, %v2821_v23  ;;  %v2717_v56 = vpop.xlane.xlu1 %2716  ;;  %v2727_v23 = vsel %vm446_vm0, %v2681_v0, 0.0 }
 0x896   : > { %v2741_v42 = vadd.f32 %v6654_v13, %v2717_v56 }
 0x897   : > { %v5098_v44 = vpop.eup %5097  ;;  %v2879_v22 = vmul.f32 1.442695, %v2853_v27  ;;  %v6947_v27 = vld [vmem:[%s5522_s25 + $0x58] sm:$0xff] }
 0x898   : > { %v2900_v5 = vmul.f32 %v5098_v44, %v2836_v47  ;;  %v2838_v48 = vsub.f32 %v6947_v27, %v2741_v42 }
 0x899   : > { %5099 = vpow2.f32 %v2879_v22 }
 0x89a   : > { %v2798_v51 = vpop.xlane.xlu0 %2797  ;;  %v2916_v34 = vadd.f32 %v2900_v5, %v2739_v11  ;;  %v2762_v5 = vmul.f32 %v6729_v19, %v2664_v28 }
 0x89b   : > { %v2822_v24 = vadd.f32 %v6692_v46, %v2798_v51 }
 0x89c   : > { %2933 = vst.msk [vmem:[%s5535_s28 + $0x48] sm:$0xff] %vm2923_vm5, %v2916_v34 }
 0x89d   : > { %v2854_v53 = vsub.f32 0.0, %v2822_v24  ;;  %v2801_v3 = vpop.xlane.xlu1 %2800  ;;  %2725 = vadd.xlane.f32.xlu2 %v2724_v4 }
 0x89e   : > { %v2823_v26 = vadd.f32 %v6692_v46, %v2801_v3  ;;  %v2808_v3 = vsel %vm446_vm0, %v2762_v5, 0.0 }
 0x89f   : > { %v5100_v45 = vpop.eup %5099  ;;  %v2881_v57 = vmul.f32 1.442695, %v2854_v53 }
 0x8a0   : > { %v2901_v59 = vmul.f32 %v5100_v45, %v2837_v33  ;;  %v2855_v18 = vsub.f32 0.0, %v2823_v26  ;;  %v6964_v26 = vld [vmem:[%s5522_s25 + $0x68] sm:$0xff] }
 0x8a1   : > { %5101 = vpow2.f32 %v2881_v57 }
 0x8a2   : > { %v2883_v10 = vmul.f32 1.442695, %v2855_v18  ;;  %v2917_v61 = vadd.f32 %v2901_v59, %v2740_v6  ;;  %v6973_v18 = vld [vmem:[%s7933_s1] sm:$0xff] }
 0x8a3   : > { %v6976_v0 = vperm.slane %v6973_v18, 4 }
 0x8a4   : > { %5103 = vpow2.f32 %v2883_v10  ;;  %2934 = vst.msk [vmem:[%s5535_s28 + $0x50] sm:$0xff] %vm2923_vm5, %v2917_v61 }
 0x8a5   : > { %v2720_v11 = vpop.xlane.xlu1 %2719  ;;  %v2804_v29 = vpop.xlane.xlu0 %2803 }
 0x8a6   : > { %v2742_v15 = vadd.f32 %v6654_v13, %v2720_v11  ;;  %v2824_v47 = vadd.f32 %v6692_v46, %v2804_v29  ;;  %2728 = vadd.xlane.f32.xlu1 %v2727_v23 }
 0x8a7   : > { %v5102_v56 = vpop.eup %5101 }
 0x8a8   : > { %v2902_v44 = vmul.f32 %v5102_v56, %v2838_v48  ;;  %v2839_v22 = vsub.f32 %v6953_v60, %v2742_v15  ;;  %v2856_v9 = vsub.f32 0.0, %v2824_v47 }
 0x8aa   : > { %v5104_v40 = vpop.eup %5103  ;;  %v2885_v6 = vmul.f32 1.442695, %v2856_v9  ;;  %v2918_v51 = vadd.f32 %v2902_v44, %v2741_v42 }
 0x8ab   : > { %v2903_v24 = vmul.f32 %v5104_v40, %v2839_v22 }
 0x8ac   : > { %5105 = vpow2.f32 %v2885_v6  ;;  %2935 = vst.msk [vmem:[%s5535_s28 + $0x58] sm:$0xff] %vm2923_vm5, %v2918_v51 }
 0x8ad   : > { %v2919_v4 = vadd.f32 %v2903_v24, %v2742_v15  ;;  %v2723_v53 = vpop.xlane.xlu1 %2722  ;;  %v2807_v59 = vpop.xlane.xlu2 %2806 }
 0x8ae   : > { %v2743_v33 = vadd.f32 %v6654_v13, %v2723_v53  ;;  %2809 = vadd.xlane.f32.xlu0 %v2808_v3 }
 0x8af   : > { %2936 = vst.msk [vmem:[%s5535_s28 + $0x60] sm:$0xff] %vm2923_vm5, %v2919_v4 }
 0x8b0   : > { %v2840_v19 = vsub.f32 %v6964_v26, %v2743_v33 }
 0x8b2   : > { %v5106_v28 = vpop.eup %5105 }
 0x8b3   : > { %v2904_v45 = vmul.f32 %v5106_v28, %v2840_v19  ;;  %v2825_v28 = vadd.f32 %v6692_v46, %v2807_v59 }
 0x8b5   : > { %v2920_v57 = vadd.f32 %v2904_v45, %v2743_v33  ;;  %2982 = vperm.xlu2 %4939, %v6918_v17   ;;  %v2948_v11 = vpop.permute.xlu2 %2947 }
 0x8b7   : > { %2937 = vst.msk [vmem:[%s5535_s28 + $0x68] sm:$0xff] %vm2923_vm5, %v2920_v57 }
 0x8bd   : > { %2992 = vperm.xlu2 %4939, %v2917_v61   ;;  %v3022_v61 = vmul.f32 %v6976_v0, %v2948_v11  ;;  %v7029_v11 = vld [vmem:[%s5522_s25 + $0x70] sm:$0xff] }
 0x8be   : > { %v2958_v47 = vpop.permute.xlu2 %2957 }
 0x8bf   : > { %2987 = vperm.xlu1 %4938, %v2916_v34   ;;  %v6986_v29 = vadd.f32 %v3022_v61, %v6646_v49  ;;  %v3024_v56 = vmul.f32 %v6976_v0, %v2958_v47 }
 0x8c1   : > { %v3054_v15 = vmax.f32 %v6986_v29, 0.0  ;;  %v6998_v49 = vadd.f32 %v3024_v56, %v6668_v58 }
 0x8c2   : > { %2997 = vperm.xlu0 %4940, %v2918_v51  }
 0x8c3   : > { %v3056_v5 = vmax.f32 %v6998_v49, 0.0 }
 0x8c5   : > { %v2943_v42 = vpop.permute.xlu1 %2942  ;;  %3002 = vperm.xlu2 %4939, %v2919_v4  }
 0x8c6   : > { %v3021_v10 = vmul.f32 %v6976_v0, %v2943_v42 }
 0x8c8   : > { %v6980_v17 = vadd.f32 %v3021_v10, %v6640_v39 }
 0x8ca   : > { %v3053_v34 = vmax.f32 %v6980_v17, 0.0 }
 0x8cc   : > { %4833 = vmatmul.msk.f32.vlgmr.msra.gmra.mxu1 %vm446_vm0, %v3053_v34 }
 0x8cd   : > { %3007 = vperm.xlu2 %4939, %v2920_v57   ;;  %v2857_v57 = vsub.f32 0.0, %v2825_v28 }
 0x8ce   : > { %v2953_v23 = vpop.permute.xlu1 %2952  ;;  %v2968_v40 = vpop.permute.xlu2 %2967 }
 0x8cf   : > { %v3023_v48 = vmul.f32 %v6976_v0, %v2953_v23  ;;  %v3026_v6 = vmul.f32 %v6976_v0, %v2968_v40 }
 0x8d1   : > { %v6992_v39 = vadd.f32 %v3023_v48, %v6662_v41  ;;  %v7010_v58 = vadd.f32 %v3026_v6, %v6680_v8  ;;  %v7043_v6 = vld [vmem:[%s5522_s25 + $0x78] sm:$0xff] }
 0x8d3   : > { %v3055_v44 = vmax.f32 %v6992_v39, 0.0  ;;  %v3058_v4 = vmax.f32 %v7010_v58, 0.0 }
 0x8d4   : > { %4834 = vmatmul.msk.f32.gmra.mxu1 %vm446_vm0, %v3054_v15 }
 0x8dc   : > { %4835 = vmatmul.msk.f32.gmra.mxu1 %vm446_vm0, %v3055_v44 }
 0x8de   : > { %v2963_v22 = vpop.permute.xlu0 %2962 }
 0x8df   : > { %v3025_v9 = vmul.f32 %v6976_v0, %v2963_v22 }
 0x8e1   : > { %v7004_v41 = vadd.f32 %v3025_v9, %v6674_v63 }
 0x8e3   : > { %v3057_v51 = vmax.f32 %v7004_v41, 0.0 }
 0x8e4   : > { %4836 = vmatmul.msk.f32.gmra.mxu1 %vm446_vm0, %v3056_v5 }
 0x8ec   : > { %4837 = vmatmul.msk.f32.gmra.mxu1 %vm446_vm0, %v3057_v51 }
 0x8ee   : > { %v2973_v24 = vpop.permute.xlu1 %2972 }
 0x8ef   : > { %v3027_v53 = vmul.f32 %v6976_v0, %v2973_v24 }
 0x8f1   : > { %v7016_v63 = vadd.f32 %v3027_v53, %v6686_v20  ;;  %v2887_v20 = vmul.f32 1.442695, %v2857_v57 }
 0x8f3   : > { %v3059_v33 = vmax.f32 %v7016_v63, 0.0  ;;  %5107 = vpow2.f32 %v2887_v20 }
 0x8f4   : > { %4838 = vmatmul.msk.f32.gmra.mxu1 %vm446_vm0, %v3058_v4 }
 0x8f6   : > { %v2978_v3 = vpop.permute.xlu0 %2977 }
 0x8f7   : > { %v3028_v19 = vmul.f32 %v6976_v0, %v2978_v3 }
 0x8f9   : > { %v7022_v8 = vadd.f32 %v3028_v19, %v6698_v38  ;;  %v5108_v34 = vpop.eup %5107 }
 0x8fb   : > { %v3060_v45 = vmax.f32 %v7022_v8, 0.0 }
 0x8fc   : > { %4839 = vmatmul.msk.f32.gmra.mxu1 %vm446_vm0, %v3059_v33 }
 0x904   : > { %4840 = vmatmul.msk.f32.gmra.mxu1 %vm446_vm0, %v3060_v45 }
 0x910   : > { %v2726_v42 = vpop.xlane.xlu2 %2725 }
 0x911   : > { %v2744_v10 = vadd.f32 %v6654_v13, %v2726_v42 }
 0x913   : > { %v2841_v61 = vsub.f32 %v7029_v11, %v2744_v10 }
 0x915   : > { %v2905_v23 = vmul.f32 %v5108_v34, %v2841_v61 }
 0x917   : > { %v2921_v38 = vadd.f32 %v2905_v23, %v2744_v10  ;;  %v7073_v23 = vld [vmem:[%s7936_s4] ss:$0 sm:$0xff] }
 0x918   : > { %v2983_v48 = vpop.permute.xlu2 %2982 }
 0x919   : > { %2938 = vst.msk [vmem:[%s5535_s28 + $0x70] sm:$0xff] %vm2923_vm5, %v2921_v38  ;;  %v3029_v59 = vmul.f32 %v6976_v0, %v2983_v48  ;;  %3012 = vperm.xlu1 %4938, %v2921_v38   ;;  %v2729_v9 = vpop.xlane.xlu1 %2728 }
 0x91a   : > { %v2745_v40 = vadd.f32 %v6654_v13, %v2729_v9 }
 0x91b   : > { %v7036_v15 = vadd.f32 %v3029_v59, %v6704_v32 }
 0x91c   : > { %v2842_v51 = vsub.f32 %v7043_v6, %v2745_v40 }
 0x91d   : > { %v3061_v47 = vmax.f32 %v7036_v15, 0.0 }
 0x91f   : > { %4841 = vmatmul.msk.f32.gmra.mxu1 %vm446_vm0, %v3061_v47 }
 0x920   : > { %v2993_v33 = vpop.permute.xlu2 %2992 }
 0x921   : > { %v2810_v56 = vpop.xlane.xlu0 %2809  ;;  %v3031_v19 = vmul.f32 %v6976_v0, %v2993_v33 }
 0x922   : > { %v2826_v44 = vadd.f32 %v6692_v46, %v2810_v56 }
 0x923   : > { %v7056_v28 = vadd.f32 %v3031_v19, %v6720_v35 }
 0x924   : > { %v2858_v22 = vsub.f32 0.0, %v2826_v44 }
 0x925   : > { %v3063_v57 = vmax.f32 %v7056_v28, 0.0 }
 0x926   : > { %v2889_v5 = vmul.f32 1.442695, %v2858_v22 }
 0x928   : > { %5109 = vpow2.f32 %v2889_v5  ;;  %v3003_v42 = vpop.permute.xlu2 %3002  ;;  %v7089_v5 = vperm.slane %v6748_v36, 5 }
 0x929   : > { %v3033_v10 = vmul.f32 %v6976_v0, %v3003_v42 }
 0x92b   : > { %v7068_v35 = vadd.f32 %v3033_v10, %v6754_v12 }
 0x92d   : > { %v3065_v47 = vmax.f32 %v7068_v35, 0.0 }
 0x92e   : > { %v5110_v32 = vpop.eup %5109 }
 0x92f   : > { %v2906_v24 = vmul.f32 %v5110_v32, %v2842_v51 }
 0x930   : > { %v3008_v48 = vpop.permute.xlu2 %3007 }
 0x931   : > { %v2988_v4 = vpop.permute.xlu1 %2987  ;;  %v2922_v53 = vadd.f32 %v2906_v24, %v2745_v40  ;;  %v3034_v56 = vmul.f32 %v6976_v0, %v3008_v48 }
 0x932   : > { %v3030_v3 = vmul.f32 %v6976_v0, %v2988_v4 }
 0x933   : > { %3017 = vperm.xlu2 %4939, %v2922_v53   ;;  %2939 = vst.msk [vmem:[%s5535_s28 + $0x78] sm:$0xff] %vm2923_vm5, %v2922_v53  ;;  %v7085_v9 = vadd.f32 %v3034_v56, %v6762_v50 }
 0x934   : > { %v7050_v46 = vadd.f32 %v3030_v3, %v6712_v37  ;;  %v2998_v45 = vpop.permute.xlu0 %2997 }
 0x935   : > { %v3032_v20 = vmul.f32 %v6976_v0, %v2998_v45  ;;  %v3066_v51 = vmax.f32 %v7085_v9, 0.0 }
 0x936   : > { %v3062_v13 = vmax.f32 %v7050_v46, 0.0 }
 0x937   : > { %v7062_v37 = vadd.f32 %v3032_v20, %v6738_v1  ;;  %v7077_v1 = vperm.slane %v6726_v14, 5 }
 0x938   : > { %4842 = vmatmul.msk.f32.gmra.mxu1 %vm446_vm0, %v3062_v13 }
 0x939   : > { %v3064_v61 = vmax.f32 %v7062_v37, 0.0 }
 0x940   : > { %4843 = vmatmul.msk.f32.gmra.mxu1 %vm446_vm0, %v3063_v57 }
 0x948   : > { %4844 = vmatmul.msk.f32.gmra.mxu1 %vm446_vm0, %v3064_v61 }
 0x949   : > { %v3134_v34 = vpop.f32.mrf.mxu1 }
 0x94a   : > { %v3135_v38 = vadd.f32 %v7073_v23, %v3134_v34 }
 0x94c   : > { %v3182_v59 = vmax.f32 %v3135_v38, 0.0 }
 0x94e   : > { %v3280_v44 = vmul.f32 %v7077_v1, %v3182_v59  ;;  %v3199_v24 = vmul.f32 %v7089_v5, %v3182_v59 }
 0x950   : > { %4845 = vmatmul.msk.f32.gmra.mxu1 %vm446_vm0, %v3065_v47  ;;  %v3296_v12 = vsel %vm446_vm0, %v3280_v44, 0.0  ;;  %v3215_v3 = vsel %vm446_vm0, %v3199_v24, 0.0 }
 0x951   : > { %v3137_v22 = vpop.f32.mrf.mxu1  ;;  %3297 = vadd.xlane.f32.xlu1 %v3296_v12 }
 0x952   : > { %v3138_v14 = vadd.f32 %v7073_v23, %v3137_v22 }
 0x954   : > { %v3183_v40 = vmax.f32 %v3138_v14, 0.0 }
 0x956   : > { %v3281_v32 = vmul.f32 %v7077_v1, %v3183_v40  ;;  %v3200_v36 = vmul.f32 %v7089_v5, %v3183_v40 }
 0x958   : > { %4846 = vmatmul.msk.f32.gmra.mxu1 %vm446_vm0, %v3066_v51  ;;  %v3299_v4 = vsel %vm446_vm0, %v3281_v32, 0.0  ;;  %v3218_v45 = vsel %vm446_vm0, %v3200_v36, 0.0 }
 0x959   : > { %v3140_v53 = vpop.f32.mrf.mxu1  ;;  %3300 = vadd.xlane.f32.xlu0 %v3299_v4 }
 0x95a   : > { %v3141_v50 = vadd.f32 %v7073_v23, %v3140_v53 }
 0x95c   : > { %v3184_v33 = vmax.f32 %v3141_v50, 0.0  ;;  %3216 = vadd.xlane.f32.xlu2 %v3215_v3 }
 0x95e   : > { %v3282_v19 = vmul.f32 %v7077_v1, %v3184_v33  ;;  %v3201_v42 = vmul.f32 %v7089_v5, %v3184_v33 }
 0x960   : > { %v3302_v13 = vsel %vm446_vm0, %v3282_v19, 0.0  ;;  %v3221_v34 = vsel %vm446_vm0, %v3201_v42, 0.0 }
 0x961   : > { %v3143_v57 = vpop.f32.mrf.mxu1  ;;  %3303 = vadd.xlane.f32.xlu1 %v3302_v13  ;;  %3219 = vadd.xlane.f32.xlu0 %v3218_v45 }
 0x962   : > { %v3144_v20 = vadd.f32 %v7073_v23, %v3143_v57 }
 0x964   : > { %v3185_v10 = vmax.f32 %v3144_v20, 0.0 }
 0x966   : > { %v3283_v61 = vmul.f32 %v7077_v1, %v3185_v10  ;;  %v3202_v47 = vmul.f32 %v7089_v5, %v3185_v10 }
 0x968   : > { %v3305_v38 = vsel %vm446_vm0, %v3283_v61, 0.0  ;;  %v3224_v22 = vsel %vm446_vm0, %v3202_v47, 0.0 }
 0x969   : > { %3222 = vadd.xlane.f32.xlu1 %v3221_v34  ;;  %v3146_v48 = vpop.f32.mrf.mxu1  ;;  %3306 = vadd.xlane.f32.xlu2 %v3305_v38 }
 0x96a   : > { %v3147_v59 = vadd.f32 %v7073_v23, %v3146_v48 }
 0x96c   : > { %v3186_v56 = vmax.f32 %v3147_v59, 0.0 }
 0x96e   : > { %v3284_v44 = vmul.f32 %v7077_v1, %v3186_v56  ;;  %v3203_v51 = vmul.f32 %v7089_v5, %v3186_v56 }
 0x970   : > { %v3308_v12 = vsel %vm446_vm0, %v3284_v44, 0.0  ;;  %v3227_v53 = vsel %vm446_vm0, %v3203_v51, 0.0 }
 0x971   : > { %v3149_v14 = vpop.f32.mrf.mxu1  ;;  %3309 = vadd.xlane.f32.xlu0 %v3308_v12  ;;  %3225 = vadd.xlane.f32.xlu2 %v3224_v22 }
 0x972   : > { %v3150_v40 = vadd.f32 %v7073_v23, %v3149_v14 }
 0x974   : > { %v3187_v32 = vmax.f32 %v3150_v40, 0.0 }
 0x976   : > { %v3285_v24 = vmul.f32 %v7077_v1, %v3187_v32  ;;  %v3204_v36 = vmul.f32 %v7089_v5, %v3187_v32 }
 0x978   : > { %v3311_v4 = vsel %vm446_vm0, %v3285_v24, 0.0  ;;  %v3230_v13 = vsel %vm446_vm0, %v3204_v36, 0.0 }
 0x979   : > { %v3152_v50 = vpop.f32.mrf.mxu1  ;;  %3312 = vadd.xlane.f32.xlu1 %v3311_v4  ;;  %3228 = vadd.xlane.f32.xlu0 %v3227_v53 }
 0x97a   : > { %v3153_v3 = vadd.f32 %v7073_v23, %v3152_v50 }
 0x97c   : > { %v3188_v33 = vmax.f32 %v3153_v3, 0.0 }
 0x97e   : > { %v3286_v19 = vmul.f32 %v7077_v1, %v3188_v33  ;;  %v3205_v42 = vmul.f32 %v7089_v5, %v3188_v33 }
 0x980   : > { %v3314_v45 = vsel %vm446_vm0, %v3286_v19, 0.0  ;;  %v3233_v38 = vsel %vm446_vm0, %v3205_v42, 0.0 }
 0x981   : > { %3231 = vadd.xlane.f32.xlu1 %v3230_v13  ;;  %v3155_v57 = vpop.f32.mrf.mxu1  ;;  %3315 = vadd.xlane.f32.xlu2 %v3314_v45 }
 0x982   : > { %v3156_v20 = vadd.f32 %v7073_v23, %v3155_v57 }
 0x984   : > { %v3189_v10 = vmax.f32 %v3156_v20, 0.0 }
 0x986   : > { %v3287_v61 = vmul.f32 %v7077_v1, %v3189_v10  ;;  %v3206_v59 = vmul.f32 %v7089_v5, %v3189_v10 }
 0x988   : > { %v3317_v34 = vsel %vm446_vm0, %v3287_v61, 0.0  ;;  %v3236_v14 = vsel %vm446_vm0, %v3206_v59, 0.0 }
 0x989   : > { %3318 = vadd.xlane.f32.xlu0 %v3317_v34  ;;  %3234 = vadd.xlane.f32.xlu2 %v3233_v38  ;;  %v7157_v38 = vld [vmem:[%s7941_s9] ss:$0 sm:$0xff] }
 0x98b   : > { %v3013_v48 = vpop.permute.xlu1 %3012 }
 0x98c   : > { %v3035_v47 = vmul.f32 %v6976_v0, %v3013_v48 }
 0x98d   : > { %v3018_v56 = vpop.permute.xlu2 %3017 }
 0x98e   : > { %v7130_v44 = vadd.f32 %v3035_v47, %v6769_v43  ;;  %v3036_v22 = vmul.f32 %v6976_v0, %v3018_v56 }
 0x990   : > { %v3067_v12 = vmax.f32 %v7130_v44, 0.0  ;;  %v7137_v40 = vadd.f32 %v3036_v22, %v6801_v31 }
 0x991   : > { %3237 = vadd.xlane.f32.xlu2 %v3236_v14 }
 0x992   : > { %4847 = vmatmul.msk.f32.gmra.mxu1 %vm446_vm0, %v3067_v12  ;;  %v3068_v51 = vmax.f32 %v7137_v40, 0.0 }
 0x99a   : > { %4848 = vmatmul.msk.f32.gmra.mxu1 %vm446_vm0, %v3068_v51 }
 0x99c   : > { %v3158_v32 = vpop.f32.mrf.mxu1 }
 0x99d   : > { %v3159_v43 = vadd.f32 %v7073_v23, %v3158_v32 }
 0x99f   : > { %v3190_v24 = vmax.f32 %v3159_v43, 0.0 }
 0x9a1   : > { %v3207_v4 = vmul.f32 %v7089_v5, %v3190_v24  ;;  %v3288_v0 = vmul.f32 %v7077_v1, %v3190_v24 }
 0x9a3   : > { %v3320_v53 = vsel %vm446_vm0, %v3288_v0, 0.0  ;;  %v3239_v50 = vsel %vm446_vm0, %v3207_v4, 0.0 }
 0x9a4   : > { %3321 = vadd.xlane.f32.xlu0 %v3320_v53  ;;  %3240 = vadd.xlane.f32.xlu2 %v3239_v50 }
 0x9b5   : > { %v3161_v31 = vpop.f32.mrf.mxu1 }
 0x9b6   : > { %v3162_v3 = vadd.f32 %v7073_v23, %v3161_v31 }
 0x9b8   : > { %v3191_v36 = vmax.f32 %v3162_v3, 0.0 }
 0x9ba   : > { %v3208_v33 = vmul.f32 %v7089_v5, %v3191_v36  ;;  %v3289_v19 = vmul.f32 %v7077_v1, %v3191_v36 }
 0x9bc   : > { %v3242_v13 = vsel %vm446_vm0, %v3208_v33, 0.0  ;;  %v3323_v45 = vsel %vm446_vm0, %v3289_v19, 0.0  ;;  %v7172_v19 = vld [vmem:[%s7940_s8] ss:$0 sm:$0xff] }
 0x9bd   : > { %v3164_v57 = vpop.f32.mrf.mxu1  ;;  %3243 = vadd.xlane.f32.xlu1 %v3242_v13  ;;  %3324 = vadd.xlane.f32.xlu2 %v3323_v45 }
 0x9be   : > { %v3165_v20 = vadd.f32 %v7073_v23, %v3164_v57 }
 0x9c0   : > { %v3192_v42 = vmax.f32 %v3165_v20, 0.0 }
 0x9c2   : > { %v3290_v10 = vmul.f32 %v7077_v1, %v3192_v42  ;;  %v3209_v12 = vmul.f32 %v7089_v5, %v3192_v42 }
 0x9c4   : > { %v3298_v61 = vpop.xlane.xlu1 %3297  ;;  %v3326_v34 = vsel %vm446_vm0, %v3290_v10, 0.0  ;;  %v3245_v24 = vsel %vm446_vm0, %v3209_v12, 0.0 }
 0x9c5   : > { %v3344_v48 = vadd.f32 %v7157_v38, %v3298_v61  ;;  %3327 = vadd.xlane.f32.xlu2 %v3326_v34  ;;  %v3167_v59 = vpop.f32.mrf.mxu1 }
 0x9c6   : > { %v3168_v47 = vadd.f32 %v7073_v23, %v3167_v59 }
 0x9c7   : > { %v3376_v56 = vsub.f32 0.0, %v3344_v48 }
 0x9c8   : > { %v3193_v22 = vmax.f32 %v3168_v47, 0.0 }
 0x9c9   : > { %v3392_v14 = vmul.f32 1.442695, %v3376_v56 }
 0x9ca   : > { %v3210_v51 = vmul.f32 %v7089_v5, %v3193_v22  ;;  %v3291_v32 = vmul.f32 %v7077_v1, %v3193_v22 }
 0x9cb   : > { %5111 = vpow2.f32 %v3392_v14 }
 0x9cc   : > { %v3301_v43 = vpop.xlane.xlu0 %3300  ;;  %v3329_v4 = vsel %vm446_vm0, %v3291_v32, 0.0  ;;  %v3248_v0 = vsel %vm446_vm0, %v3210_v51, 0.0  ;;  %v5297_v51 = vmov 5  }
 0x9cd   : > { %v3345_v53 = vadd.f32 %v7157_v38, %v3301_v43  ;;  %3246 = vadd.xlane.f32.xlu2 %v3245_v24  ;;  %v3170_v50 = vpop.f32.mrf.mxu1  ;;  %3330 = vadd.xlane.f32.xlu0 %v3329_v4 }
 0x9ce   : > { %v3171_v31 = vadd.f32 %v7073_v23, %v3170_v50  ;;  %3249 = vadd.xlane.f32.xlu1 %v3248_v0  ;;  %4943 = vset.pattern.permute.xlu2 %v5297_v51 }
 0x9cf   : > { %v3377_v3 = vsub.f32 0.0, %v3345_v53  ;;  %v3217_v36 = vpop.xlane.xlu2 %3216  ;;  %4941 = vset.pattern.permute.xlu1 %v5297_v51  ;;  %4942 = vset.pattern.permute.xlu0 %v5297_v51 }
 0x9d0   : > { %v3194_v33 = vmax.f32 %v3171_v31, 0.0  ;;  %v3263_v13 = vadd.f32 %v7172_v19, %v3217_v36 }
 0x9d1   : > { %v3394_v45 = vmul.f32 1.442695, %v3377_v3  ;;  %v5112_v10 = vpop.eup %5111 }
 0x9d2   : > { %v3211_v57 = vmul.f32 %v7089_v5, %v3194_v33  ;;  %v3292_v20 = vmul.f32 %v7077_v1, %v3194_v33  ;;  %v3360_v42 = vsub.f32 %v6843_v54, %v3263_v13 }
 0x9d3   : > { %5113 = vpow2.f32 %v3394_v45 }
 0x9d4   : > { %v3424_v61 = vmul.f32 %v5112_v10, %v3360_v42  ;;  %v3304_v34 = vpop.xlane.xlu1 %3303  ;;  %v3220_v48 = vpop.xlane.xlu0 %3219  ;;  %v3251_v59 = vsel %vm446_vm0, %v3211_v57, 0.0  ;;  %v3332_v47 = vsel %vm446_vm0, %v3292_v20, 0.0 }
 0x9d5   : > { %v3346_v56 = vadd.f32 %v7157_v38, %v3304_v34  ;;  %v3264_v12 = vadd.f32 %v7172_v19, %v3220_v48  ;;  %v3173_v22 = vpop.f32.mrf.mxu1  ;;  %3252 = vadd.xlane.f32.xlu2 %v3251_v59  ;;  %3333 = vadd.xlane.f32.xlu0 %v3332_v47 }
 0x9d6   : > { %v7182_v14 = vadd.f32 %v3424_v61, %v3263_v13  ;;  %v3174_v54 = vadd.f32 %v7073_v23, %v3173_v22 }
 0x9d7   : > { %v3378_v32 = vsub.f32 0.0, %v3346_v56  ;;  %v3361_v43 = vsub.f32 %v6828_v7, %v3264_v12 }
 0x9d8   : > { %3457 = vst.msk [vmem:[%s5535_s28] sm:$0xff] %vm3456_vm6, %v7182_v14  ;;  %v3195_v24 = vmax.f32 %v3174_v54, 0.0 }
 0x9d9   : > { %v5114_v4 = vpop.eup %5113  ;;  %v3396_v0 = vmul.f32 1.442695, %v3378_v32 }
 0x9da   : > { %v3425_v53 = vmul.f32 %v5114_v4, %v3361_v43  ;;  %v3212_v50 = vmul.f32 %v7089_v5, %v3195_v24  ;;  %v3293_v31 = vmul.f32 %v7077_v1, %v3195_v24 }
 0x9db   : > { %5115 = vpow2.f32 %v3396_v0 }
 0x9dc   : > { %v7191_v3 = vadd.f32 %v3425_v53, %v3264_v12  ;;  %v3223_v36 = vpop.xlane.xlu1 %3222  ;;  %v3307_v33 = vpop.xlane.xlu2 %3306  ;;  %v3335_v7 = vsel %vm446_vm0, %v3293_v31, 0.0  ;;  %v3254_v13 = vsel %vm446_vm0, %v3212_v50, 0.0 }
 0x9dd   : > { %v3265_v45 = vadd.f32 %v7172_v19, %v3223_v36  ;;  %v3347_v57 = vadd.f32 %v7157_v38, %v3307_v33  ;;  %3336 = vadd.xlane.f32.xlu2 %v3335_v7  ;;  %3255 = vadd.xlane.f32.xlu1 %v3254_v13 }
 0x9de   : > { %3458 = vst.msk [vmem:[%s5535_s28 + $0x8] sm:$0xff] %vm3456_vm6, %v7191_v3 }
 0x9df   : > { %v3362_v20 = vsub.f32 %v6868_v62, %v3265_v45  ;;  %v3379_v42 = vsub.f32 0.0, %v3347_v57 }
 0x9e1   : > { %v5116_v10 = vpop.eup %5115  ;;  %v3398_v61 = vmul.f32 1.442695, %v3379_v42 }
 0x9e2   : > { %v3426_v34 = vmul.f32 %v5116_v10, %v3362_v20 }
 0x9e3   : > { %5117 = vpow2.f32 %v3398_v61 }
 0x9e4   : > { %v3442_v48 = vadd.f32 %v3426_v34, %v3265_v45  ;;  %v3226_v59 = vpop.xlane.xlu2 %3225  ;;  %v3310_v47 = vpop.xlane.xlu0 %3309 }
 0x9e5   : > { %v3266_v56 = vadd.f32 %v7172_v19, %v3226_v59  ;;  %v3348_v12 = vadd.f32 %v7157_v38, %v3310_v47 }
 0x9e6   : > { %3459 = vst.msk [vmem:[%s5535_s28 + $0x10] sm:$0xff] %vm3456_vm6, %v3442_v48 }
 0x9e7   : > { %v3363_v22 = vsub.f32 %v6876_v52, %v3266_v56  ;;  %v3380_v54 = vsub.f32 0.0, %v3348_v12 }
 0x9e9   : > { %v5118_v51 = vpop.eup %5117  ;;  %v3400_v62 = vmul.f32 1.442695, %v3380_v54 }
 0x9ea   : > { %v3427_v32 = vmul.f32 %v5118_v51, %v3363_v22 }
 0x9eb   : > { %5119 = vpow2.f32 %v3400_v62 }
 0x9ec   : > { %v3443_v43 = vadd.f32 %v3427_v32, %v3266_v56  ;;  %v3313_v24 = vpop.xlane.xlu1 %3312  ;;  %v3229_v4 = vpop.xlane.xlu0 %3228 }
 0x9ed   : > { %v3349_v0 = vadd.f32 %v7157_v38, %v3313_v24  ;;  %v3267_v53 = vadd.f32 %v7172_v19, %v3229_v4 }
 0x9ee   : > { %3460 = vst.msk [vmem:[%s5535_s28 + $0x18] sm:$0xff] %vm3456_vm6, %v3443_v43 }
 0x9ef   : > { %v3381_v50 = vsub.f32 0.0, %v3349_v0  ;;  %v3364_v31 = vsub.f32 %v6884_v30, %v3267_v53 }
 0x9f1   : > { %v5120_v36 = vpop.eup %5119  ;;  %v3402_v52 = vmul.f32 1.442695, %v3381_v50 }
 0x9f2   : > { %v3428_v33 = vmul.f32 %v5120_v36, %v3364_v31 }
 0x9f3   : > { %5121 = vpow2.f32 %v3402_v52 }
 0x9f4   : > { %v3444_v7 = vadd.f32 %v3428_v33, %v3267_v53  ;;  %v3232_v13 = vpop.xlane.xlu1 %3231  ;;  %v3316_v45 = vpop.xlane.xlu2 %3315 }
 0x9f5   : > { %v3268_v57 = vadd.f32 %v7172_v19, %v3232_v13  ;;  %v3350_v20 = vadd.f32 %v7157_v38, %v3316_v45  ;;  %3490 = vperm.xlu2 %4943, %v3443_v43  }
 0x9f6   : > { %3461 = vst.msk [vmem:[%s5535_s28 + $0x20] sm:$0xff] %vm3456_vm6, %v3444_v7  ;;  %3475 = vperm.xlu1 %4941, %v7182_v14  }
 0x9f7   : > { %v3365_v42 = vsub.f32 %v6892_v2, %v3268_v57  ;;  %v3382_v30 = vsub.f32 0.0, %v3350_v20 }
 0x9f9   : > { %v5122_v10 = vpop.eup %5121  ;;  %v3404_v61 = vmul.f32 1.442695, %v3382_v30 }
 0x9fa   : > { %v3429_v34 = vmul.f32 %v5122_v10, %v3365_v42 }
 0x9fb   : > { %5123 = vpow2.f32 %v3404_v61 }
 0x9fc   : > { %v3445_v59 = vadd.f32 %v3429_v34, %v3268_v57  ;;  %v3235_v47 = vpop.xlane.xlu2 %3234  ;;  %v3319_v56 = vpop.xlane.xlu0 %3318 }
 0x9fd   : > { %v3269_v12 = vadd.f32 %v7172_v19, %v3235_v47  ;;  %v3351_v22 = vadd.f32 %v7157_v38, %v3319_v56 }
 0x9fe   : > { %3462 = vst.msk [vmem:[%s5535_s28 + $0x28] sm:$0xff] %vm3456_vm6, %v3445_v59  ;;  %3485 = vperm.xlu1 %4941, %v3442_v48  }
 0x9ff   : > { %v3366_v14 = vsub.f32 %v6900_v21, %v3269_v12  ;;  %v3383_v2 = vsub.f32 0.0, %v3351_v22 }
 0xa01   : > { %v5124_v54 = vpop.eup %5123  ;;  %v3406_v51 = vmul.f32 1.442695, %v3383_v2 }
 0xa02   : > { %v3430_v62 = vmul.f32 %v5124_v54, %v3366_v14 }
 0xa03   : > { %5125 = vpow2.f32 %v3406_v51 }
 0xa04   : > { %v3446_v32 = vadd.f32 %v3430_v62, %v3269_v12  ;;  %v3238_v43 = vpop.xlane.xlu2 %3237 }
 0xa05   : > { %v3270_v24 = vadd.f32 %v7172_v19, %v3238_v43 }
 0xa06   : > { %3463 = vst.msk [vmem:[%s5535_s28 + $0x30] sm:$0xff] %vm3456_vm6, %v3446_v32  ;;  %3505 = vperm.xlu2 %4943, %v3446_v32   ;;  %3495 = vperm.xlu1 %4941, %v3444_v7  }
 0xa07   : > { %v3367_v4 = vsub.f32 %v6908_v55, %v3270_v24 }
 0xa09   : > { %v5126_v0 = vpop.eup %5125 }
 0xa0a   : > { %v3431_v48 = vmul.f32 %v5126_v0, %v3367_v4 }
 0xa0c   : > { %v3447_v53 = vadd.f32 %v3431_v48, %v3270_v24  ;;  %v7251_v24 = vld [vmem:[%s5522_s25 + $0x48] sm:$0xff] }
 0xa0e   : > { %3464 = vst.msk [vmem:[%s5535_s28 + $0x38] sm:$0xff] %vm3456_vm6, %v3447_v53  ;;  %3510 = vperm.xlu2 %4943, %v3447_v53  }
 0xa0f   : > { %v3176_v21 = vpop.f32.mrf.mxu1 }
 0xa10   : > { %v3177_v50 = vadd.f32 %v7073_v23, %v3176_v21 }
 0xa12   : > { %v3196_v31 = vmax.f32 %v3177_v50, 0.0 }
 0xa14   : > { %v3294_v36 = vmul.f32 %v7077_v1, %v3196_v31  ;;  %v3213_v14 = vmul.f32 %v7089_v5, %v3196_v31 }
 0xa16   : > { %v3338_v52 = vsel %vm446_vm0, %v3294_v36, 0.0  ;;  %v3257_v62 = vsel %vm446_vm0, %v3213_v14, 0.0 }
 0xa17   : > { %3339 = vadd.xlane.f32.xlu0 %v3338_v52  ;;  %v3322_v33 = vpop.xlane.xlu0 %3321  ;;  %v3241_v13 = vpop.xlane.xlu2 %3240 }
 0xa18   : > { %v3352_v7 = vadd.f32 %v7157_v38, %v3322_v33  ;;  %v3271_v57 = vadd.f32 %v7172_v19, %v3241_v13  ;;  %v3179_v20 = vpop.f32.mrf.mxu1 }
 0xa19   : > { %v7234_v42 = vadd.f32 %v7073_v23, %v3179_v20 }
 0xa1a   : > { %v3384_v55 = vsub.f32 0.0, %v3352_v7  ;;  %v3368_v30 = vsub.f32 %v6915_v25, %v3271_v57 }
 0xa1b   : > { %v3197_v34 = vmax.f32 %v7234_v42, 0.0  ;;  %v7280_v42 = vperm.slane %v6973_v18, 5 }
 0xa1c   : > { %v3408_v45 = vmul.f32 1.442695, %v3384_v55 }
 0xa1d   : > { %v3295_v56 = vmul.f32 %v7077_v1, %v3197_v34 }
 0xa1e   : > { %5127 = vpow2.f32 %v3408_v45 }
 0xa1f   : > { %v3341_v12 = vsel %vm446_vm0, %v3295_v56, 0.0 }
 0xa24   : > { %v5128_v10 = vpop.eup %5127 }
 0xa25   : > { %v3432_v61 = vmul.f32 %v5128_v10, %v3368_v30 }
 0xa27   : > { %v3448_v47 = vadd.f32 %v3432_v61, %v3271_v57 }
 0xa29   : > { %3465 = vst.msk [vmem:[%s5535_s28 + $0x40] sm:$0xff] %vm3456_vm6, %v3448_v47 }
 0xa2b   : > { %3480 = vperm.xlu0 %4942, %v7191_v3  }
 0xa30   : > { %v3325_v22 = vpop.xlane.xlu2 %3324  ;;  %3342 = vadd.xlane.f32.xlu1 %v3341_v12  ;;  %v3244_v54 = vpop.xlane.xlu1 %3243 }
 0xa31   : > { %v3353_v25 = vadd.f32 %v7157_v38, %v3325_v22  ;;  %v3272_v1 = vadd.f32 %v7172_v19, %v3244_v54 }
 0xa33   : > { %v3385_v2 = vsub.f32 0.0, %v3353_v25  ;;  %3500 = vperm.xlu0 %4942, %v3445_v59   ;;  %v3369_v4 = vsub.f32 %v7251_v24, %v3272_v1 }
 0xa35   : > { %v3410_v51 = vmul.f32 1.442695, %v3385_v2 }
 0xa37   : > { %5129 = vpow2.f32 %v3410_v51  ;;  %3258 = vadd.xlane.f32.xlu2 %v3257_v62 }
 0xa38   : > { %v3328_v3 = vpop.xlane.xlu2 %3327 }
 0xa39   : > { %v3354_v32 = vadd.f32 %v7157_v38, %v3328_v3 }
 0xa3b   : > { %v3386_v43 = vsub.f32 0.0, %v3354_v32 }
 0xa3d   : > { %v5130_v0 = vpop.eup %5129  ;;  %v3412_v48 = vmul.f32 1.442695, %v3386_v43  ;;  %v3214_v43 = vmul.f32 %v7089_v5, %v3197_v34 }
 0xa3e   : > { %v3433_v59 = vmul.f32 %v5130_v0, %v3369_v4 }
 0xa3f   : > { %5131 = vpow2.f32 %v3412_v48 }
 0xa40   : > { %v3247_v53 = vpop.xlane.xlu2 %3246  ;;  %v3331_v21 = vpop.xlane.xlu0 %3330  ;;  %v3449_v50 = vadd.f32 %v3433_v59, %v3272_v1 }
 0xa41   : > { %v3273_v31 = vadd.f32 %v7172_v19, %v3247_v53  ;;  %v3355_v36 = vadd.f32 %v7157_v38, %v3331_v21  ;;  %v3250_v55 = vpop.xlane.xlu1 %3249 }
 0xa42   : > { %3466 = vst.msk [vmem:[%s5535_s28 + $0x48] sm:$0xff] %vm3456_vm6, %v3449_v50  ;;  %v3274_v20 = vadd.f32 %v7172_v19, %v3250_v55 }
 0xa43   : > { %v3370_v52 = vsub.f32 %v6937_v16, %v3273_v31  ;;  %v3387_v33 = vsub.f32 0.0, %v3355_v36 }
 0xa44   : > { %v3371_v16 = vsub.f32 %v6947_v27, %v3274_v20 }
 0xa45   : > { %v5132_v7 = vpop.eup %5131  ;;  %v3414_v13 = vmul.f32 1.442695, %v3387_v33 }
 0xa46   : > { %v3434_v45 = vmul.f32 %v5132_v7, %v3370_v52 }
 0xa47   : > { %5133 = vpow2.f32 %v3414_v13 }
 0xa48   : > { %v3450_v57 = vadd.f32 %v3434_v45, %v3273_v31  ;;  %v3253_v30 = vpop.xlane.xlu2 %3252  ;;  %v3334_v10 = vpop.xlane.xlu0 %3333 }
 0xa49   : > { %v3356_v61 = vadd.f32 %v7157_v38, %v3334_v10  ;;  %3515 = vperm.xlu1 %4941, %v3448_v47   ;;  %v3275_v14 = vadd.f32 %v7172_v19, %v3253_v30 }
 0xa4a   : > { %3467 = vst.msk [vmem:[%s5535_s28 + $0x50] sm:$0xff] %vm3456_vm6, %v3450_v57 }
 0xa4b   : > { %v3388_v56 = vsub.f32 0.0, %v3356_v61  ;;  %v3372_v62 = vsub.f32 %v6953_v60, %v3275_v14  ;;  %v3260_v60 = vsel %vm446_vm0, %v3214_v43, 0.0 }
 0xa4d   : > { %v5134_v12 = vpop.eup %5133  ;;  %v3416_v22 = vmul.f32 1.442695, %v3388_v56 }
 0xa4e   : > { %v3435_v25 = vmul.f32 %v5134_v12, %v3371_v16 }
 0xa4f   : > { %5135 = vpow2.f32 %v3416_v22 }
 0xa50   : > { %v3337_v2 = vpop.xlane.xlu2 %3336  ;;  %v3451_v54 = vadd.f32 %v3435_v25, %v3274_v20  ;;  %v3256_v3 = vpop.xlane.xlu1 %3255 }
 0xa51   : > { %v3357_v51 = vadd.f32 %v7157_v38, %v3337_v2  ;;  %3525 = vperm.xlu1 %4941, %v3450_v57   ;;  %v3276_v4 = vadd.f32 %v7172_v19, %v3256_v3 }
 0xa52   : > { %3468 = vst.msk [vmem:[%s5535_s28 + $0x58] sm:$0xff] %vm3456_vm6, %v3451_v54 }
 0xa53   : > { %v3389_v47 = vsub.f32 0.0, %v3357_v51  ;;  %v3373_v48 = vsub.f32 %v6964_v26, %v3276_v4 }
 0xa55   : > { %v5136_v1 = vpop.eup %5135  ;;  %v3418_v27 = vmul.f32 1.442695, %v3389_v47 }
 0xa56   : > { %v3436_v32 = vmul.f32 %v5136_v1, %v3372_v62 }
 0xa57   : > { %5137 = vpow2.f32 %v3418_v27 }
 0xa58   : > { %v3452_v0 = vadd.f32 %v3436_v32, %v3275_v14  ;;  %v3491_v36 = vpop.permute.xlu2 %3490 }
 0xa59   : > { %v3557_v61 = vmul.f32 %v7280_v42, %v3491_v36 }
 0xa5a   : > { %3535 = vperm.xlu1 %4941, %v3452_v0   ;;  %3469 = vst.msk [vmem:[%s5535_s28 + $0x60] sm:$0xff] %vm3456_vm6, %v3452_v0 }
 0xa5b   : > { %v7305_v25 = vadd.f32 %v3557_v61, %v6998_v49  ;;  %v7363_v61 = vld [vmem:[%s7937_s5] sm:$0xff] }
 0xa5d   : > { %v5138_v59 = vpop.eup %5137  ;;  %3261 = vadd.xlane.f32.xlu0 %v3260_v60  ;;  %v3589_v51 = vmax.f32 %v7305_v25, 0.0 }
 0xa5e   : > { %v3437_v53 = vmul.f32 %v5138_v59, %v3373_v48 }
 0xa60   : > { %v3453_v21 = vadd.f32 %v3437_v53, %v3276_v4  ;;  %v3506_v33 = vpop.permute.xlu2 %3505 }
 0xa61   : > { %v3560_v3 = vmul.f32 %v7280_v42, %v3506_v33 }
 0xa62   : > { %3470 = vst.msk [vmem:[%s5535_s28 + $0x68] sm:$0xff] %vm3456_vm6, %v3453_v21  ;;  %3540 = vperm.xlu2 %4943, %v3453_v21  }
 0xa68   : > { %v3476_v5 = vpop.permute.xlu1 %3475 }
 0xa69   : > { %v3554_v34 = vmul.f32 %v7280_v42, %v3476_v5 }
 0xa6b   : > { %v7284_v31 = vadd.f32 %v3554_v34, %v6980_v17  ;;  %v3511_v17 = vpop.permute.xlu2 %3510 }
 0xa6c   : > { %v3561_v48 = vmul.f32 %v7280_v42, %v3511_v17 }
 0xa6d   : > { %v3586_v26 = vmax.f32 %v7284_v31, 0.0 }
 0xa6e   : > { %v7332_v60 = vadd.f32 %v3561_v48, %v7022_v8 }
 0xa6f   : > { %4849 = vmatmul.msk.f32.vlgmr.msra.gmra.mxu2 %vm446_vm0, %v3586_v26 }
 0xa70   : > { %v3486_v13 = vpop.permute.xlu1 %3485 }
 0xa71   : > { %3520 = vperm.xlu0 %4942, %v3449_v50   ;;  %v3556_v20 = vmul.f32 %v7280_v42, %v3486_v13 }
 0xa73   : > { %v7297_v10 = vadd.f32 %v3556_v20, %v6992_v39 }
 0xa75   : > { %v3588_v16 = vmax.f32 %v7297_v10, 0.0 }
 0xa78   : > { %v3496_v14 = vpop.permute.xlu1 %3495 }
 0xa79   : > { %3530 = vperm.xlu0 %4942, %v3451_v54   ;;  %v3558_v54 = vmul.f32 %v7280_v42, %v3496_v14 }
 0xa7b   : > { %v7313_v47 = vadd.f32 %v3558_v54, %v7004_v41  ;;  %v7326_v41 = vadd.f32 %v3560_v3, %v7016_v63  ;;  %v3593_v63 = vmax.f32 %v7332_v60, 0.0 }
 0xa7d   : > { %v3590_v62 = vmax.f32 %v7313_v47, 0.0  ;;  %v3592_v0 = vmax.f32 %v7326_v41, 0.0 }
 0xa8a   : > { %v3340_v52 = vpop.xlane.xlu0 %3339 }
 0xa8b   : > { %v3358_v7 = vadd.f32 %v7157_v38, %v3340_v52 }
 0xa8d   : > { %v3390_v45 = vsub.f32 0.0, %v3358_v7 }
 0xa8f   : > { %v3420_v50 = vmul.f32 1.442695, %v3390_v45 }
 0xa91   : > { %5139 = vpow2.f32 %v3420_v50 }
 0xa97   : > { %v5140_v22 = vpop.eup %5139 }
 0xa9d   : > { %v3481_v55 = vpop.permute.xlu0 %3480 }
 0xa9e   : > { %v3555_v18 = vmul.f32 %v7280_v42, %v3481_v55 }
 0xaa0   : > { %v7291_v57 = vadd.f32 %v3555_v18, %v6986_v29 }
 0xaa2   : > { %v3587_v30 = vmax.f32 %v7291_v57, 0.0 }
 0xaa3   : > { %v3343_v27 = vpop.xlane.xlu1 %3342 }
 0xaa4   : > { %4850 = vmatmul.msk.f32.gmra.mxu2 %vm446_vm0, %v3587_v30  ;;  %v3359_v32 = vadd.f32 %v7157_v38, %v3343_v27 }
 0xaa6   : > { %v3391_v4 = vsub.f32 0.0, %v3359_v32 }
 0xaaa   : > { %v3259_v56 = vpop.xlane.xlu2 %3258 }
 0xaab   : > { %v3277_v29 = vadd.f32 %v7172_v19, %v3259_v56  ;;  %v7366_v56 = vperm.slane %v7363_v61, 6 }
 0xaac   : > { %4851 = vmatmul.msk.f32.gmra.mxu2 %vm446_vm0, %v3588_v16 }
 0xaad   : > { %v3374_v12 = vsub.f32 %v7029_v11, %v3277_v29  ;;  %v3501_v11 = vpop.permute.xlu0 %3500 }
 0xaae   : > { %v3559_v49 = vmul.f32 %v7280_v42, %v3501_v11 }
 0xaaf   : > { %v3438_v2 = vmul.f32 %v5140_v22, %v3374_v12 }
 0xab0   : > { %v7319_v1 = vadd.f32 %v3559_v49, %v7010_v58  ;;  %v3422_v58 = vmul.f32 1.442695, %v3391_v4 }
 0xab1   : > { %v3454_v39 = vadd.f32 %v3438_v2, %v3277_v29 }
 0xab2   : > { %v3591_v43 = vmax.f32 %v7319_v1, 0.0  ;;  %5141 = vpow2.f32 %v3422_v58 }
 0xab3   : > { %3471 = vst.msk [vmem:[%s5535_s28 + $0x70] sm:$0xff] %vm3456_vm6, %v3454_v39  ;;  %3545 = vperm.xlu0 %4942, %v3454_v39  }
 0xab4   : > { %4852 = vmatmul.msk.f32.gmra.mxu2 %vm446_vm0, %v3589_v51 }
 0xab8   : > { %v5142_v26 = vpop.eup %5141 }
 0xabb   : > { %v3516_v59 = vpop.permute.xlu1 %3515 }
 0xabc   : > { %4853 = vmatmul.msk.f32.gmra.mxu2 %vm446_vm0, %v3590_v62  ;;  %v3562_v5 = vmul.f32 %v7280_v42, %v3516_v59  ;;  %v3541_v62 = vpop.permute.xlu2 %3540 }
 0xabd   : > { %v3567_v49 = vmul.f32 %v7280_v42, %v3541_v62 }
 0xabe   : > { %v7340_v52 = vadd.f32 %v3562_v5, %v7036_v15 }
 0xabf   : > { %v7390_v3 = vadd.f32 %v3567_v49, %v7085_v9 }
 0xac0   : > { %v3594_v33 = vmax.f32 %v7340_v52, 0.0 }
 0xac1   : > { %v3599_v32 = vmax.f32 %v7390_v3, 0.0 }
 0xac3   : > { %v3526_v18 = vpop.permute.xlu1 %3525 }
 0xac4   : > { %4854 = vmatmul.msk.f32.gmra.mxu2 %vm446_vm0, %v3591_v43  ;;  %v3564_v13 = vmul.f32 %v7280_v42, %v3526_v18 }
 0xac6   : > { %v7354_v45 = vadd.f32 %v3564_v13, %v7056_v28  ;;  %v5260_v28 = vld [vmem:[%s7938_s6] sm:$0xff] }
 0xac7   : > { %v7371_v16 = vperm.slane %v5260_v28, 6 }
 0xac8   : > { %v3596_v20 = vmax.f32 %v7354_v45, 0.0 }
 0xacc   : > { %4855 = vmatmul.msk.f32.gmra.mxu2 %vm446_vm0, %v3592_v0  ;;  %v3536_v22 = vpop.permute.xlu1 %3535 }
 0xacd   : > { %v3566_v39 = vmul.f32 %v7280_v42, %v3536_v22 }
 0xad0   : > { %v3262_v53 = vpop.xlane.xlu0 %3261 }
 0xad1   : > { %v3278_v21 = vadd.f32 %v7172_v19, %v3262_v53 }
 0xad3   : > { %v3375_v34 = vsub.f32 %v7043_v6, %v3278_v21 }
 0xad4   : > { %4856 = vmatmul.msk.f32.gmra.mxu2 %vm446_vm0, %v3593_v63 }
 0xad5   : > { %v3439_v36 = vmul.f32 %v5142_v26, %v3375_v34 }
 0xad7   : > { %v3455_v8 = vadd.f32 %v3439_v36, %v3278_v21 }
 0xad9   : > { %3472 = vst.msk [vmem:[%s5535_s28 + $0x78] sm:$0xff] %vm3456_vm6, %v3455_v8  ;;  %3550 = vperm.xlu1 %4941, %v3455_v8  }
 0xadc   : > { %4857 = vmatmul.msk.f32.gmra.mxu2 %vm446_vm0, %v3594_v33 }
 0xae3   : > { %v3521_v7 = vpop.permute.xlu0 %3520 }
 0xae4   : > { %v3563_v55 = vmul.f32 %v7280_v42, %v3521_v7 }
 0xae6   : > { %v7348_v6 = vadd.f32 %v3563_v55, %v7050_v46 }
 0xae8   : > { %v3595_v15 = vmax.f32 %v7348_v6, 0.0 }
 0xaea   : > { %4858 = vmatmul.msk.f32.gmra.mxu2 %vm446_vm0, %v3595_v15 }
 0xaeb   : > { %v3531_v17 = vpop.permute.xlu0 %3530 }
 0xaec   : > { %v3565_v30 = vmul.f32 %v7280_v42, %v3531_v17 }
 0xaee   : > { %v7374_v29 = vadd.f32 %v3565_v30, %v7062_v37  ;;  %v7384_v37 = vadd.f32 %v3566_v39, %v7068_v35 }
 0xaf0   : > { %v3597_v54 = vmax.f32 %v7374_v29, 0.0  ;;  %v3598_v27 = vmax.f32 %v7384_v37, 0.0 }
 0xaf2   : > { %v3667_v50 = vpop.f32.mrf.mxu2  ;;  %4859 = vmatmul.msk.f32.gmra.mxu2 %vm446_vm0, %v3596_v20 }
 0xaf3   : > { %v3668_v46 = vadd.f32 %v7073_v23, %v3667_v50 }
 0xaf5   : > { %v3715_v12 = vmax.f32 %v3668_v46, 0.0 }
 0xaf7   : > { %v3732_v14 = vmul.f32 %v7366_v56, %v3715_v12  ;;  %v3813_v2 = vmul.f32 %v7371_v16, %v3715_v12 }
 0xaf9   : > { %v3748_v51 = vsel %vm446_vm0, %v3732_v14, 0.0  ;;  %v3829_v11 = vsel %vm446_vm0, %v3813_v2, 0.0 }
 0xafa   : > { %3749 = vadd.xlane.f32.xlu2 %v3748_v51  ;;  %3830 = vadd.xlane.f32.xlu0 %v3829_v11 }
 0xafb   : > { %4860 = vmatmul.msk.f32.gmra.mxu2 %vm446_vm0, %v3597_v54 }
 0xb03   : > { %4861 = vmatmul.msk.f32.gmra.mxu2 %vm446_vm0, %v3598_v27 }
 0xb0b   : > { %4862 = vmatmul.msk.f32.gmra.mxu2 %vm446_vm0, %v3599_v32 }
 0xb25   : > { %v3546_v43 = vpop.permute.xlu0 %3545 }
 0xb26   : > { %v3568_v4 = vmul.f32 %v7280_v42, %v3546_v43 }
 0xb27   : > { %v3670_v0 = vpop.f32.mrf.mxu2 }
 0xb28   : > { %v7396_v35 = vadd.f32 %v3568_v4, %v7130_v44  ;;  %v3671_v48 = vadd.f32 %v7073_v23, %v3670_v0 }
 0xb2a   : > { %v3600_v58 = vmax.f32 %v7396_v35, 0.0  ;;  %v3716_v59 = vmax.f32 %v3671_v48, 0.0 }
 0xb2c   : > { %v3814_v53 = vmul.f32 %v7371_v16, %v3716_v59  ;;  %4863 = vmatmul.msk.f32.gmra.mxu2 %vm446_vm0, %v3600_v58  ;;  %v3733_v5 = vmul.f32 %v7366_v56, %v3716_v59 }
 0xb2e   : > { %v3832_v9 = vsel %vm446_vm0, %v3814_v53, 0.0  ;;  %v3751_v36 = vsel %vm446_vm0, %v3733_v5, 0.0  ;;  %v7437_v53 = vld [vmem:[%s7936_s4] ss:$0 sm:$0xff] }
 0xb2f   : > { %v3673_v21 = vpop.f32.mrf.mxu2  ;;  %3833 = vadd.xlane.f32.xlu1 %v3832_v9 }
 0xb30   : > { %v3674_v63 = vadd.f32 %v7073_v23, %v3673_v21 }
 0xb32   : > { %v3717_v34 = vmax.f32 %v3674_v63, 0.0 }
 0xb34   : > { %v3815_v44 = vmul.f32 %v7371_v16, %v3717_v34  ;;  %v3734_v7 = vmul.f32 %v7366_v56, %v3717_v34 }
 0xb36   : > { %v3835_v26 = vsel %vm446_vm0, %v3815_v44, 0.0  ;;  %v3754_v15 = vsel %vm446_vm0, %v3734_v7, 0.0 }
 0xb37   : > { %v3676_v8 = vpop.f32.mrf.mxu2  ;;  %3836 = vadd.xlane.f32.xlu0 %v3835_v26  ;;  %3752 = vadd.xlane.f32.xlu1 %v3751_v36 }
 0xb38   : > { %v3677_v33 = vadd.f32 %v7073_v23, %v3676_v8 }
 0xb3a   : > { %v3718_v55 = vmax.f32 %v3677_v33, 0.0 }
 0xb3c   : > { %v3816_v18 = vmul.f32 %v7371_v16, %v3718_v55  ;;  %v3735_v30 = vmul.f32 %v7366_v56, %v3718_v55 }
 0xb3e   : > { %v3838_v13 = vsel %vm446_vm0, %v3816_v18, 0.0  ;;  %v3757_v12 = vsel %vm446_vm0, %v3735_v30, 0.0 }
 0xb3f   : > { %v3679_v17 = vpop.f32.mrf.mxu2  ;;  %3839 = vadd.xlane.f32.xlu0 %v3838_v13  ;;  %3755 = vadd.xlane.f32.xlu1 %v3754_v15 }
 0xb40   : > { %v3680_v20 = vadd.f32 %v7073_v23, %v3679_v17 }
 0xb42   : > { %v3719_v50 = vmax.f32 %v3680_v20, 0.0 }
 0xb44   : > { %v3817_v46 = vmul.f32 %v7371_v16, %v3719_v50  ;;  %v3736_v2 = vmul.f32 %v7366_v56, %v3719_v50 }
 0xb46   : > { %v3841_v28 = vsel %vm446_vm0, %v3817_v46, 0.0  ;;  %v3760_v49 = vsel %vm446_vm0, %v3736_v2, 0.0 }
 0xb47   : > { %3842 = vadd.xlane.f32.xlu2 %v3841_v28  ;;  %3758 = vadd.xlane.f32.xlu0 %v3757_v12  ;;  %v3682_v22 = vpop.f32.mrf.mxu2 }
 0xb48   : > { %v3683_v14 = vadd.f32 %v7073_v23, %v3682_v22 }
 0xb4a   : > { %v3720_v39 = vmax.f32 %v3683_v14, 0.0 }
 0xb4b   : > { %v3551_v54 = vpop.permute.xlu1 %3550 }
 0xb4c   : > { %v3818_v51 = vmul.f32 %v7371_v16, %v3720_v39  ;;  %v3569_v11 = vmul.f32 %v7280_v42, %v3551_v54  ;;  %v3737_v0 = vmul.f32 %v7366_v56, %v3720_v39 }
 0xb4e   : > { %v7423_v62 = vadd.f32 %v3569_v11, %v7137_v40  ;;  %v3844_v27 = vsel %vm446_vm0, %v3818_v51, 0.0  ;;  %v3763_v58 = vsel %vm446_vm0, %v3737_v0, 0.0 }
 0xb4f   : > { %3761 = vadd.xlane.f32.xlu2 %v3760_v49  ;;  %v3685_v32 = vpop.f32.mrf.mxu2  ;;  %3845 = vadd.xlane.f32.xlu1 %v3844_v27  ;;  %v7460_v27 = vld [vmem:[%s5522_s25] sm:$0xff] }
 0xb50   : > { %v3601_v43 = vmax.f32 %v7423_v62, 0.0  ;;  %v3686_v4 = vadd.f32 %v7073_v23, %v3685_v32 }
 0xb52   : > { %v3721_v48 = vmax.f32 %v3686_v4, 0.0  ;;  %4864 = vmatmul.msk.f32.gmra.mxu2 %vm446_vm0, %v3601_v43 }
 0xb54   : > { %v3819_v42 = vmul.f32 %v7371_v16, %v3721_v48  ;;  %v3738_v9 = vmul.f32 %v7366_v56, %v3721_v48 }
 0xb56   : > { %v3847_v40 = vsel %vm446_vm0, %v3819_v42, 0.0  ;;  %v3766_v34 = vsel %vm446_vm0, %v3738_v9, 0.0 }
 0xb57   : > { %v3688_v59 = vpop.f32.mrf.mxu2  ;;  %3848 = vadd.xlane.f32.xlu0 %v3847_v40  ;;  %3764 = vadd.xlane.f32.xlu1 %v3763_v58 }
 0xb58   : > { %v3689_v23 = vadd.f32 %v7437_v53, %v3688_v59 }
 0xb5a   : > { %v3722_v21 = vmax.f32 %v3689_v23, 0.0 }
 0xb5c   : > { %v3820_v63 = vmul.f32 %v7371_v16, %v3722_v21  ;;  %v3739_v36 = vmul.f32 %v7366_v56, %v3722_v21 }
 0xb5e   : > { %v3850_v5 = vsel %vm446_vm0, %v3820_v63, 0.0  ;;  %v3769_v55 = vsel %vm446_vm0, %v3739_v36, 0.0 }
 0xb5f   : > { %v3691_v44 = vpop.f32.mrf.mxu2  ;;  %3851 = vadd.xlane.f32.xlu2 %v3850_v5  ;;  %3767 = vadd.xlane.f32.xlu0 %v3766_v34 }
 0xb60   : > { %v3692_v26 = vadd.f32 %v7437_v53, %v3691_v44 }
 0xb62   : > { %v3723_v8 = vmax.f32 %v3692_v26, 0.0 }
 0xb64   : > { %v3821_v33 = vmul.f32 %v7371_v16, %v3723_v8  ;;  %v3740_v18 = vmul.f32 %v7366_v56, %v3723_v8 }
 0xb66   : > { %v3853_v7 = vsel %vm446_vm0, %v3821_v33, 0.0  ;;  %v3772_v20 = vsel %vm446_vm0, %v3740_v18, 0.0 }
 0xb67   : > { %3854 = vadd.xlane.f32.xlu2 %v3853_v7  ;;  %3770 = vadd.xlane.f32.xlu0 %v3769_v55 }
 0xb6d   : > { %v3694_v13 = vpop.f32.mrf.mxu2  ;;  %v3831_v17 = vpop.xlane.xlu0 %3830 }
 0xb6e   : > { %v3695_v15 = vadd.f32 %v7437_v53, %v3694_v13  ;;  %v3877_v30 = vadd.f32 %v7157_v38, %v3831_v17  ;;  %v3750_v22 = vpop.xlane.xlu2 %3749 }
 0xb6f   : > { %3773 = vadd.xlane.f32.xlu0 %v3772_v20  ;;  %v3796_v54 = vadd.f32 %v7172_v19, %v3750_v22 }
 0xb70   : > { %v3724_v50 = vmax.f32 %v3695_v15, 0.0  ;;  %v3909_v46 = vsub.f32 0.0, %v3877_v30  ;;  %v5298_v30 = vmov 6  }
 0xb71   : > { %v3893_v32 = vsub.f32 %v7460_v27, %v3796_v54  ;;  %4945 = vset.pattern.permute.xlu2 %v5298_v30  ;;  %4946 = vset.pattern.permute.xlu0 %v5298_v30 }
 0xb72   : > { %v3741_v28 = vmul.f32 %v7366_v56, %v3724_v50  ;;  %v3822_v12 = vmul.f32 %v7371_v16, %v3724_v50  ;;  %v3925_v14 = vmul.f32 1.442695, %v3909_v46  ;;  %4944 = vset.pattern.permute.xlu1 %v5298_v30  ;;  %v7520_v30 = vld [vmem:[%s5522_s25 + $0x18] sm:$0xff] }
 0xb74   : > { %v3775_v2 = vsel %vm446_vm0, %v3741_v28, 0.0  ;;  %5143 = vpow2.f32 %v3925_v14  ;;  %v3856_v11 = vsel %vm446_vm0, %v3822_v12, 0.0 }
 0xb75   : > { %v3697_v39 = vpop.f32.mrf.mxu2  ;;  %3776 = vadd.xlane.f32.xlu2 %v3775_v2 }
 0xb76   : > { %v3698_v51 = vadd.f32 %v7437_v53, %v3697_v39 }
 0xb77   : > { %3857 = vadd.xlane.f32.xlu0 %v3856_v11  ;;  %v7491_v11 = vld [vmem:[%s5522_s25 + $0x8] sm:$0xff] }
 0xb78   : > { %v3725_v49 = vmax.f32 %v3698_v51, 0.0 }
 0xb7a   : > { %v3742_v43 = vmul.f32 %v7366_v56, %v3725_v49  ;;  %v3823_v4 = vmul.f32 %v7371_v16, %v3725_v49  ;;  %v5144_v0 = vpop.eup %5143 }
 0xb7b   : > { %v3957_v48 = vmul.f32 %v5144_v0, %v3893_v32 }
 0xb7c   : > { %v3778_v42 = vsel %vm446_vm0, %v3742_v43, 0.0  ;;  %v3859_v58 = vsel %vm446_vm0, %v3823_v4, 0.0 }
 0xb7d   : > { %3779 = vadd.xlane.f32.xlu1 %v3778_v42  ;;  %v7467_v59 = vadd.f32 %v3957_v48, %v3796_v54 }
 0xb7e   : > { %v3700_v40 = vpop.f32.mrf.mxu2 }
 0xb7f   : > { %v3701_v23 = vadd.f32 %v7437_v53, %v3700_v40  ;;  %3860 = vadd.xlane.f32.xlu0 %v3859_v58  ;;  %3990 = vst.msk [vmem:[%s5535_s28] sm:$0xff] %vm3989_vm7, %v7467_v59 }
 0xb81   : > { %v3726_v9 = vmax.f32 %v3701_v23, 0.0 }
 0xb83   : > { %v3743_v21 = vmul.f32 %v7366_v56, %v3726_v9  ;;  %v3824_v63 = vmul.f32 %v7371_v16, %v3726_v9 }
 0xb85   : > { %v3781_v5 = vsel %vm446_vm0, %v3743_v21, 0.0  ;;  %v3862_v44 = vsel %vm446_vm0, %v3824_v63, 0.0 }
 0xb86   : > { %v3703_v34 = vpop.f32.mrf.mxu2  ;;  %3782 = vadd.xlane.f32.xlu2 %v3781_v5 }
 0xb87   : > { %v3704_v26 = vadd.f32 %v7437_v53, %v3703_v34  ;;  %3863 = vadd.xlane.f32.xlu0 %v3862_v44  ;;  %v7506_v34 = vld [vmem:[%s5522_s25 + $0x10] sm:$0xff] }
 0xb89   : > { %v3727_v36 = vmax.f32 %v3704_v26, 0.0 }
 0xb8b   : > { %v3825_v8 = vmul.f32 %v7371_v16, %v3727_v36  ;;  %v3744_v18 = vmul.f32 %v7366_v56, %v3727_v36 }
 0xb8d   : > { %v3865_v33 = vsel %vm446_vm0, %v3825_v8, 0.0  ;;  %v3784_v20 = vsel %vm446_vm0, %v3744_v18, 0.0 }
 0xb8e   : > { %v3706_v7 = vpop.f32.mrf.mxu2  ;;  %3866 = vadd.xlane.f32.xlu2 %v3865_v33 }
 0xb8f   : > { %v3707_v55 = vadd.f32 %v7437_v53, %v3706_v7 }
 0xb91   : > { %v3728_v13 = vmax.f32 %v3707_v55, 0.0 }
 0xb93   : > { %v3826_v15 = vmul.f32 %v7371_v16, %v3728_v13  ;;  %v3745_v50 = vmul.f32 %v7366_v56, %v3728_v13  ;;  %v7513_v13 = vld [vmem:[%s7941_s9] ss:$0 sm:$0xff] }
 0xb95   : > { %v3868_v17 = vsel %vm446_vm0, %v3826_v15, 0.0  ;;  %v3787_v46 = vsel %vm446_vm0, %v3745_v50, 0.0 }
 0xb96   : > { %3869 = vadd.xlane.f32.xlu0 %v3868_v17  ;;  %3785 = vadd.xlane.f32.xlu2 %v3784_v20 }
 0xb9e   : > { %3788 = vadd.xlane.f32.xlu2 %v3787_v46 }
 0xba2   : > { %v3834_v28 = vpop.xlane.xlu1 %3833 }
 0xba3   : > { %v3878_v12 = vadd.f32 %v7157_v38, %v3834_v28 }
 0xba5   : > { %v3910_v22 = vsub.f32 0.0, %v3878_v12 }
 0xba7   : > { %v3927_v14 = vmul.f32 1.442695, %v3910_v22 }
 0xba9   : > { %5145 = vpow2.f32 %v3927_v14 }
 0xbaa   : > { %v3753_v2 = vpop.xlane.xlu1 %3752  ;;  %v3837_v39 = vpop.xlane.xlu0 %3836 }
 0xbab   : > { %v3797_v54 = vadd.f32 %v7172_v19, %v3753_v2  ;;  %v3879_v51 = vadd.f32 %v7157_v38, %v3837_v39  ;;  %v7526_v39 = vld [vmem:[%s7940_s8] ss:$0 sm:$0xff] }
 0xbad   : > { %v3894_v49 = vsub.f32 %v7491_v11, %v3797_v54  ;;  %v3911_v32 = vsub.f32 0.0, %v3879_v51  ;;  %v7533_v51 = vld [vmem:[%s5522_s25 + $0x20] sm:$0xff] }
 0xbaf   : > { %v5146_v43 = vpop.eup %5145  ;;  %v3929_v4 = vmul.f32 1.442695, %v3911_v32  ;;  %v3709_v0 = vpop.f32.mrf.mxu2 }
 0xbb0   : > { %v3958_v48 = vmul.f32 %v5146_v43, %v3894_v49  ;;  %v7495_v42 = vadd.f32 %v7437_v53, %v3709_v0 }
 0xbb1   : > { %5147 = vpow2.f32 %v3929_v4 }
 0xbb2   : > { %v3974_v40 = vadd.f32 %v3958_v48, %v3797_v54  ;;  %v3729_v58 = vmax.f32 %v7495_v42, 0.0  ;;  %v3756_v23 = vpop.xlane.xlu1 %3755  ;;  %v3840_v9 = vpop.xlane.xlu0 %3839  ;;  %v7614_v42 = vld [vmem:[%s5522_s25 + $0x68] sm:$0xff] }
 0xbb3   : > { %v3798_v21 = vadd.f32 %v7172_v19, %v3756_v23  ;;  %v3880_v63 = vadd.f32 %v7157_v38, %v3840_v9 }
 0xbb4   : > { %3991 = vst.msk [vmem:[%s5535_s28 + $0x8] sm:$0xff] %vm3989_vm7, %v3974_v40  ;;  %v3827_v5 = vmul.f32 %v7371_v16, %v3729_v58 }
 0xbb5   : > { %v3895_v44 = vsub.f32 %v7506_v34, %v3798_v21  ;;  %v3912_v26 = vsub.f32 0.0, %v3880_v63  ;;  %v7541_v63 = vld [vmem:[%s5522_s25 + $0x28] sm:$0xff] }
 0xbb6   : > { %4013 = vperm.xlu2 %4945, %v3974_v40   ;;  %v3871_v36 = vsel %vm446_vm0, %v3827_v5, 0.0 }
 0xbb7   : > { %v5148_v8 = vpop.eup %5147  ;;  %v3931_v33 = vmul.f32 1.442695, %v3912_v26  ;;  %3872 = vadd.xlane.f32.xlu1 %v3871_v36 }
 0xbb8   : > { %v3959_v38 = vmul.f32 %v5148_v8, %v3895_v44 }
 0xbb9   : > { %5149 = vpow2.f32 %v3931_v33 }
 0xbba   : > { %v3975_v7 = vadd.f32 %v3959_v38, %v3798_v21  ;;  %v3843_v55 = vpop.xlane.xlu2 %3842  ;;  %v3759_v18 = vpop.xlane.xlu0 %3758 }
 0xbbb   : > { %v3881_v15 = vadd.f32 %v7513_v13, %v3843_v55  ;;  %v3799_v17 = vadd.f32 %v7172_v19, %v3759_v18 }
 0xbbc   : > { %3992 = vst.msk [vmem:[%s5535_s28 + $0x10] sm:$0xff] %vm3989_vm7, %v3975_v7 }
 0xbbd   : > { %v3913_v20 = vsub.f32 0.0, %v3881_v15  ;;  %v3896_v50 = vsub.f32 %v7520_v30, %v3799_v17 }
 0xbbf   : > { %v5150_v46 = vpop.eup %5149  ;;  %v3933_v28 = vmul.f32 1.442695, %v3913_v20  ;;  %v7550_v20 = vld [vmem:[%s5522_s25 + $0x30] sm:$0xff] }
 0xbc0   : > { %v3960_v12 = vmul.f32 %v5150_v46, %v3896_v50 }
 0xbc1   : > { %5151 = vpow2.f32 %v3933_v28 }
 0xbc2   : > { %v3976_v22 = vadd.f32 %v3960_v12, %v3799_v17  ;;  %v3762_v14 = vpop.xlane.xlu2 %3761  ;;  %v3846_v2 = vpop.xlane.xlu1 %3845 }
 0xbc3   : > { %v3800_v19 = vadd.f32 %v7526_v39, %v3762_v14  ;;  %v3882_v54 = vadd.f32 %v7513_v13, %v3846_v2 }
 0xbc4   : > { %3993 = vst.msk [vmem:[%s5535_s28 + $0x18] sm:$0xff] %vm3989_vm7, %v3976_v22 }
 0xbc5   : > { %v3897_v49 = vsub.f32 %v7533_v51, %v3800_v19  ;;  %v3914_v32 = vsub.f32 0.0, %v3882_v54 }
 0xbc7   : > { %v5152_v43 = vpop.eup %5151  ;;  %v3935_v4 = vmul.f32 1.442695, %v3914_v32  ;;  %v7558_v32 = vld [vmem:[%s5522_s25 + $0x38] sm:$0xff] }
 0xbc8   : > { %v3961_v0 = vmul.f32 %v5152_v43, %v3897_v49 }
 0xbc9   : > { %5153 = vpow2.f32 %v3935_v4 }
 0xbca   : > { %v3977_v48 = vadd.f32 %v3961_v0, %v3800_v19  ;;  %v3765_v40 = vpop.xlane.xlu1 %3764  ;;  %v3849_v23 = vpop.xlane.xlu0 %3848 }
 0xbcb   : > { %v3801_v9 = vadd.f32 %v7526_v39, %v3765_v40  ;;  %v3883_v21 = vadd.f32 %v7513_v13, %v3849_v23 }
 0xbcc   : > { %3994 = vst.msk [vmem:[%s5535_s28 + $0x20] sm:$0xff] %vm3989_vm7, %v3977_v48  ;;  %4028 = vperm.xlu0 %4946, %v3977_v48  }
 0xbcd   : > { %v3898_v5 = vsub.f32 %v7541_v63, %v3801_v9  ;;  %v3915_v44 = vsub.f32 0.0, %v3883_v21 }
 0xbcf   : > { %v5154_v26 = vpop.eup %5153  ;;  %v3937_v36 = vmul.f32 1.442695, %v3915_v44 }
 0xbd0   : > { %v3962_v8 = vmul.f32 %v5154_v26, %v3898_v5  ;;  %4008 = vperm.xlu1 %4944, %v7467_v59  }
 0xbd1   : > { %5155 = vpow2.f32 %v3937_v36 }
 0xbd2   : > { %v3978_v33 = vadd.f32 %v3962_v8, %v3801_v9  ;;  %v3852_v38 = vpop.xlane.xlu2 %3851  ;;  %v3768_v55 = vpop.xlane.xlu0 %3767  ;;  %v7565_v9 = vld [vmem:[%s5522_s25 + $0x40] sm:$0xff] }
 0xbd3   : > { %v3884_v18 = vadd.f32 %v7513_v13, %v3852_v38  ;;  %v3802_v15 = vadd.f32 %v7526_v39, %v3768_v55 }
 0xbd4   : > { %3995 = vst.msk [vmem:[%s5535_s28 + $0x28] sm:$0xff] %vm3989_vm7, %v3978_v33 }
 0xbd5   : > { %v3916_v17 = vsub.f32 0.0, %v3884_v18  ;;  %v3899_v50 = vsub.f32 %v7550_v20, %v3802_v15 }
 0xbd7   : > { %v5156_v46 = vpop.eup %5155  ;;  %v3939_v28 = vmul.f32 1.442695, %v3916_v17 }
 0xbd8   : > { %v3963_v59 = vmul.f32 %v5156_v46, %v3899_v50  ;;  %4018 = vperm.xlu1 %4944, %v3975_v7   ;;  %v3712_v50 = vpop.f32.mrf.mxu2 }
 0xbd9   : > { %5157 = vpow2.f32 %v3939_v28 }
 0xbda   : > { %v3979_v12 = vadd.f32 %v3963_v59, %v3802_v15  ;;  %v3855_v14 = vpop.xlane.xlu2 %3854  ;;  %v3771_v2 = vpop.xlane.xlu0 %3770 }
 0xbdb   : > { %v3885_v19 = vadd.f32 %v7513_v13, %v3855_v14  ;;  %v3803_v54 = vadd.f32 %v7526_v39, %v3771_v2  ;;  %v3713_v14 = vadd.f32 %v7437_v53, %v3712_v50 }
 0xbdc   : > { %3996 = vst.msk [vmem:[%s5535_s28 + $0x30] sm:$0xff] %vm3989_vm7, %v3979_v12  ;;  %4038 = vperm.xlu2 %4945, %v3979_v12  }
 0xbdd   : > { %v3917_v49 = vsub.f32 0.0, %v3885_v19  ;;  %v3900_v43 = vsub.f32 %v7558_v32, %v3803_v54 }
 0xbdf   : > { %v5158_v4 = vpop.eup %5157  ;;  %v3941_v7 = vmul.f32 1.442695, %v3917_v49 }
 0xbe0   : > { %v3964_v0 = vmul.f32 %v5158_v4, %v3900_v43  ;;  %4023 = vperm.xlu1 %4944, %v3976_v22  }
 0xbe1   : > { %5159 = vpow2.f32 %v3941_v7  ;;  %v3730_v7 = vmax.f32 %v3713_v14, 0.0 }
 0xbe2   : > { %v3980_v48 = vadd.f32 %v3964_v0, %v3803_v54  ;;  %v3774_v40 = vpop.xlane.xlu0 %3773 }
 0xbe3   : > { %v3804_v23 = vadd.f32 %v7526_v39, %v3774_v40 }
 0xbe4   : > { %3997 = vst.msk [vmem:[%s5535_s28 + $0x38] sm:$0xff] %vm3989_vm7, %v3980_v48  ;;  %4043 = vperm.xlu0 %4946, %v3980_v48  }
 0xbe5   : > { %v3901_v21 = vsub.f32 %v7565_v9, %v3804_v23 }
 0xbe7   : > { %v5160_v5 = vpop.eup %5159 }
 0xbe8   : > { %v3965_v44 = vmul.f32 %v5160_v5, %v3901_v21  ;;  %4033 = vperm.xlu1 %4944, %v3978_v33   ;;  %v3777_v38 = vpop.xlane.xlu2 %3776  ;;  %v3747_v21 = vmul.f32 %v7366_v56, %v3730_v7 }
 0xbe9   : > { %v3805_v18 = vadd.f32 %v7526_v39, %v3777_v38 }
 0xbea   : > { %v7568_v26 = vadd.f32 %v3965_v44, %v3804_v23  ;;  %v3858_v36 = vpop.xlane.xlu0 %3857 }
 0xbeb   : > { %v3886_v22 = vadd.f32 %v7513_v13, %v3858_v36  ;;  %v3902_v46 = vsub.f32 %v7251_v24, %v3805_v18  ;;  %v7583_v24 = vld [vmem:[%s5522_s25 + $0x50] sm:$0xff] }
 0xbec   : > { %3998 = vst.msk [vmem:[%s5535_s28 + $0x40] sm:$0xff] %vm3989_vm7, %v7568_v26 }
 0xbed   : > { %v3918_v8 = vsub.f32 0.0, %v3886_v22 }
 0xbef   : > { %v3943_v55 = vmul.f32 1.442695, %v3918_v8 }
 0xbf0   : > { %v3780_v59 = vpop.xlane.xlu1 %3779 }
 0xbf1   : > { %5161 = vpow2.f32 %v3943_v55  ;;  %v3806_v54 = vadd.f32 %v7526_v39, %v3780_v59  ;;  %v3793_v55 = vsel %vm446_vm0, %v3747_v21, 0.0 }
 0xbf2   : > { %v3861_v15 = vpop.xlane.xlu0 %3860 }
 0xbf3   : > { %v3887_v17 = vadd.f32 %v7513_v13, %v3861_v15  ;;  %v3903_v48 = vsub.f32 %v7583_v24, %v3806_v54 }
 0xbf5   : > { %v3919_v33 = vsub.f32 0.0, %v3887_v17 }
 0xbf7   : > { %v5162_v28 = vpop.eup %5161  ;;  %v3945_v12 = vmul.f32 1.442695, %v3919_v33 }
 0xbf8   : > { %v3966_v2 = vmul.f32 %v5162_v28, %v3902_v46  ;;  %v3828_v46 = vmul.f32 %v7371_v16, %v3730_v7  ;;  %v3746_v16 = vmul.f32 %v7366_v56, %v3729_v58 }
 0xbf9   : > { %5163 = vpow2.f32 %v3945_v12  ;;  %v3783_v19 = vpop.xlane.xlu2 %3782 }
 0xbfa   : > { %v3864_v49 = vpop.xlane.xlu0 %3863  ;;  %v3982_v43 = vadd.f32 %v3966_v2, %v3805_v18  ;;  %v3807_v36 = vadd.f32 %v7526_v39, %v3783_v19  ;;  %v7593_v18 = vld [vmem:[%s5522_s25 + $0x58] sm:$0xff]  ;;  %v7600_v19 = vld [vmem:[%s5522_s25 + $0x60] sm:$0xff]  ;;  %v3790_v21 = vsel %vm446_vm0, %v3746_v16, 0.0 }
 0xbfb   : > { %v3888_v4 = vadd.f32 %v7513_v13, %v3864_v49 }
 0xbfc   : > { %3999 = vst.msk [vmem:[%s5535_s28 + $0x48] sm:$0xff] %vm3989_vm7, %v3982_v43  ;;  %v3904_v15 = vsub.f32 %v7593_v18, %v3807_v36 }
 0xbfd   : > { %v3920_v0 = vsub.f32 0.0, %v3888_v4  ;;  %v3874_v4 = vsel %vm446_vm0, %v3828_v46, 0.0 }
 0xbff   : > { %v5164_v40 = vpop.eup %5163  ;;  %v3947_v23 = vmul.f32 1.442695, %v3920_v0 }
 0xc00   : > { %v3967_v5 = vmul.f32 %v5164_v40, %v3903_v48 }
 0xc01   : > { %5165 = vpow2.f32 %v3947_v23  ;;  %v3867_v44 = vpop.xlane.xlu2 %3866 }
 0xc02   : > { %v3889_v22 = vadd.f32 %v7513_v13, %v3867_v44  ;;  %v3983_v8 = vadd.f32 %v3967_v5, %v3806_v54 }
 0xc04   : > { %v3921_v38 = vsub.f32 0.0, %v3889_v22  ;;  %4000 = vst.msk [vmem:[%s5535_s28 + $0x50] sm:$0xff] %vm3989_vm7, %v3983_v8 }
 0xc05   : > { %3794 = vadd.xlane.f32.xlu2 %v3793_v55 }
 0xc06   : > { %v3949_v17 = vmul.f32 1.442695, %v3921_v38  ;;  %v5277_v38 = vld [vmem:[%s7933_s1] sm:$0xff] }
 0xc07   : > { %v5166_v50 = vpop.eup %5165  ;;  %v7623_v55 = vperm.slane %v5277_v38, 6 }
 0xc08   : > { %v3968_v33 = vmul.f32 %v5166_v50, %v3904_v15  ;;  %5167 = vpow2.f32 %v3949_v17 }
 0xc09   : > { %v3786_v28 = vpop.xlane.xlu2 %3785  ;;  %v3870_v59 = vpop.xlane.xlu0 %3869 }
 0xc0a   : > { %v3808_v12 = vadd.f32 %v7526_v39, %v3786_v28  ;;  %v3890_v14 = vadd.f32 %v7513_v13, %v3870_v59  ;;  %v3984_v2 = vadd.f32 %v3968_v33, %v3807_v36 }
 0xc0c   : > { %v3905_v54 = vsub.f32 %v7600_v19, %v3808_v12  ;;  %v3922_v49 = vsub.f32 0.0, %v3890_v14  ;;  %4001 = vst.msk [vmem:[%s5535_s28 + $0x58] sm:$0xff] %vm3989_vm7, %v3984_v2 }
 0xc0e   : > { %v5168_v7 = vpop.eup %5167  ;;  %v3951_v0 = vmul.f32 1.442695, %v3922_v49  ;;  %3875 = vadd.xlane.f32.xlu0 %v3874_v4 }
 0xc0f   : > { %v3969_v48 = vmul.f32 %v5168_v7, %v3905_v54 }
 0xc10   : > { %5169 = vpow2.f32 %v3951_v0 }
 0xc11   : > { %v3985_v40 = vadd.f32 %v3969_v48, %v3808_v12  ;;  %v3789_v23 = vpop.xlane.xlu2 %3788 }
 0xc12   : > { %v3809_v5 = vadd.f32 %v7526_v39, %v3789_v23  ;;  %3791 = vadd.xlane.f32.xlu1 %v3790_v21 }
 0xc13   : > { %4002 = vst.msk [vmem:[%s5535_s28 + $0x60] sm:$0xff] %vm3989_vm7, %v3985_v40 }
 0xc14   : > { %v3906_v56 = vsub.f32 %v7614_v42, %v3809_v5 }
 0xc16   : > { %v5170_v58 = vpop.eup %5169 }
 0xc17   : > { %v3970_v44 = vmul.f32 %v5170_v58, %v3906_v56 }
 0xc19   : > { %v3986_v36 = vadd.f32 %v3970_v44, %v3809_v5  ;;  %v4014_v50 = vpop.permute.xlu2 %4013 }
 0xc1b   : > { %4003 = vst.msk [vmem:[%s5535_s28 + $0x68] sm:$0xff] %vm3989_vm7, %v3986_v36 }
 0xc1d   : > { %4053 = vperm.xlu2 %4945, %v3982_v43   ;;  %v4088_v43 = vmul.f32 %v7623_v55, %v4014_v50 }
 0xc22   : > { %4068 = vperm.xlu0 %4946, %v3985_v40  }
 0xc25   : > { %4073 = vperm.xlu2 %4945, %v3986_v36  }
 0xc2a   : > { %v3873_v22 = vpop.xlane.xlu1 %3872 }
 0xc2b   : > { %4048 = vperm.xlu1 %4944, %v7568_v26   ;;  %v3891_v56 = vadd.f32 %v7513_v13, %v3873_v22 }
 0xc2d   : > { %v3923_v44 = vsub.f32 0.0, %v3891_v56  ;;  %v428_v56 = vld [vmem:[%s7939_s7 + $0x8] sm:$0xff] }
 0xc2f   : > { %v3953_v36 = vmul.f32 1.442695, %v3923_v44 }
 0xc31   : > { %5171 = vpow2.f32 %v3953_v36 }
 0xc33   : > { %4058 = vperm.xlu1 %4944, %v3983_v8   ;;  %v4104_v8 = vadd.f32 %v4088_v43, %v7291_v57 }
 0xc35   : > { %v4120_v28 = vmax.f32 %v4104_v8, 0.0 }
 0xc36   : > { %v4039_v40 = vpop.permute.xlu2 %4038 }
 0xc37   : > { %v4093_v23 = vmul.f32 %v7623_v55, %v4039_v40  ;;  %v5172_v8 = vpop.eup %5171 }
 0xc39   : > { %v4109_v21 = vadd.f32 %v4093_v23, %v7326_v41  ;;  %v430_v41 = vld [vmem:[%s7939_s7 + $0x18] sm:$0xff] }
 0xc3a   : > { %4405 = vmatpush.msra.mxu0 %v430_v41 }
 0xc3b   : > { %4063 = vperm.xlu1 %4944, %v3984_v2  }
 0xc3e   : > { %v4029_v49 = vpop.permute.xlu0 %4028 }
 0xc3f   : > { %v4091_v16 = vmul.f32 %v7623_v55, %v4029_v49 }
 0xc41   : > { %v4107_v57 = vadd.f32 %v4091_v16, %v7313_v47  ;;  %v4125_v47 = vmax.f32 %v4109_v21, 0.0  ;;  %v429_v16 = vld [vmem:[%s7939_s7 + $0x10] sm:$0xff] }
 0xc42   : > { %v4009_v15 = vpop.permute.xlu1 %4008  ;;  %4406 = vmatpush.msra.mxu0 %v429_v16 }
 0xc43   : > { %v4087_v17 = vmul.f32 %v7623_v55, %v4009_v15  ;;  %v4123_v0 = vmax.f32 %v4107_v57, 0.0 }
 0xc44   : > { %4407 = vmatpush.msra.mxu0 %v428_v56 }
 0xc45   : > { %v4103_v33 = vadd.f32 %v4087_v17, %v7284_v31 }
 0xc47   : > { %v4119_v46 = vmax.f32 %v4103_v33, 0.0 }
 0xc49   : > { %4865 = vmatmul.msk.f32.vlgmr.msra.gmra.mxu3 %vm446_vm0, %v4119_v46  ;;  %v7656_v46 = vld [vmem:[%s5522_s25 + $0x70] sm:$0xff] }
 0xc4a   : > { %v4019_v26 = vpop.permute.xlu1 %4018 }
 0xc4b   : > { %v4089_v59 = vmul.f32 %v7623_v55, %v4019_v26 }
 0xc4d   : > { %v4105_v12 = vadd.f32 %v4089_v59, %v7297_v10 }
 0xc4f   : > { %v4121_v2 = vmax.f32 %v4105_v12, 0.0 }
 0xc51   : > { %4866 = vmatmul.msk.f32.gmra.mxu3 %vm446_vm0, %v4120_v28 }
 0xc52   : > { %v4024_v14 = vpop.permute.xlu1 %4023 }
 0xc53   : > { %v4090_v54 = vmul.f32 %v7623_v55, %v4024_v14  ;;  %v7661_v14 = vld [vmem:[%s5522_s25 + $0x78] sm:$0xff] }
 0xc55   : > { %v4106_v31 = vadd.f32 %v4090_v54, %v7305_v25 }
 0xc56   : > { %v4044_v5 = vpop.permute.xlu0 %4043 }
 0xc57   : > { %v4122_v4 = vmax.f32 %v4106_v31, 0.0  ;;  %v4094_v58 = vmul.f32 %v7623_v55, %v4044_v5 }
 0xc59   : > { %4867 = vmatmul.msk.f32.gmra.mxu3 %vm446_vm0, %v4121_v2 }
 0xc5a   : > { %v4034_v7 = vpop.permute.xlu1 %4033 }
 0xc5b   : > { %v4092_v10 = vmul.f32 %v7623_v55, %v4034_v7 }
 0xc5d   : > { %v4108_v48 = vadd.f32 %v4092_v10, %v7319_v1  ;;  %v4110_v1 = vadd.f32 %v4094_v58, %v7332_v60 }
 0xc5f   : > { %v4124_v25 = vmax.f32 %v4108_v48, 0.0  ;;  %v4126_v38 = vmax.f32 %v4110_v1, 0.0 }
 0xc61   : > { %4868 = vmatmul.msk.f32.gmra.mxu3 %vm446_vm0, %v4122_v4 }
 0xc69   : > { %4869 = vmatmul.msk.f32.gmra.mxu3 %vm446_vm0, %v4123_v0 }
 0xc71   : > { %4870 = vmatmul.msk.f32.gmra.mxu3 %vm446_vm0, %v4124_v25 }
 0xc78   : > { %v3795_v33 = vpop.xlane.xlu2 %3794 }
 0xc79   : > { %4871 = vmatmul.msk.f32.gmra.mxu3 %vm446_vm0, %v4125_v47  ;;  %v3811_v28 = vadd.f32 %v7526_v39, %v3795_v33  ;;  %v427_v47 = vld [vmem:[%s7939_s7] sm:$0xff] }
 0xc7a   : > { %4408 = vmatpush.msra.mxu0 %v427_v47 }
 0xc7b   : > { %v3908_v2 = vsub.f32 %v7661_v14, %v3811_v28 }
 0xc80   : > { %v4054_v7 = vpop.permute.xlu2 %4053 }
 0xc81   : > { %4872 = vmatmul.msk.f32.gmra.mxu3 %vm446_vm0, %v4126_v38  ;;  %v3876_v15 = vpop.xlane.xlu0 %3875  ;;  %v4096_v10 = vmul.f32 %v7623_v55, %v4054_v7 }
 0xc82   : > { %v3892_v17 = vadd.f32 %v7513_v13, %v3876_v15 }
 0xc83   : > { %v4112_v23 = vadd.f32 %v4096_v10, %v7348_v6 }
 0xc84   : > { %v3924_v22 = vsub.f32 0.0, %v3892_v17 }
 0xc85   : > { %v3792_v50 = vpop.xlane.xlu1 %3791  ;;  %v4128_v25 = vmax.f32 %v4112_v23, 0.0 }
 0xc86   : > { %v3955_v43 = vmul.f32 1.442695, %v3924_v22  ;;  %v3810_v60 = vadd.f32 %v7526_v39, %v3792_v50 }
 0xc88   : > { %5173 = vpow2.f32 %v3955_v43  ;;  %v3907_v26 = vsub.f32 %v7656_v46, %v3810_v60  ;;  %v4074_v15 = vpop.permute.xlu2 %4073  ;;  %v7697_v43 = vperm.slane %v7363_v61, 7 }
 0xc89   : > { %v4100_v17 = vmul.f32 %v7623_v55, %v4074_v15 }
 0xc8a   : > { %v3971_v59 = vmul.f32 %v5172_v8, %v3907_v26 }
 0xc8b   : > { %v4116_v22 = vadd.f32 %v4100_v17, %v7390_v3 }
 0xc8c   : > { %v3987_v12 = vadd.f32 %v3971_v59, %v3810_v60 }
 0xc8d   : > { %v4132_v50 = vmax.f32 %v4116_v22, 0.0 }
 0xc8e   : > { %v5174_v54 = vpop.eup %5173  ;;  %4004 = vst.msk [vmem:[%s5535_s28 + $0x70] sm:$0xff] %vm3989_vm7, %v3987_v12  ;;  %4078 = vperm.xlu1 %4944, %v3987_v12  }
 0xc8f   : > { %v3972_v31 = vmul.f32 %v5174_v54, %v3908_v2 }
 0xc91   : > { %v3988_v49 = vadd.f32 %v3972_v31, %v3811_v28 }
 0xc93   : > { %4083 = vperm.xlu2 %4945, %v3988_v49   ;;  %4005 = vst.msk [vmem:[%s5535_s28 + $0x78] sm:$0xff] %vm3989_vm7, %v3988_v49 }
 0xc94   : > { %v4069_v1 = vpop.permute.xlu0 %4068 }
 0xc9d   : > { %v4049_v4 = vpop.permute.xlu1 %4048 }
 0xc9e   : > { %v4095_v57 = vmul.f32 %v7623_v55, %v4049_v4 }
 0xca0   : > { %v4111_v0 = vadd.f32 %v4095_v57, %v7340_v52 }
 0xca2   : > { %v4127_v48 = vmax.f32 %v4111_v0, 0.0 }
 0xca4   : > { %4873 = vmatmul.msk.f32.gmra.mxu3 %vm446_vm0, %v4127_v48 }
 0xca5   : > { %v4059_v40 = vpop.permute.xlu1 %4058 }
 0xca6   : > { %v4097_v21 = vmul.f32 %v7623_v55, %v4059_v40 }
 0xca8   : > { %v4113_v5 = vadd.f32 %v4097_v21, %v7354_v45  ;;  %v4099_v45 = vmul.f32 %v7623_v55, %v4069_v1 }
 0xcaa   : > { %v4129_v58 = vmax.f32 %v4113_v5, 0.0  ;;  %v4115_v38 = vadd.f32 %v4099_v45, %v7384_v37 }
 0xcac   : > { %4874 = vmatmul.msk.f32.gmra.mxu3 %vm446_vm0, %v4128_v25  ;;  %v4131_v41 = vmax.f32 %v4115_v38, 0.0 }
 0xcad   : > { %v4064_v52 = vpop.permute.xlu1 %4063 }
 0xcae   : > { %v4098_v6 = vmul.f32 %v7623_v55, %v4064_v52 }
 0xcb0   : > { %v4114_v44 = vadd.f32 %v4098_v6, %v7374_v29 }
 0xcb2   : > { %v4130_v36 = vmax.f32 %v4114_v44, 0.0 }
 0xcb4   : > { %4875 = vmatmul.msk.f32.gmra.mxu3 %vm446_vm0, %v4129_v58 }
 0xcbc   : > { %4876 = vmatmul.msk.f32.gmra.mxu3 %vm446_vm0, %v4130_v36 }
 0xcc4   : > { %4877 = vmatmul.msk.f32.gmra.mxu3 %vm446_vm0, %v4131_v41 }
 0xccc   : > { %v4200_v33 = vpop.f32.mrf.mxu3  ;;  %4878 = vmatmul.msk.f32.gmra.mxu3 %vm446_vm0, %v4132_v50 }
 0xccd   : > { %v4201_v29 = vadd.f32 %v7437_v53, %v4200_v33 }
 0xccf   : > { %v4248_v60 = vmax.f32 %v4201_v29, 0.0 }
 0xcd1   : > { %v4265_v37 = vmul.f32 %v7697_v43, %v4248_v60  ;;  %4881 = vmatmul.msk.f32.vlgmr.msra.gmra.mxu0 %vm446_vm0, %v4248_v60 }
 0xcd3   : > { %v4281_v26 = vsel %vm446_vm0, %v4265_v37, 0.0 }
 0xcd4   : > { %v4203_v8 = vpop.f32.mrf.mxu3  ;;  %4282 = vadd.xlane.f32.xlu1 %v4281_v26 }
 0xcd5   : > { %v4204_v3 = vadd.f32 %v7437_v53, %v4203_v8 }
 0xcd7   : > { %v4249_v28 = vmax.f32 %v4204_v3, 0.0 }
 0xcd9   : > { %v4266_v59 = vmul.f32 %v7697_v43, %v4249_v28  ;;  %4882 = vmatmul.msk.f32.gmra.mxu0 %vm446_vm0, %v4249_v28 }
 0xcdb   : > { %v4284_v12 = vsel %vm446_vm0, %v4266_v59, 0.0 }
 0xcdc   : > { %v4206_v61 = vpop.f32.mrf.mxu3  ;;  %4285 = vadd.xlane.f32.xlu2 %v4284_v12 }
 0xcdd   : > { %v4207_v2 = vadd.f32 %v7437_v53, %v4206_v61 }
 0xcdf   : > { %v4250_v54 = vmax.f32 %v4207_v2, 0.0 }
 0xce1   : > { %v4267_v31 = vmul.f32 %v7697_v43, %v4250_v54  ;;  %4883 = vmatmul.msk.f32.gmra.mxu0 %vm446_vm0, %v4250_v54 }
 0xce3   : > { %v4287_v49 = vsel %vm446_vm0, %v4267_v31, 0.0 }
 0xce4   : > { %v4209_v16 = vpop.f32.mrf.mxu3  ;;  %4288 = vadd.xlane.f32.xlu0 %v4287_v49 }
 0xce5   : > { %v4210_v4 = vadd.f32 %v7437_v53, %v4209_v16 }
 0xce7   : > { %v4251_v57 = vmax.f32 %v4210_v4, 0.0 }
 0xce9   : > { %v4268_v7 = vmul.f32 %v7697_v43, %v4251_v57  ;;  %4884 = vmatmul.msk.f32.gmra.mxu0 %vm446_vm0, %v4251_v57 }
 0xceb   : > { %v4290_v0 = vsel %vm446_vm0, %v4268_v7, 0.0 }
 0xcec   : > { %4291 = vadd.xlane.f32.xlu1 %v4290_v0  ;;  %v4212_v10 = vpop.f32.mrf.mxu3 }
 0xced   : > { %v4213_v48 = vadd.f32 %v7437_v53, %v4212_v10  ;;  %v4084_v38 = vpop.permute.xlu2 %4083 }
 0xcee   : > { %v4102_v22 = vmul.f32 %v7623_v55, %v4084_v38 }
 0xcef   : > { %v4252_v40 = vmax.f32 %v4213_v48, 0.0 }
 0xcf0   : > { %v4118_v60 = vadd.f32 %v4102_v22, %v7423_v62 }
 0xcf1   : > { %v4269_v23 = vmul.f32 %v7697_v43, %v4252_v40  ;;  %4885 = vmatmul.msk.f32.gmra.mxu0 %vm446_vm0, %v4252_v40 }
 0xcf2   : > { %v4134_v26 = vmax.f32 %v4118_v60, 0.0 }
 0xcf3   : > { %v4293_v25 = vsel %vm446_vm0, %v4269_v23, 0.0 }
 0xcf4   : > { %v4215_v21 = vpop.f32.mrf.mxu3  ;;  %4294 = vadd.xlane.f32.xlu2 %v4293_v25 }
 0xcf5   : > { %v4216_v5 = vadd.f32 %v7437_v53, %v4215_v21 }
 0xcf7   : > { %v4253_v56 = vmax.f32 %v4216_v5, 0.0 }
 0xcf9   : > { %v4270_v52 = vmul.f32 %v7697_v43, %v4253_v56  ;;  %4886 = vmatmul.msk.f32.gmra.mxu0 %vm446_vm0, %v4253_v56 }
 0xcfb   : > { %v4296_v47 = vsel %vm446_vm0, %v4270_v52, 0.0 }
 0xcfc   : > { %v4218_v58 = vpop.f32.mrf.mxu3  ;;  %4297 = vadd.xlane.f32.xlu0 %v4296_v47 }
 0xcfd   : > { %v4219_v6 = vadd.f32 %v7437_v53, %v4218_v58 }
 0xcff   : > { %v4254_v44 = vmax.f32 %v4219_v6, 0.0 }
 0xd00   : > { %v4079_v1 = vpop.permute.xlu1 %4078 }
 0xd01   : > { %v4271_v45 = vmul.f32 %v7697_v43, %v4254_v44  ;;  %v4101_v36 = vmul.f32 %v7623_v55, %v4079_v1  ;;  %4887 = vmatmul.msk.f32.gmra.mxu0 %vm446_vm0, %v4254_v44 }
 0xd03   : > { %v4117_v15 = vadd.f32 %v4101_v36, %v7396_v35  ;;  %v4299_v17 = vsel %vm446_vm0, %v4271_v45, 0.0 }
 0xd04   : > { %4300 = vadd.xlane.f32.xlu1 %v4299_v17  ;;  %v4221_v41 = vpop.f32.mrf.mxu3 }
 0xd05   : > { %v4133_v50 = vmax.f32 %v4117_v15, 0.0  ;;  %v4222_v33 = vadd.f32 %v7437_v53, %v4221_v41 }
 0xd07   : > { %v4255_v29 = vmax.f32 %v4222_v33, 0.0  ;;  %4879 = vmatmul.msk.f32.gmra.mxu3 %vm446_vm0, %v4133_v50 }
 0xd09   : > { %v4272_v37 = vmul.f32 %v7697_v43, %v4255_v29  ;;  %4888 = vmatmul.msk.f32.gmra.mxu0 %vm446_vm0, %v4255_v29 }
 0xd0b   : > { %v4302_v35 = vsel %vm446_vm0, %v4272_v37, 0.0 }
 0xd0c   : > { %4303 = vadd.xlane.f32.xlu2 %v4302_v35 }
 0xd0f   : > { %4880 = vmatmul.msk.f32.gmra.mxu3 %vm446_vm0, %v4134_v26 }
 0xd27   : > { %v4224_v8 = vpop.f32.mrf.mxu3 }
 0xd28   : > { %v4225_v55 = vadd.f32 %v7437_v53, %v4224_v8 }
 0xd2a   : > { %v4256_v3 = vmax.f32 %v4225_v55, 0.0 }
 0xd2c   : > { %v4273_v28 = vmul.f32 %v7697_v43, %v4256_v3  ;;  %4889 = vmatmul.msk.f32.gmra.mxu0 %vm446_vm0, %v4256_v3 }
 0xd2e   : > { %v4305_v62 = vsel %vm446_vm0, %v4273_v28, 0.0 }
 0xd2f   : > { %v4227_v59 = vpop.f32.mrf.mxu3  ;;  %4306 = vadd.xlane.f32.xlu0 %v4305_v62 }
 0xd30   : > { %v4228_v12 = vadd.f32 %v7437_v53, %v4227_v59 }
 0xd32   : > { %v4257_v61 = vmax.f32 %v4228_v12, 0.0 }
 0xd34   : > { %v4274_v2 = vmul.f32 %v7697_v43, %v4257_v61  ;;  %4890 = vmatmul.msk.f32.gmra.mxu0 %vm446_vm0, %v4257_v61 }
 0xd36   : > { %v4308_v54 = vsel %vm446_vm0, %v4274_v2, 0.0 }
 0xd37   : > { %v4230_v31 = vpop.f32.mrf.mxu3  ;;  %4309 = vadd.xlane.f32.xlu1 %v4308_v54 }
 0xd38   : > { %v4231_v49 = vadd.f32 %v7437_v53, %v4230_v31 }
 0xd3a   : > { %v4258_v16 = vmax.f32 %v4231_v49, 0.0 }
 0xd3c   : > { %v4275_v4 = vmul.f32 %v7697_v43, %v4258_v16  ;;  %4891 = vmatmul.msk.f32.gmra.mxu0 %vm446_vm0, %v4258_v16 }
 0xd3e   : > { %v4311_v57 = vsel %vm446_vm0, %v4275_v4, 0.0 }
 0xd3f   : > { %v4233_v7 = vpop.f32.mrf.mxu3  ;;  %4312 = vadd.xlane.f32.xlu2 %v4311_v57 }
 0xd40   : > { %v4234_v0 = vadd.f32 %v7437_v53, %v4233_v7 }
 0xd42   : > { %v4259_v10 = vmax.f32 %v4234_v0, 0.0 }
 0xd44   : > { %v4276_v48 = vmul.f32 %v7697_v43, %v4259_v10  ;;  %4892 = vmatmul.msk.f32.gmra.mxu0 %vm446_vm0, %v4259_v10 }
 0xd46   : > { %v4314_v40 = vsel %vm446_vm0, %v4276_v48, 0.0 }
 0xd47   : > { %4315 = vadd.xlane.f32.xlu0 %v4314_v40  ;;  %v4236_v23 = vpop.f32.mrf.mxu3  ;;  %v4283_v45 = vpop.xlane.xlu1 %4282 }
 0xd48   : > { %v4237_v25 = vadd.f32 %v7437_v53, %v4236_v23  ;;  %v4329_v15 = vadd.f32 %v7526_v39, %v4283_v45 }
 0xd4a   : > { %v4260_v21 = vmax.f32 %v4237_v25, 0.0  ;;  %v4458_v50 = vsub.f32 %v7460_v27, %v4329_v15 }
 0xd4c   : > { %v4277_v5 = vmul.f32 %v7697_v43, %v4260_v21  ;;  %4893 = vmatmul.msk.f32.gmra.mxu0 %vm446_vm0, %v4260_v21 }
 0xd4e   : > { %v4410_v56 = vpop.f32.mrf.mxu0  ;;  %v4317_v52 = vsel %vm446_vm0, %v4277_v5, 0.0 }
 0xd4f   : > { %v4411_v47 = vadd.f32 %v7513_v13, %v4410_v56  ;;  %v4239_v58 = vpop.f32.mrf.mxu3  ;;  %4318 = vadd.xlane.f32.xlu1 %v4317_v52  ;;  %v4286_v29 = vpop.xlane.xlu2 %4285 }
 0xd50   : > { %v4240_v6 = vadd.f32 %v7437_v53, %v4239_v58  ;;  %v4330_v26 = vadd.f32 %v7526_v39, %v4286_v29 }
 0xd51   : > { %v4474_v44 = vsub.f32 0.0, %v4411_v47  ;;  %v4572_v55 = vsel %vm4571_vm8, %v4411_v47, 0.0 }
 0xd52   : > { %v4261_v1 = vmax.f32 %v4240_v6, 0.0  ;;  %v4459_v28 = vsub.f32 %v7491_v11, %v4330_v26 }
 0xd53   : > { %v4490_v36 = vmul.f32 1.442695, %v4474_v44 }
 0xd54   : > { %v4278_v38 = vmul.f32 %v7697_v43, %v4261_v1  ;;  %4894 = vmatmul.msk.f32.gmra.mxu0 %vm446_vm0, %v4261_v1 }
 0xd55   : > { %5175 = vpow2.f32 %v4490_v36 }
 0xd56   : > { %v4413_v17 = vpop.f32.mrf.mxu0  ;;  %v4320_v41 = vsel %vm446_vm0, %v4278_v38, 0.0 }
 0xd57   : > { %v7763_v22 = vadd.f32 %v7513_v13, %v4413_v17  ;;  %4321 = vadd.xlane.f32.xlu2 %v4320_v41  ;;  %v4289_v59 = vpop.xlane.xlu0 %4288 }
 0xd58   : > { %v4331_v54 = vadd.f32 %v7526_v39, %v4289_v59 }
 0xd59   : > { %v4475_v53 = vsub.f32 0.0, %v7763_v22 }
 0xd5a   : > { %v4460_v57 = vsub.f32 %v7506_v34, %v4331_v54 }
 0xd5b   : > { %v5176_v33 = vpop.eup %5175  ;;  %v4492_v60 = vmul.f32 1.442695, %v4475_v53 }
 0xd5c   : > { %v4522_v37 = vmul.f32 %v5176_v33, %v4458_v50 }
 0xd5d   : > { %5177 = vpow2.f32 %v4492_v60 }
 0xd5e   : > { %v4538_v35 = vadd.f32 %v4522_v37, %v4329_v15  ;;  %v4416_v8 = vpop.f32.mrf.mxu0 }
 0xd5f   : > { %v7770_v3 = vadd.f32 %v7513_v13, %v4416_v8  ;;  %4573 = vadd.xlane.f32.xlu2 %v4572_v55  ;;  %v4292_v7 = vpop.xlane.xlu1 %4291 }
 0xd60   : > { %4555 = vst.msk [vmem:[%s5535_s28] sm:$0xff] %vm4554_vm9, %v4538_v35  ;;  %v4332_v40 = vadd.f32 %v7526_v39, %v4292_v7 }
 0xd61   : > { %v4476_v27 = vsub.f32 0.0, %v7770_v3 }
 0xd62   : > { %v4461_v34 = vsub.f32 %v7520_v30, %v4332_v40 }
 0xd63   : > { %v5178_v62 = vpop.eup %5177  ;;  %v4494_v12 = vmul.f32 1.442695, %v4476_v27 }
 0xd64   : > { %v4523_v61 = vmul.f32 %v5178_v62, %v4459_v28 }
 0xd65   : > { %5179 = vpow2.f32 %v4494_v12 }
 0xd66   : > { %v4539_v2 = vadd.f32 %v4523_v61, %v4330_v26  ;;  %v4419_v31 = vpop.f32.mrf.mxu0 }
 0xd67   : > { %v4420_v49 = vadd.f32 %v7513_v13, %v4419_v31  ;;  %v4295_v56 = vpop.xlane.xlu2 %4294  ;;  %v5280_v31 = vld [vmem:[%s7936_s4] ss:$0 sm:$0xff] }
 0xd68   : > { %4556 = vst.msk [vmem:[%s5535_s28 + $0x8] sm:$0xff] %vm4554_vm9, %v4539_v2  ;;  %v4333_v6 = vadd.f32 %v7526_v39, %v4295_v56  ;;  %v4575_v56 = vsel %vm4571_vm8, %v7763_v22, 0.0 }
 0xd69   : > { %v4477_v16 = vsub.f32 0.0, %v4420_v49  ;;  %v4581_v4 = vsel %vm4571_vm8, %v4420_v49, 0.0 }
 0xd6a   : > { %4582 = vadd.xlane.f32.xlu2 %v4581_v4  ;;  %v4462_v36 = vsub.f32 %v7533_v51, %v4333_v6 }
 0xd6b   : > { %v5180_v11 = vpop.eup %5179  ;;  %v4496_v0 = vmul.f32 1.442695, %v4477_v16 }
 0xd6c   : > { %v4524_v10 = vmul.f32 %v5180_v11, %v4460_v57 }
 0xd6d   : > { %5181 = vpow2.f32 %v4496_v0 }
 0xd6e   : > { %v4540_v48 = vadd.f32 %v4524_v10, %v4331_v54  ;;  %v4422_v23 = vpop.f32.mrf.mxu0 }
 0xd6f   : > { %v7784_v25 = vadd.f32 %v7513_v13, %v4422_v23  ;;  %v4298_v38 = vpop.xlane.xlu0 %4297 }
 0xd70   : > { %4557 = vst.msk [vmem:[%s5535_s28 + $0x10] sm:$0xff] %vm4554_vm9, %v4540_v48  ;;  %v4334_v53 = vadd.f32 %v7526_v39, %v4298_v38 }
 0xd71   : > { %v4478_v21 = vsub.f32 0.0, %v7784_v25 }
 0xd72   : > { %v4463_v37 = vsub.f32 %v7541_v63, %v4334_v53 }
 0xd73   : > { %v5182_v5 = vpop.eup %5181  ;;  %v4498_v52 = vmul.f32 1.442695, %v4478_v21 }
 0xd74   : > { %v4525_v47 = vmul.f32 %v5182_v5, %v4461_v34 }
 0xd75   : > { %5183 = vpow2.f32 %v4498_v52 }
 0xd76   : > { %v4541_v58 = vadd.f32 %v4525_v47, %v4332_v40  ;;  %v4425_v44 = vpop.f32.mrf.mxu0  ;;  %v4578_v47 = vsel %vm4571_vm8, %v7770_v3, 0.0 }
 0xd77   : > { %v7792_v1 = vadd.f32 %v7513_v13, %v4425_v44  ;;  %v4301_v35 = vpop.xlane.xlu1 %4300 }
 0xd78   : > { %4558 = vst.msk [vmem:[%s5535_s28 + $0x18] sm:$0xff] %vm4554_vm9, %v4541_v58  ;;  %v4335_v27 = vadd.f32 %v7526_v39, %v4301_v35 }
 0xd79   : > { %v4479_v45 = vsub.f32 0.0, %v7792_v1 }
 0xd7a   : > { %v4464_v12 = vsub.f32 %v7550_v20, %v4335_v27 }
 0xd7b   : > { %v5184_v30 = vpop.eup %5183  ;;  %v4500_v15 = vmul.f32 1.442695, %v4479_v45 }
 0xd7c   : > { %v4526_v17 = vmul.f32 %v5184_v30, %v4462_v36 }
 0xd7d   : > { %5185 = vpow2.f32 %v4500_v15 }
 0xd7e   : > { %v4542_v41 = vadd.f32 %v4526_v17, %v4333_v6  ;;  %v4428_v50 = vpop.f32.mrf.mxu0  ;;  %v4587_v6 = vsel %vm4571_vm8, %v7792_v1, 0.0 }
 0xd7f   : > { %v4429_v33 = vadd.f32 %v7513_v13, %v4428_v50  ;;  %v4304_v2 = vpop.xlane.xlu2 %4303 }
 0xd80   : > { %4559 = vst.msk [vmem:[%s5535_s28 + $0x20] sm:$0xff] %vm4554_vm9, %v4542_v41  ;;  %v4336_v11 = vadd.f32 %v7526_v39, %v4304_v2 }
 0xd81   : > { %v4480_v29 = vsub.f32 0.0, %v4429_v33  ;;  %v4590_v60 = vsel %vm4571_vm8, %v4429_v33, 0.0 }
 0xd82   : > { %4591 = vadd.xlane.f32.xlu2 %v4590_v60  ;;  %v4465_v0 = vsub.f32 %v7558_v32, %v4336_v11  ;;  %v4584_v32 = vsel %vm4571_vm8, %v7784_v25, 0.0 }
 0xd83   : > { %v5186_v51 = vpop.eup %5185  ;;  %v4502_v26 = vmul.f32 1.442695, %v4480_v29 }
 0xd84   : > { %v4527_v8 = vmul.f32 %v5186_v51, %v4463_v37 }
 0xd85   : > { %5187 = vpow2.f32 %v4502_v26  ;;  %v5282_v26 = vld [vmem:[%s5522_s25 + $0x48] sm:$0xff] }
 0xd86   : > { %v4543_v55 = vadd.f32 %v4527_v8, %v4334_v53  ;;  %v4431_v28 = vpop.f32.mrf.mxu0 }
 0xd87   : > { %v4432_v62 = vadd.f32 %v7513_v13, %v4431_v28 }
 0xd88   : > { %4560 = vst.msk [vmem:[%s5535_s28 + $0x28] sm:$0xff] %vm4554_vm9, %v4543_v55 }
 0xd89   : > { %v4481_v59 = vsub.f32 0.0, %v4432_v62  ;;  %v4593_v58 = vsel %vm4571_vm8, %v4432_v62, 0.0 }
 0xd8a   : > { %v4242_v61 = vpop.f32.mrf.mxu3 }
 0xd8b   : > { %v5188_v63 = vpop.eup %5187  ;;  %v4504_v54 = vmul.f32 1.442695, %v4481_v59  ;;  %v4243_v49 = vadd.f32 %v5280_v31, %v4242_v61  ;;  %v7853_v59 = vld [vmem:[%s7940_s8] ss:$0 sm:$0xff] }
 0xd8c   : > { %v4528_v16 = vmul.f32 %v5188_v63, %v4464_v12 }
 0xd8d   : > { %5189 = vpow2.f32 %v4504_v54  ;;  %v4262_v4 = vmax.f32 %v4243_v49, 0.0 }
 0xd8e   : > { %v4544_v57 = vadd.f32 %v4528_v16, %v4335_v27 }
 0xd8f   : > { %v4279_v7 = vmul.f32 %v7697_v43, %v4262_v4  ;;  %4895 = vmatmul.msk.f32.gmra.mxu0 %vm446_vm0, %v4262_v4 }
 0xd90   : > { %4561 = vst.msk [vmem:[%s5535_s28 + $0x30] sm:$0xff] %vm4554_vm9, %v4544_v57 }
 0xd91   : > { %v4323_v20 = vsel %vm446_vm0, %v4279_v7, 0.0 }
 0xd92   : > { %v4245_v10 = vpop.f32.mrf.mxu3  ;;  %4324 = vadd.xlane.f32.xlu0 %v4323_v20 }
 0xd93   : > { %v5190_v48 = vpop.eup %5189  ;;  %v4246_v40 = vadd.f32 %v5280_v31, %v4245_v10 }
 0xd94   : > { %v4529_v23 = vmul.f32 %v5190_v48, %v4465_v0 }
 0xd95   : > { %v4263_v21 = vmax.f32 %v4246_v40, 0.0 }
 0xd96   : > { %v4545_v34 = vadd.f32 %v4529_v23, %v4336_v11 }
 0xd97   : > { %v4280_v5 = vmul.f32 %v7697_v43, %v4263_v21  ;;  %4896 = vmatmul.msk.f32.gmra.mxu0 %vm446_vm0, %v4263_v21 }
 0xd98   : > { %4562 = vst.msk [vmem:[%s5535_s28 + $0x38] sm:$0xff] %vm4554_vm9, %v4545_v34 }
 0xd99   : > { %v4326_v52 = vsel %vm446_vm0, %v4280_v5, 0.0 }
 0xd9a   : > { %4576 = vadd.xlane.f32.xlu0 %v4575_v56  ;;  %4327 = vadd.xlane.f32.xlu1 %v4326_v52 }
 0xda2   : > { %4585 = vadd.xlane.f32.xlu0 %v4584_v32  ;;  %4579 = vadd.xlane.f32.xlu1 %v4578_v47  ;;  %v4307_v45 = vpop.xlane.xlu0 %4306 }
 0xda3   : > { %v4337_v25 = vadd.f32 %v7526_v39, %v4307_v45 }
 0xda5   : > { %v4466_v17 = vsub.f32 %v7565_v9, %v4337_v25 }
 0xda9   : > { %v4434_v43 = vpop.f32.mrf.mxu0 }
 0xdaa   : > { %v4435_v22 = vadd.f32 %v7513_v13, %v4434_v43  ;;  %4594 = vadd.xlane.f32.xlu0 %v4593_v58  ;;  %4588 = vadd.xlane.f32.xlu1 %v4587_v6  ;;  %v4310_v53 = vpop.xlane.xlu1 %4309 }
 0xdab   : > { %v4338_v60 = vadd.f32 %v7526_v39, %v4310_v53 }
 0xdac   : > { %v4482_v44 = vsub.f32 0.0, %v4435_v22  ;;  %v4596_v3 = vsel %vm4571_vm8, %v4435_v22, 0.0 }
 0xdad   : > { %v4467_v8 = vsub.f32 %v5282_v26, %v4338_v60 }
 0xdae   : > { %v4506_v36 = vmul.f32 1.442695, %v4482_v44 }
 0xdb0   : > { %5191 = vpow2.f32 %v4506_v36 }
 0xdb1   : > { %v4437_v30 = vpop.f32.mrf.mxu0 }
 0xdb2   : > { %v4438_v38 = vadd.f32 %v7513_v13, %v4437_v30  ;;  %4597 = vadd.xlane.f32.xlu1 %v4596_v3  ;;  %v7843_v13 = vld [vmem:[%s7941_s9] ss:$0 sm:$0xff]  ;;  %v4313_v27 = vpop.xlane.xlu2 %4312 }
 0xdb3   : > { %v4339_v12 = vadd.f32 %v7853_v59, %v4313_v27 }
 0xdb4   : > { %v4483_v15 = vsub.f32 0.0, %v4438_v38  ;;  %v4599_v1 = vsel %vm4571_vm8, %v4438_v38, 0.0 }
 0xdb5   : > { %4600 = vadd.xlane.f32.xlu2 %v4599_v1  ;;  %v4468_v31 = vsub.f32 %v7583_v24, %v4339_v12 }
 0xdb6   : > { %v5192_v41 = vpop.eup %5191  ;;  %v4508_v50 = vmul.f32 1.442695, %v4483_v15 }
 0xdb7   : > { %v4530_v33 = vmul.f32 %v5192_v41, %v4466_v17 }
 0xdb8   : > { %5193 = vpow2.f32 %v4508_v50 }
 0xdb9   : > { %v4546_v29 = vadd.f32 %v4530_v33, %v4337_v25  ;;  %v4440_v37 = vpop.f32.mrf.mxu0 }
 0xdba   : > { %v4441_v51 = vadd.f32 %v7843_v13, %v4440_v37  ;;  %v4316_v16 = vpop.xlane.xlu0 %4315 }
 0xdbb   : > { %4563 = vst.msk [vmem:[%s5535_s28 + $0x40] sm:$0xff] %vm4554_vm9, %v4546_v29  ;;  %v4340_v7 = vadd.f32 %v7853_v59, %v4316_v16 }
 0xdbc   : > { %v4484_v9 = vsub.f32 0.0, %v4441_v51  ;;  %v4602_v35 = vsel %vm4571_vm8, %v4441_v51, 0.0 }
 0xdbd   : > { %4603 = vadd.xlane.f32.xlu0 %v4602_v35  ;;  %v4469_v40 = vsub.f32 %v7593_v18, %v4340_v7 }
 0xdbe   : > { %v5194_v55 = vpop.eup %5193  ;;  %v4510_v39 = vmul.f32 1.442695, %v4484_v9 }
 0xdbf   : > { %v4531_v28 = vmul.f32 %v5194_v55, %v4467_v8 }
 0xdc0   : > { %5195 = vpow2.f32 %v4510_v39 }
 0xdc1   : > { %v4547_v62 = vadd.f32 %v4531_v28, %v4338_v60  ;;  %v4443_v61 = vpop.f32.mrf.mxu0 }
 0xdc2   : > { %v4444_v63 = vadd.f32 %v7843_v13, %v4443_v61  ;;  %v4319_v21 = vpop.xlane.xlu1 %4318 }
 0xdc3   : > { %4564 = vst.msk [vmem:[%s5535_s28 + $0x48] sm:$0xff] %vm4554_vm9, %v4547_v62  ;;  %v4341_v52 = vadd.f32 %v7853_v59, %v4319_v21 }
 0xdc4   : > { %v4485_v2 = vsub.f32 0.0, %v4444_v63  ;;  %v4605_v54 = vsel %vm4571_vm8, %v4444_v63, 0.0 }
 0xdc5   : > { %4606 = vadd.xlane.f32.xlu1 %v4605_v54  ;;  %v4470_v22 = vsub.f32 %v7600_v19, %v4341_v52 }
 0xdc6   : > { %v5196_v49 = vpop.eup %5195  ;;  %v4512_v4 = vmul.f32 1.442695, %v4485_v2 }
 0xdc7   : > { %v4532_v57 = vmul.f32 %v5196_v49, %v4468_v31 }
 0xdc8   : > { %5197 = vpow2.f32 %v4512_v4 }
 0xdc9   : > { %v4548_v11 = vadd.f32 %v4532_v57, %v4339_v12  ;;  %v4446_v20 = vpop.f32.mrf.mxu0 }
 0xdca   : > { %v4447_v0 = vadd.f32 %v7843_v13, %v4446_v20  ;;  %v4322_v10 = vpop.xlane.xlu2 %4321 }
 0xdcb   : > { %4565 = vst.msk [vmem:[%s5535_s28 + $0x50] sm:$0xff] %vm4554_vm9, %v4548_v11  ;;  %v4342_v30 = vadd.f32 %v7853_v59, %v4322_v10 }
 0xdcc   : > { %v4486_v48 = vsub.f32 0.0, %v4447_v0  ;;  %v4608_v24 = vsel %vm4571_vm8, %v4447_v0, 0.0 }
 0xdcd   : > { %4609 = vadd.xlane.f32.xlu2 %v4608_v24  ;;  %v4471_v3 = vsub.f32 %v7614_v42, %v4342_v30 }
 0xdce   : > { %v5198_v23 = vpop.eup %5197  ;;  %v4514_v34 = vmul.f32 1.442695, %v4486_v48 }
 0xdcf   : > { %v4533_v5 = vmul.f32 %v5198_v23, %v4469_v40 }
 0xdd0   : > { %5199 = vpow2.f32 %v4514_v34 }
 0xdd1   : > { %v4549_v56 = vadd.f32 %v4533_v5, %v4340_v7  ;;  %v4449_v32 = vpop.f32.mrf.mxu0 }
 0xdd2   : > { %v4450_v47 = vadd.f32 %v7843_v13, %v4449_v32  ;;  %v4574_v18 = vpop.xlane.xlu2 %4573 }
 0xdd3   : > { %4566 = vst.msk [vmem:[%s5535_s28 + $0x58] sm:$0xff] %vm4554_vm9, %v4549_v56  ;;  %v4620_v43 = vsub.f32 0.0, %v4574_v18 }
 0xdd4   : > { %v4487_v58 = vsub.f32 0.0, %v4450_v47  ;;  %v4611_v6 = vsel %vm4571_vm8, %v4450_v47, 0.0 }
 0xdd5   : > { %4636 = vst.msk [vmem:[%s7873_s19] sm:$0xff] %vm791_vm1, %v4620_v43  ;;  %4612 = vadd.xlane.f32.xlu0 %v4611_v6 }
 0xdd6   : > { %v5200_v44 = vpop.eup %5199  ;;  %v4516_v45 = vmul.f32 1.442695, %v4487_v58 }
 0xdd7   : > { %v4534_v36 = vmul.f32 %v5200_v44, %v4470_v22 }
 0xdd8   : > { %5201 = vpow2.f32 %v4516_v45 }
 0xdd9   : > { %v4550_v25 = vadd.f32 %v4534_v36, %v4341_v52 }
 0xddb   : > { %4567 = vst.msk [vmem:[%s5535_s28 + $0x60] sm:$0xff] %vm4554_vm9, %v4550_v25 }
 0xddd   : > { %v4583_v38 = vpop.xlane.xlu2 %4582 }
 0xdde   : > { %v5202_v15 = vpop.eup %5201  ;;  %v4623_v1 = vsub.f32 0.0, %v4583_v38 }
 0xddf   : > { %v4535_v19 = vmul.f32 %v5202_v15, %v4471_v3 }
 0xde0   : > { %4639 = vst.msk [vmem:[%s7873_s19 + $0x18] sm:$0xff] %vm791_vm1, %v4623_v1 }
 0xde1   : > { %v4551_v17 = vadd.f32 %v4535_v19, %v4342_v30 }
 0xde3   : > { %4568 = vst.msk [vmem:[%s5535_s28 + $0x68] sm:$0xff] %vm4554_vm9, %v4551_v17 }
 0xdf5   : > { %v4592_v41 = vpop.xlane.xlu2 %4591 }
 0xdf6   : > { %v4626_v53 = vsub.f32 0.0, %v4592_v41 }
 0xdf8   : > { %4642 = vst.msk [vmem:[%s7873_s19 + $0x30] sm:$0xff] %vm791_vm1, %v4626_v53 }
 0xe05   : > { %v4325_v50 = vpop.xlane.xlu0 %4324 }
 0xe06   : > { %v4343_v26 = vadd.f32 %v7853_v59, %v4325_v50 }
 0xe08   : > { %v4472_v63 = vsub.f32 %v7656_v46, %v4343_v26 }
 0xe0c   : > { %v4452_v33 = vpop.f32.mrf.mxu0 }
 0xe0d   : > { %v4453_v29 = vadd.f32 %v7843_v13, %v4452_v33  ;;  %v4328_v60 = vpop.xlane.xlu1 %4327  ;;  %v4577_v42 = vpop.xlane.xlu0 %4576 }
 0xe0e   : > { %v4621_v37 = vsub.f32 0.0, %v4577_v42  ;;  %v4344_v49 = vadd.f32 %v7853_v59, %v4328_v60 }
 0xe0f   : > { %v4488_v51 = vsub.f32 0.0, %v4453_v29  ;;  %v4614_v9 = vsel %vm4571_vm8, %v4453_v29, 0.0 }
 0xe10   : > { %4637 = vst.msk [vmem:[%s7873_s19 + $0x8] sm:$0xff] %vm791_vm1, %v4621_v37  ;;  %4615 = vadd.xlane.f32.xlu1 %v4614_v9  ;;  %v4473_v11 = vsub.f32 %v7661_v14, %v4344_v49 }
 0xe11   : > { %v4518_v35 = vmul.f32 1.442695, %v4488_v51 }
 0xe13   : > { %5203 = vpow2.f32 %v4518_v35 }
 0xe14   : > { %v4455_v8 = vpop.f32.mrf.mxu0 }
 0xe15   : > { %v4456_v55 = vadd.f32 %v7843_v13, %v4455_v8  ;;  %v4580_v27 = vpop.xlane.xlu1 %4579  ;;  %v4586_v39 = vpop.xlane.xlu0 %4585 }
 0xe16   : > { %v4622_v28 = vsub.f32 0.0, %v4580_v27  ;;  %v4624_v62 = vsub.f32 0.0, %v4586_v39 }
 0xe17   : > { %v4489_v12 = vsub.f32 0.0, %v4456_v55  ;;  %v4617_v61 = vsel %vm4571_vm8, %v4456_v55, 0.0 }
 0xe18   : > { %4638 = vst.msk [vmem:[%s7873_s19 + $0x10] sm:$0xff] %vm791_vm1, %v4622_v28  ;;  %4618 = vadd.xlane.f32.xlu2 %v4617_v61 }
 0xe19   : > { %v5204_v2 = vpop.eup %5203  ;;  %v4520_v54 = vmul.f32 1.442695, %v4489_v12  ;;  %4640 = vst.msk [vmem:[%s7873_s19 + $0x20] sm:$0xff] %vm791_vm1, %v4624_v62 }
 0xe1a   : > { %v4536_v13 = vmul.f32 %v5204_v2, %v4472_v63 }
 0xe1b   : > { %5205 = vpow2.f32 %v4520_v54 }
 0xe1c   : > { %v4552_v31 = vadd.f32 %v4536_v13, %v4343_v26 }
 0xe1d   : > { %v4589_v16 = vpop.xlane.xlu1 %4588  ;;  %v4595_v4 = vpop.xlane.xlu0 %4594 }
 0xe1e   : > { %4569 = vst.msk [vmem:[%s5535_s28 + $0x70] sm:$0xff] %vm4554_vm9, %v4552_v31  ;;  %v4625_v46 = vsub.f32 0.0, %v4589_v16  ;;  %v4627_v57 = vsub.f32 0.0, %v4595_v4 }
 0xe20   : > { %4641 = vst.msk [vmem:[%s7873_s19 + $0x28] sm:$0xff] %vm791_vm1, %v4625_v46 }
 0xe21   : > { %v5206_v7 = vpop.eup %5205  ;;  %4643 = vst.msk [vmem:[%s7873_s19 + $0x38] sm:$0xff] %vm791_vm1, %v4627_v57 }
 0xe22   : > { %v4537_v20 = vmul.f32 %v5206_v7, %v4473_v11 }
 0xe24   : > { %v4553_v0 = vadd.f32 %v4537_v20, %v4344_v49 }
 0xe25   : > { %v4598_v59 = vpop.xlane.xlu1 %4597 }
 0xe26   : > { %4570 = vst.msk [vmem:[%s5535_s28 + $0x78] sm:$0xff] %vm4554_vm9, %v4553_v0  ;;  %v4628_v10 = vsub.f32 0.0, %v4598_v59 }
 0xe28   : > { %4644 = vst.msk [vmem:[%s7873_s19 + $0x40] sm:$0xff] %vm791_vm1, %v4628_v10  ;;  %v4601_v48 = vpop.xlane.xlu2 %4600 }
 0xe29   : > { %v4629_v24 = vsub.f32 0.0, %v4601_v48 }
 0xe2b   : > { %4645 = vst.msk [vmem:[%s7873_s19 + $0x48] sm:$0xff] %vm791_vm1, %v4629_v24 }
 0xe30   : > { %v4604_v14 = vpop.xlane.xlu0 %4603 }
 0xe31   : > { %v4630_v40 = vsub.f32 0.0, %v4604_v14 }
 0xe33   : > { %4646 = vst.msk [vmem:[%s7873_s19 + $0x50] sm:$0xff] %vm791_vm1, %v4630_v40 }
 0xe38   : > { %v4607_v23 = vpop.xlane.xlu1 %4606 }
 0xe39   : > { %v4631_v21 = vsub.f32 0.0, %v4607_v23 }
 0xe3b   : > { %4647 = vst.msk [vmem:[%s7873_s19 + $0x58] sm:$0xff] %vm791_vm1, %v4631_v21 }
 0xe40   : > { %v4610_v34 = vpop.xlane.xlu2 %4609 }
 0xe41   : > { %v4632_v5 = vsub.f32 0.0, %v4610_v34 }
 0xe43   : > { %4648 = vst.msk [vmem:[%s7873_s19 + $0x60] sm:$0xff] %vm791_vm1, %v4632_v5 }
 0xe48   : > { %v4613_v56 = vpop.xlane.xlu0 %4612 }
 0xe49   : > { %v4633_v52 = vsub.f32 0.0, %v4613_v56 }
 0xe4b   : > { %4649 = vst.msk [vmem:[%s7873_s19 + $0x68] sm:$0xff] %vm791_vm1, %v4633_v52 }
 0xe83   : > { %v4616_v32 = vpop.xlane.xlu1 %4615 }
 0xe84   : > { %v4634_v47 = vsub.f32 0.0, %v4616_v32 }
 0xe86   : > { %4650 = vst.msk [vmem:[%s7873_s19 + $0x70] sm:$0xff] %vm791_vm1, %v4634_v47 }
 0xe8b   : > { %v4619_v18 = vpop.xlane.xlu2 %4618 }
 0xe8c   : > { %v4635_v43 = vsub.f32 0.0, %v4619_v18 }
 0xe8e   : > { %4651 = vst.msk [vmem:[%s7873_s19 + $0x78] sm:$0xff] %vm791_vm1, %v4635_v43 }
 0xe8f PF: > { %s22_s17 = sadd.s32 1, %s5290_s17  }
 0xe90   : > { %p19_p4 = scmp.ge.s32.totalorder %s22_s17, 4  }
 0xe92   :  { %21 = sbr.rel (!%p19_p4) target bundleno = 1 (0x1), region = 102 }

</bundles_post_ra>
